<compile_context>
chip_gen: v7x
topology: tpu7x:2x2x1
jax: 0.10.0
libtpu: 0.0.40
codegen_flags: <defaults>
</compile_context>

<pallas_src>
import functools

import jax
import jax.numpy as jnp
from jax.experimental import pallas as pl
from jax.experimental.pallas import tpu as pltpu


def _edge_sum_kernel(edges_ref, x_ref, *rest, sigma, has_mask):
    """Accumulates S[b, e] = sum_n mask[b, n] * sigmoid(sigma * (x[b, n] - edge[e]))."""
    if has_mask:
        mask_ref, o_ref = rest
    else:
        (o_ref,) = rest

    k = pl.program_id(1)            # N-tile index (reduction axis, innermost)

    @pl.when(k == 0)
    def _():
        o_ref[...] = jnp.zeros_like(o_ref)

    x = x_ref[...]                  # (B, TN)  f32
    e_lo = edges_ref[...]           # (1, Tb)  f32   lower bin edges of this bin tile

    # (B, TN, Tb): bins on lanes, samples on sublanes.  Subtract-then-scale is kept
    # (instead of pre-scaling x/edges by sigma) so the sigmoid arguments match the
    # reference numerics at sigma=1e5; the extra VPU multiply is hidden under the
    # EUP (sigmoid) bottleneck.
    arg = (x[:, :, None] - e_lo[None, :, :]) * jnp.float32(sigma)
    e = jax.nn.sigmoid(arg)         # ONE sigmoid per (sample, edge)

    if has_mask:
        e = e * mask_ref[...][:, :, None]

    # Reduce over the sample (sublane) axis; the (B, Tb) resident accumulator /
    # output stays lane-dense.
    o_ref[...] += e.sum(axis=1)


def soft_histogram(x, mask=None, *, bins=256, vmin=0.0, vmax=1.0,
                   sigma=100000.0, tile_n=512):
    """Pallas soft histogram.  x: (B, N) float.  Returns (B, bins) float32."""
    assert x.ndim == 2, x.ndim
    assert bins != 0, "'bins' can not be 0."
    if mask is not None:
        assert mask.shape == x.shape, (x.shape, mask.shape)

    B, N = x.shape
    delta = float(vmax - vmin) / float(bins)
    sigma = float(sigma)
    x = x.astype(jnp.float32)
    if mask is not None:
        mask = mask.astype(jnp.float32)

    # --- bin tiling: 128-wide lane-dense output blocks when possible -------------
    tile_bins = 128 if (bins % 128 == 0) else bins
    n_bin_tiles = bins // tile_bins

    # --- N tiling: big tiles (multiple of 128), but keep the (B, tile_n, tile_bins)
    # f32 temporary around <= ~2 MiB so live copies + double-buffered inputs fit
    # v7x's 64 MiB VMEM with headroom.
    budget_bytes = 2 * 1024 * 1024
    cap = max(128, (budget_bytes // (max(B, 1) * tile_bins * 4)) // 128 * 128)
    tile_n = max(128, (int(tile_n) // 128) * 128)
    tile_n = int(min(tile_n, cap))
    if N <= tile_n:
        tile_n, n_pad = N, 0
    else:
        n_pad = (-N) % tile_n

    if n_pad:
        if mask is None:
            # Sentinel far below vmin: sigmoid(sigma*(pad - edge)) saturates to 0 for
            # every edge (including the closing vmax edge), so padded samples
            # contribute nothing and no ones-mask has to be streamed from HBM.
            pad_val = float(vmin) - (64.0 / max(abs(sigma), 1e-30)
                                     + abs(float(vmax) - float(vmin)) + 1.0)
            x = jnp.pad(x, ((0, 0), (0, n_pad)), constant_values=pad_val)
        else:
            # Padded samples must be masked out (a pad value sitting on e_0 would
            # otherwise contribute sigmoid(0) = 0.5 to the first edge sum).
            x = jnp.pad(x, ((0, 0), (0, n_pad)), constant_values=float(vmin))
            mask = jnp.pad(mask, ((0, 0), (0, n_pad)))
    n_total = N + n_pad
    n_n_tiles = n_total // tile_n
    has_mask = mask is not None

    # Lower bin edges e_j = c_j - delta/2 = vmin + j*delta (kept 2-D for VMEM).
    edges = (float(vmin) + delta * jnp.arange(bins, dtype=jnp.float32)).reshape(1, bins)

    kernel = functools.partial(_edge_sum_kernel, sigma=sigma, has_mask=has_mask)

    in_specs = [
        pl.BlockSpec((1, tile_bins), lambda j, k: (0, j)),   # edges: per bin tile
        pl.BlockSpec((B, tile_n), lambda j, k: (0, k)),      # x: per N tile
    ]
    inputs = [edges, x]
    if has_mask:
        in_specs.append(pl.BlockSpec((B, tile_n), lambda j, k: (0, k)))
        inputs.append(mask)

    s_left = pl.pallas_call(
        kernel,
        out_shape=jax.ShapeDtypeStruct((B, bins), jnp.float32),
        grid_spec=pltpu.PrefetchScalarGridSpec(
            num_scalar_prefetch=0,
            grid=(n_bin_tiles, n_n_tiles),          # reduction (N) axis last
            in_specs=in_specs,
            out_specs=pl.BlockSpec((B, tile_bins), lambda j, k: (0, j)),
        ),
        compiler_params=pltpu.CompilerParams(
            dimension_semantics=("parallel", "arbitrary"),   # bins axis -> 2 TCs on v7x
            vmem_limit_bytes=32 * 1024 * 1024,
        ),
    )(*inputs)                                       # (B, bins): S at the lower edges

    # Closing edge e_bins = vmax and the telescoping difference: tiny, plain JAX.
    hi = jax.nn.sigmoid(jnp.float32(sigma) * (x - jnp.float32(vmax)))
    if has_mask:
        hi = hi * mask
    s_vmax = hi.sum(axis=1, keepdims=True)                       # (B, 1)
    s_right = jnp.concatenate([s_left[:, 1:], s_vmax], axis=1)   # (B, bins)
    return s_left - s_right


def _reference(x, mask, bins, vmin, vmax, sigma):
    delta = float(vmax - vmin) / float(bins)
    centers = float(vmin) + delta * (jnp.arange(bins, dtype=jnp.float32) + 0.5)
    d = x[:, None, :] - centers[None, :, None]
    s = (jax.nn.sigmoid(sigma * (d + delta / 2.0))
         - jax.nn.sigmoid(sigma * (d - delta / 2.0)))
    if mask is not None:
        s = s * mask[:, None, :]
    return s.sum(axis=-1)


if __name__ == "__main__":
    key = jax.random.PRNGKey(0)
    kx, km = jax.random.split(key)

    B, N, BINS = 2, 1024, 256
    x = jax.random.uniform(kx, (B, N), dtype=jnp.float32)            # values in [0, 1)
    mask = (jax.random.uniform(km, (B, N)) > 0.3).astype(jnp.float32)

    out = soft_histogram(x, mask, bins=BINS, vmin=0.0, vmax=1.0, sigma=100000.0)
    out = jax.block_until_ready(out)
    ref = _reference(x, mask, BINS, 0.0, 1.0, 100000.0)
    assert out.shape == (B, BINS)
    # atol covers the different (telescoped) summation order; with sigma=1e5 the
    # sigmoids saturate to exact 0/1 almost everywhere so the actual gap is ~1e-4.
    assert jnp.allclose(out, ref, atol=5e-3, rtol=1e-3), \
        float(jnp.max(jnp.abs(out - ref)))

    # mask=None path (separate kernel variant: no ones-mask is streamed from HBM).
    out2 = jax.block_until_ready(soft_histogram(x, None, bins=BINS))
    ref2 = _reference(x, None, BINS, 0.0, 1.0, 100000.0)
    assert jnp.allclose(out2, ref2, atol=5e-3, rtol=1e-3), \
        float(jnp.max(jnp.abs(out2 - ref2)))

    print("KERNEL_OK")
</pallas_src>

<mosaic_0001>
module attributes {stable_mosaic.version = 11 : i64} {
  func.func @_edge_sum_kernel(%arg0: i32, %arg1: i32, %arg2: memref<1x128xf32, #tpu.memory_space<vmem>>, %arg3: memref<2x512xf32, #tpu.memory_space<vmem>>, %arg4: memref<2x512xf32, #tpu.memory_space<vmem>>, %arg5: memref<2x128xf32, #tpu.memory_space<vmem>>) attributes {dimension_semantics = [#tpu.dimension_semantics<parallel>, #tpu.dimension_semantics<arbitrary>], iteration_bounds = array<i64: 2, 2>, scalar_prefetch = 0 : i64, scratch_operands = 0 : i64, tpu.core_type = #tpu.core_type<tc>, window_params = [{transform_indices = @transform_0, window_bounds = array<i64: 1, 128>}, {transform_indices = @transform_1, window_bounds = array<i64: 2, 512>}, {transform_indices = @transform_2, window_bounds = array<i64: 2, 512>}, {transform_indices = @transform_3, window_bounds = array<i64: 2, 128>}]} {
    %c0_i32 = arith.constant 0 : i32
    %0 = arith.cmpi eq, %arg1, %c0_i32 : i32
    %1 = arith.extui %0 : i1 to i32
    %c0_i32_0 = arith.constant 0 : i32
    %2 = arith.cmpi ne, %1, %c0_i32_0 : i32
    scf.if %2 {
      %cst_12 = arith.constant 0.000000e+00 : f32
      %25 = vector.broadcast %cst_12 : f32 to vector<2x128xf32>
      %c0_13 = arith.constant 0 : index
      %c0_14 = arith.constant 0 : index
      %26 = vector.load %arg5[%c0_13, %c0_14] : memref<2x128xf32, #tpu.memory_space<vmem>>, vector<2x128xf32>
      tpu.vector_store %arg5[%c0_13, %c0_14], %25 {strides = array<i32>} : memref<2x128xf32, #tpu.memory_space<vmem>>, vector<2x128xf32>,
    } else {
    }
    %c0 = arith.constant 0 : index
    %c0_1 = arith.constant 0 : index
    %3 = vector.load %arg3[%c0, %c0_1] : memref<2x512xf32, #tpu.memory_space<vmem>>, vector<2x512xf32>
    %c0_2 = arith.constant 0 : index
    %c0_3 = arith.constant 0 : index
    %4 = vector.load %arg2[%c0_2, %c0_3] : memref<1x128xf32, #tpu.memory_space<vmem>>, vector<1x128xf32>
    %5 = vector.shape_cast %3 : vector<2x512xf32> to vector<2x512x1xf32>
    %6 = vector.shape_cast %4 : vector<1x128xf32> to vector<1x1x128xf32>
    %7 = vector.broadcast %5 : vector<2x512x1xf32> to vector<2x512x128xf32>
    %8 = vector.broadcast %6 : vector<1x1x128xf32> to vector<2x512x128xf32>
    %9 = arith.subf %7, %8 : vector<2x512x128xf32>
    %cst = arith.constant 1.000000e+05 : f32
    %10 = vector.broadcast %cst : f32 to vector<2x512x128xf32>
    %11 = arith.mulf %9, %10 : vector<2x512x128xf32>
    %12 = arith.negf %11 : vector<2x512x128xf32>
    %13 = math.exp %12 : vector<2x512x128xf32>
    %cst_4 = arith.constant 1.000000e+00 : f32
    %14 = vector.broadcast %cst_4 : f32 to vector<2x512x128xf32>
    %15 = arith.addf %14, %13 : vector<2x512x128xf32>
    %16 = arith.divf %14, %15 : vector<2x512x128xf32>
    %c0_5 = arith.constant 0 : index
    %c0_6 = arith.constant 0 : index
    %17 = vector.load %arg4[%c0_5, %c0_6] : memref<2x512xf32, #tpu.memory_space<vmem>>, vector<2x512xf32>
    %18 = vector.shape_cast %17 : vector<2x512xf32> to vector<2x512x1xf32>
    %19 = vector.broadcast %18 : vector<2x512x1xf32> to vector<2x512x128xf32>
    %20 = arith.mulf %16, %19 : vector<2x512x128xf32>
    %c0_7 = arith.constant 0 : index
    %c0_8 = arith.constant 0 : index
    %21 = vector.load %arg5[%c0_7, %c0_8] : memref<2x128xf32, #tpu.memory_space<vmem>>, vector<2x128xf32>
    %cst_9 = arith.constant dense<0.000000e+00> : vector<2x128xf32>
    %22 = vector.multi_reduction <add>, %20, %cst_9 [1] : vector<2x512x128xf32> to vector<2x128xf32>
    %23 = arith.addf %21, %22 : vector<2x128xf32>
    %c0_10 = arith.constant 0 : index
    %c0_11 = arith.constant 0 : index
    %24 = vector.load %arg5[%c0_10, %c0_11] : memref<2x128xf32, #tpu.memory_space<vmem>>, vector<2x128xf32>
    tpu.vector_store %arg5[%c0_10, %c0_11], %23 {strides = array<i32>} : memref<2x128xf32, #tpu.memory_space<vmem>>, vector<2x128xf32>,
    return
  }
  func.func @transform_0(%arg0: i32, %arg1: i32) -> (i32, i32) {
    %c0_i32 = arith.constant 0 : i32
    %c0_i32_0 = arith.constant 0 : i32
    return %c0_i32, %arg0 : i32, i32
  }
  func.func @transform_1(%arg0: i32, %arg1: i32) -> (i32, i32) {
    %c0_i32 = arith.constant 0 : i32
    %c0_i32_0 = arith.constant 0 : i32
    return %c0_i32, %arg1 : i32, i32
  }
  func.func @transform_2(%arg0: i32, %arg1: i32) -> (i32, i32) {
    %c0_i32 = arith.constant 0 : i32
    %c0_i32_0 = arith.constant 0 : i32
    return %c0_i32, %arg1 : i32, i32
  }
  func.func @transform_3(%arg0: i32, %arg1: i32) -> (i32, i32) {
    %c0_i32 = arith.constant 0 : i32
    %c0_i32_0 = arith.constant 0 : i32
    return %c0_i32, %arg0 : i32, i32
  }
}

</mosaic_0001>

<bundles_post_ra>
// kernel: tpu_custom_call.1
= control target key start
LH: loop header
LB: loop body
LE: loop exit
PB: predicated region body
PF: predicated region fallthrough
CT: control target
= control target key end

     0   :  { %s5443_s0 = inlined_call_operand.hbm [shape: f32[1,256], index: 0, kind: input, shape index: {}]   ;;  %s5444_s1 = inlined_call_operand.hbm [shape: f32[2,1024], index: 1, kind: input, shape index: {}]   ;;  %s5445_s2 = inlined_call_operand.hbm [shape: f32[2,1024], index: 2, kind: input, shape index: {}]   ;;  %s5446_s3 = inlined_call_operand.hbm [shape: f32[2,256], index: 3, kind: output, shape index: {}]  }
   0x1   :  { %5462 = sst [smem:[#allocation104_spill]] %s5444_s1 }
   0x2   :  { %5463 = sst [smem:[#allocation105_spill]] %s5446_s3 }
   0x3   :  { %8 = vsyncpa [#allocation3], 0 }
   0x4   :  { %10 = vsyncpa [#allocation3 + $0x1], 0 }
   0x5   :  { %11 = vsyncpa [#allocation6], 0 }
   0x6   :  { %13 = vsyncpa [#allocation6 + $0x1], 0 }
   0x7   :  { %14 = vsyncpa [#allocation4], 0 }
   0x8   :  { %16 = vsyncpa [#allocation4 + $0x1], 0  ;;  %s3858_s12 = smov 0   ;;  %s3860_s13 = smov 0  }
   0x9   :  { %s3862_s14 = smov 0   ;;  %s3864_s15 = smov 0  }
   0xa   :  { %s3866_s16 = smov 0   ;;  %s3868_s17 = smov 0  }
   0xb   :  { %s3870_s18 = smov 0   ;;  %s3872_s19 = smov 0  }
   0xc   :  { %s3874_s20 = smov 0   ;;  %s3876_s21 = smov 0  }
   0xd   :  { %s3878_s22 = smov 0  }
   0xe LB: > { %5464 = sst [smem:[#allocation12_spill]] %s3798_s14  ;;  %s3912_s23 = sadd.s32 4294967295, %s3830_s22   ;;  %s3830_s22 = sphi %s3878_s22, %s22_s22   ;;  %s3826_s21 = sphi %s3876_s21, %s5750_s21   ;;  %s3822_s20 = sphi %s3874_s20, %s5749_s20   ;;  %s3818_s19 = sphi %s3872_s19, %s5748_s19   ;;  %s3814_s18 = sphi %s3870_s18, %s5747_s18   ;;  %s3810_s17 = sphi %s3868_s17, %s5755_s17   ;;  %s3806_s16 = sphi %s3866_s16, %s5754_s16   ;;  %s3802_s15 = sphi %s3864_s15, %s5753_s15   ;;  %s3798_s14 = sphi %s3862_s14, %s5745_s14   ;;  %s3794_s13 = sphi %s3860_s13, %s5752_s13   ;;  %s3790_s12 = sphi %s3858_s12, %s5751_s12  }
   0xf   : > { %5465 = sst [smem:[#allocation13_spill]] %s3802_s15  ;;  %s31_s24 = sadd.s32 1, %s3822_s20 }
  0x10   : > { %5466 = sst [smem:[#allocation14_spill]] %s3822_s20  ;;  %p3915_p0 = scmp.ge.s32.totalorder %s31_s24, 2 }
  0x11   : > { %5467 = sst [smem:[#allocation15_spill]] %s3826_s21  ;;  %p5450_p1 = scmp.eq.s32.totalorder %s3830_s22, 0 }
  0x12   : > { %p5449_p2 = scmp.eq.s32.totalorder %s3912_s23, 0  ;;  %s67_s26 = sadd.s32 1, %s3798_s14 }
  0x13   : > { %s5757_s24 = smov (%p3915_p0, %s31_s24), 0  ;;  %p74_p3 = scmp.ne.s32.totalorder %s3798_s14, %s3794_s13 }
  0x14   : > { %5469 = sst [smem:[#allocation16_spill]] %s5757_s24  ;;  %p80_p4 = scmp.ne.s32.totalorder %s3794_s13, %s3790_s12 }
  0x15   : > { %s64_s27 = ssub.s32 %s3822_s20, %s5757_s24  ;;  %p76_p6 = por %p74_p3, %p5450_p1 }
  0x16   : > { %p65_p5 = scmp.eq.s32.totalorder %s64_s27, 0  ;;  %p3935_p7 = por %p80_p4, %p5449_p2 }
  0x17   : > { %p5448_p8 = scmp.lt.s32.totalorder %s3830_s22, 4  ;;  %s173_s30 = sand.u32 1, %s3830_s22  }
  0x18   : > { %s5470_s28 = scalar_select %p3935_p7, 1, 0 }
  0x19   : > { %s3941_s29 = scalar_select %p65_p5, %s3798_s14, %s67_s26  }
  0x1a   : > { %s175_s4 = sand.u32 1, %s3798_s14   ;;  %s5447_s6 = sshll.u32 %s3822_s20, 7 }
  0x1b   : > { %5471 = sst [smem:[#allocation17_spill]] %s3941_s29  ;;  %s3945_s5 = sshll.u32 %s175_s4, 3 }
  0x1c   : > { %s5472_s1 = sld [smem:[#allocation104_spill]]  ;;  %s177_s10 = scalar_lea.vmem [#allocation5], %s3945_s5 }
  0x1d   : > { %s185_s11 = sshll.u32 %s177_s10, 4  ;;  %p3960_p9 = pnand %p5448_p8, %p76_p6  ;;  %s3956_s11 = int_to_ptr.vmem [resolvable:$true] %s185_s11 }
  0x1e   : > { %s3965_s26 = scalar_lea.sflag [#allocation6], %s173_s30 }
  0x1f   : > { %p5459_p12 = pneg %p3960_p9 }
  0x22   : > { %s3953_s9 = scalar_lea.hbm %s5472_s1, %s5447_s6  ;;  %s3619_s8 = scalar_lea.hbm %s5472_s1, 256 }
  0x23   : > { %s3614_s27 = scalar_lea.hbm %s3953_s9, 128  ;;  %p3620_p4 = scmp.lt.u32.totalorder %s3953_s9, %s5472_s1 }
  0x24   : > { %p3615_p11 = scmp.ne.s32.totalorder %s3953_s9, %s3614_s27  ;;  %p3621_p5 = scmp.lt.u32.totalorder %s3619_s8, %s3614_s27 }
  0x25   : > { %p3623_p8 = scmp.lt.u32.totalorder %s3614_s27, %s3953_s9 }
  0x26   : > { %p3617_p13 = pnand %p5459_p12, %p3615_p11  ;;  %p3622_p6 = por %p3621_p5, %p3620_p4 }
  0x28   : > { %p3618_p3 = pneg %p3617_p13  ;;  %p3624_p2 = por %p3623_p8, %p3622_p6 }
  0x2a   : > { %p3625_p1 = pnand %p3624_p2, %p3618_p3 }
  0x2c   : > { %3628 = shalt.err (!%p3625_p1)
}
  0x2d   : > { %s3629_s30 = scalar_lea.vmem %s3956_s11, 128  ;;  %s3832_s4 = smov [#allocation5]  }
  0x2e   : > { %p3630_p11 = scmp.ne.s32.totalorder %s3956_s11, %s3629_s30  ;;  %s3634_s7 = sshll.u32 %s3832_s4, 4  ;;  %s3635_s7 = int_to_ptr.vmem [resolvable:$false] %s3634_s7 }
  0x2f   : > { %s3636_s6 = scalar_lea.vmem %s3635_s7, 256  ;;  %p3637_p7 = scmp.lt.s32.totalorder %s3956_s11, %s3635_s7 }
  0x30   : > { %p3632_p13 = pnand %p3630_p11, %p5459_p12  ;;  %p3638_p4 = scmp.lt.s32.totalorder %s3636_s6, %s3629_s30 }
  0x32   : > { %p3633_p10 = pneg %p3632_p13  ;;  %p3639_p5 = por %p3638_p4, %p3637_p7 }
  0x34   : > { %p3640_p8 = pnand %p3639_p5, %p3633_p10 }
  0x36   : > { %3643 = shalt.err (!%p3640_p8)
}
  0x37   : > { %2998 = dma.hbm_to_vmem [thread:$0]  (!%p3960_p9), %s3953_s9, 128, %s3956_s11, %s3965_s26  }
  0x38   : > { %p209_p1 = scmp.lt.s32.totalorder %s3830_s22, 5  ;;  %p5474_p2 = scmp.ge.s32.totalorder %s3830_s22, 1 }
  0x39   : > { %s2834_s8 = sadd.s32 4294967294, %s3830_s22   ;;  %s34_s10 = sadd.s32 1, %s3826_s21 }
  0x3a   : > { %p3996_p7 = pnand %p5474_p2, %p209_p1  ;;  %s5759_s10 = smov (!%p3915_p0, %s34_s10), %s3826_s21 }
  0x3b   : > { %s41_s30 = sadd.s32 1, %s3810_s17  ;;  %p48_p10 = scmp.ne.s32.totalorder %s3810_s17, %s3806_s16 }
  0x3c   : > { %s5475_s27 = scalar_select %p3996_p7, 1, 0 }
  0x3d   : > { %p36_p3 = scmp.ge.s32.totalorder %s5759_s10, 2  ;;  %p54_p6 = scmp.ne.s32.totalorder %s3806_s16, %s3802_s15 }
  0x3e   : > { %p5476_p11 = scmp.eq.s32.totalorder %s3830_s22, 0  ;;  %p130_p4 = scmp.eq.s32.totalorder %s3912_s23, 3 }
  0x3f   : > { %s5761_s10 = smov (%p36_p3, %s5759_s10), 0  ;;  %p5479_p5 = scmp.eq.s32.totalorder %s3912_s23, 0 }
  0x40   : > { %p4012_p13 = por %p5476_p11, %p48_p10  ;;  %5478 = sst [smem:[#allocation18_spill]] %s5761_s10 }
  0x41   : > { %p4021_p0 = por %p5479_p5, %p54_p6  ;;  %p4025_p8 = por %p130_p4, %p48_p10 }
  0x42   : > { %s38_s4 = ssub.s32 %s3826_s21, %s5761_s10  ;;  %p136_p1 = scmp.eq.s32.totalorder %s2834_s8, 3 }
  0x43   : > { %s5480_s25 = scalar_select %p4021_p0, 1, 0 }
  0x44   : > { %s5481_s11 = scalar_select %p4025_p8, 1, 0 }
  0x45   : > { %p39_p2 = scmp.eq.s32.totalorder %s38_s4, 0  ;;  %s156_s7 = sand.u32 1, %s3810_s17  }
  0x46   : > { %p4032_p11 = por %p136_p1, %p54_p6  ;;  %s2837_s24 = sshll.u32 %s3826_s21, 4 }
  0x47   : > { %s4037_s1 = scalar_select %p39_p2, %s3810_s17, %s41_s30  }
  0x48   : > { %s5482_s6 = scalar_select %p4032_p11, 1, 0 }
  0x49   : > { %5483 = sst [smem:[#allocation19_spill]] %s4037_s1  ;;  %s4043_s15 = scalar_lea.hbm %s5443_s0, %s2837_s24 }
  0x4a   : > { %s159_s3 = scalar_lea.vmem [#allocation2], %s156_s7  ;;  %p5484_p10 = scmp.lt.s32.totalorder %s3830_s22, 4 }
  0x4b   : > { %s166_s10 = sshll.u32 %s159_s3, 4  ;;  %s5486_s30 = sshll.u32 %s3822_s20, 7  ;;  %s4045_s10 = int_to_ptr.vmem [resolvable:$true] %s166_s10 }
  0x4c   : > { %p4051_p3 = pnand %p5484_p10, %p4012_p13  ;;  %s4060_s14 = scalar_lea.hbm %s5445_s2, %s5486_s30 }
  0x4d   : > { %s196_s24 = scalar_lea.vmem [#allocation7], %s3945_s5  ;;  %s157_s3 = scalar_lea.sflag [#allocation3], %s156_s7 }
  0x4e   : > { %s204_s29 = sshll.u32 %s196_s24, 4  ;;  %s3644_s9 = scalar_lea.hbm %s4043_s15, 16  ;;  %s4063_s29 = int_to_ptr.vmem [resolvable:$true] %s204_s29 }
  0x4f   : > { %p3645_p6 = scmp.ne.s32.totalorder %s4043_s15, %s3644_s9  ;;  %p3646_p13 = pneg %p4051_p3 }
  0x50   : > { %s3649_s21 = scalar_lea.hbm %s5443_s0, 32  ;;  %p3650_p1 = scmp.lt.u32.totalorder %s4043_s15, %s5443_s0 }
  0x51   : > { %p3647_p4 = pnand %p3646_p13, %p3645_p6  ;;  %p3651_p2 = scmp.lt.u32.totalorder %s3649_s21, %s3644_s9 }
  0x52   : > { %p3653_p12 = scmp.lt.u32.totalorder %s3644_s9, %s4043_s15 }
  0x53   : > { %p3648_p5 = pneg %p3647_p4  ;;  %p3652_p10 = por %p3651_p2, %p3650_p1 }
  0x55   : > { %p3654_p11 = por %p3653_p12, %p3652_p10 }
  0x57   : > { %p3655_p8 = pnand %p3654_p11, %p3648_p5 }
  0x59   : > { %3658 = shalt.err (!%p3655_p8)
}
  0x5a   : > { %s3659_s5 = scalar_lea.vmem %s4045_s10, 16  ;;  %s3833_s1 = smov [#allocation2]  }
  0x5b   : > { %p3660_p6 = scmp.ne.s32.totalorder %s4045_s10, %s3659_s5  ;;  %s3664_s20 = sshll.u32 %s3833_s1, 4  ;;  %s3665_s20 = int_to_ptr.vmem [resolvable:$false] %s3664_s20 }
  0x5c   : > { %s3666_s7 = scalar_lea.vmem %s3665_s20, 32  ;;  %p3667_p7 = scmp.lt.s32.totalorder %s4045_s10, %s3665_s20 }
  0x5d   : > { %p3662_p4 = pnand %p3660_p6, %p3646_p13  ;;  %p3668_p1 = scmp.lt.s32.totalorder %s3666_s7, %s3659_s5 }
  0x5f   : > { %p3663_p0 = pneg %p3662_p4  ;;  %p3669_p2 = por %p3668_p1, %p3667_p7 }
  0x61   : > { %p3670_p12 = pnand %p3669_p2, %p3663_p0 }
  0x63   : > { %3673 = shalt.err (!%p3670_p12)
}
  0x64   : > { %2995 = dma.hbm_to_vmem [thread:$0]  (!%p4051_p3), %s4043_s15, 16, %s4045_s10, %s157_s3  }
  0x65   : > { %s3674_s24 = scalar_lea.hbm %s4060_s14, 128  ;;  %p5487_p11 = pneg %p3960_p9 }
  0x66   : > { %p3675_p8 = scmp.ne.s32.totalorder %s4060_s14, %s3674_s24  ;;  %s3679_s4 = scalar_lea.hbm %s5445_s2, 256 }
  0x67   : > { %p3680_p7 = scmp.lt.u32.totalorder %s4060_s14, %s5445_s2  ;;  %p3681_p0 = scmp.lt.u32.totalorder %s3679_s4, %s3674_s24 }
  0x68   : > { %p3677_p13 = pnand %p3675_p8, %p5487_p11  ;;  %p3683_p6 = scmp.lt.u32.totalorder %s3674_s24, %s4060_s14 }
  0x69   : > { %p3682_p10 = por %p3681_p0, %p3680_p7 }
  0x6a   : > { %p3678_p5 = pneg %p3677_p13 }
  0x6b   : > { %p3684_p4 = por %p3683_p6, %p3682_p10 }
  0x6d   : > { %p3685_p1 = pnand %p3684_p4, %p3678_p5 }
  0x6f   : > { %3688 = shalt.err (!%p3685_p1)
}
  0x70   : > { %s3689_s15 = scalar_lea.vmem %s4063_s29, 128  ;;  %p5488_p2 = pmov %p5487_p11 }
  0x71   : > { %p3690_p3 = scmp.ne.s32.totalorder %s4063_s29, %s3689_s15  ;;  %s3834_s10 = smov [#allocation7]  }
  0x72   : > { %s3694_s3 = sshll.u32 %s3834_s10, 4  ;;  %s3695_s3 = int_to_ptr.vmem [resolvable:$false] %s3694_s3 }
  0x73   : > { %p3692_p12 = pnand %p3690_p3, %p5488_p2  ;;  %s3696_s5 = scalar_lea.vmem %s3695_s3, 256 }
  0x74   : > { %p3697_p11 = scmp.lt.s32.totalorder %s4063_s29, %s3695_s3  ;;  %p3698_p13 = scmp.lt.s32.totalorder %s3696_s5, %s3689_s15 }
  0x75   : > { %p3693_p8 = pneg %p3692_p12 }
  0x76   : > { %p3699_p7 = por %p3698_p13, %p3697_p11 }
  0x78   : > { %p3700_p0 = pnand %p3699_p7, %p3693_p8 }
  0x7a   : > { %3703 = shalt.err (!%p3700_p0)
}
  0x7b   : > { %3001 = dma.hbm_to_vmem [thread:$0]  (!%p3960_p9), %s4060_s14, 128, %s4063_s29, %s3965_s26  }
  0x7c   : > { %p5489_p5 = scmp.ne.s32.totalorder %s5475_s27, 0 }
  0x7e   : > { %213 = sbr.rel (%p5489_p5) target bundleno = 819 (0x333), region = 32 }
  0x85   : > { %s4117_s1 = sand.u32 1, %s3806_s16   ;;  %p5490_p10 = scmp.ne.s32.totalorder %s5480_s25, 0 }
  0x86   : > { %s216_s20 = scalar_lea.sflag [#allocation3], %s4117_s1  ;;  %s4121_s7 = scalar_lea.vmem [#allocation2], %s4117_s1 }
  0x87   : > { %3777 = dma.done.wait (%p5490_p10), %s216_s20, 16  }
  0x88   : > { %3779 = vsyncadd (%p5490_p10), %s216_s20, 4294967280  ;;  %s223_s12 = sand.u32 1, %s3912_s23   ;;  %s225_s26 = sand.u32 1, %s3794_s13  }
  0x89   : > { %s4129_s27 = sshll.u32 %s225_s26, 3  ;;  %s224_s14 = scalar_lea.sflag [#allocation6], %s223_s12 }
  0x8a   : > { %s227_s29 = scalar_lea.vmem [#allocation5], %s4129_s27  ;;  %p5491_p9 = scmp.ne.s32.totalorder %s5470_s28, 0 }
  0x8c   : > { %3781 = dma.done.wait (%p5491_p9), %s224_s14, 256  }
  0x8d   : > { %3783 = vsyncadd (%p5491_p9), %s224_s14, 4294967040  ;;  %s2847_s24 = sshll.u32 %s4117_s1, 1  ;;  %s236_s25 = scalar_lea.vmem [#allocation7], %s4129_s27 }
  0x8e   : > { %s4138_s9 = scalar_lea.vmem [#allocation8], %s2847_s24  ;;  %p2848_p6 = scmp.ne.s32.totalorder %s3814_s18, 0 }
  0x8f   : > { %v3835_v0 = vmov (!%p2848_p6), 0.0  }
  0x90   : > { %273 = sbr.rel (%p2848_p6) target bundleno = 151 (0x97), region = 48  ;;  %274 = vst [vmem:[%s4138_s9] sm:$0x3] (!%p2848_p6), %v3835_v0 }
  0x97 PF: > { %v282_v1 = vlaneseq  ;;  %v3836_v2 = vmov 1983009808   ;;  %v275_v6 = vld [vmem:[%s227_s29] sm:$0xff]  ;;  %vm2693_vm0 = vcmask 1041409   ;;  %s2979_s18 = sshll.u32 %s3818_s19, 5  ;;  %s2712_s23 = sshll.u32 %s4138_s9, 4  ;;  %s5381_s23 = int_to_ptr.vmem [resolvable:$true] %s2712_s23 }
  0x98   : > { %v280_v3 = vunpack.c.l.s4 %v3836_v2  ;;  %v278_v13 = vcombine.high %v275_v6, %v275_v6  ;;  %s5740_s4 = sld [smem:[#allocation105_spill]]  ;;  %s2699_s8 = scalar_lea.sflag [#allocation4], %s4117_s1 }
  0x99   : > { %v4142_v4 = vshrl.u32 %v282_v1, 7  ;;  %s3704_s15 = scalar_lea.vmem %s5381_s23, 32  ;;  %p5741_p1 = scmp.ne.s32.totalorder %s5481_s11, 0 }
  0x9a   : > { %v281_v5 = vunpack.c.0.s8 %v280_v3  ;;  %p3705_p4 = scmp.ne.s32.totalorder %s5381_s23, %s3704_s15  ;;  %s3837_s19 = smov [#allocation8]  }
  0x9b   : > { %v4148_v8 = vsub.s32 0, %v4142_v4  ;;  %v4181_v22 = vsub.s32 1, %v4142_v4  ;;  %s3708_s10 = sshll.u32 %s3837_s19, 4  ;;  %s3709_s10 = int_to_ptr.vmem [resolvable:$false] %s3708_s10 }
  0x9c   : > { %v4145_v7 = vsub.s32 %v281_v5, %v4142_v4  ;;  %p3706_p3 = pnand %p3705_p4, %p5741_p1  ;;  %s3710_s3 = scalar_lea.vmem %s3709_s10, 64 }
  0x9d   : > { %p3711_p12 = scmp.lt.s32.totalorder %s5381_s23, %s3709_s10  ;;  %p3712_p8 = scmp.lt.s32.totalorder %s3710_s3, %s3704_s15 }
  0x9e   : > { %v4151_v9 = vrot.slane %v275_v6, %v4145_v7  ;;  %v4162_v14 = vrot.slane %v278_v13, %v4145_v7  ;;  %s5379_s30 = scalar_lea.hbm %s5740_s4, %s2979_s18  ;;  %p3707_p2 = pneg %p3706_p3 }
  0x9f   : > { %p3713_p11 = por %p3712_p8, %p3711_p12 }
  0xa0   : > { %v302_v10 = vrot.slane %v4151_v9, %v4148_v8  ;;  %v4157_v11 = vcombine.high %v4151_v9, %v4151_v9  ;;  %v436_v15 = vrot.slane %v4162_v14, %v4148_v8  ;;  %v4168_v16 = vcombine.high %v4162_v14, %v4162_v14 }
  0xa1   : > { %v570_v25 = vrot.slane %v4151_v9, %v4181_v22  ;;  %v704_v59 = vrot.slane %v4162_v14, %v4181_v22  ;;  %p3714_p13 = pnand %p3713_p11, %p3707_p2 }
  0xa2   : > { %312 = vbcast.lane.b32.xlu1 %v302_v10, 272  ;;  %304 = vbcast.lane.b32.xlu0 %v302_v10, 256  ;;  %v369_v12 = vrot.slane %v4157_v11, %v4148_v8  ;;  %v503_v17 = vrot.slane %v4168_v16, %v4148_v8  ;;  %v637_v42 = vrot.slane %v4157_v11, %v4181_v22 }
  0xa3   : > { %v771_v14 = vrot.slane %v4168_v16, %v4181_v22 }
  0xa6   : > { %316 = vbcast.lane.b32.xlu1 %v302_v10, 280  ;;  %308 = vbcast.lane.b32.xlu0 %v302_v10, 264 }
  0xaa   : > { %324 = vbcast.lane.b32.xlu1 %v302_v10, 296  ;;  %320 = vbcast.lane.b32.xlu0 %v302_v10, 288 }
  0xae   : > { %332 = vbcast.lane.b32.xlu1 %v302_v10, 312  ;;  %328 = vbcast.lane.b32.xlu0 %v302_v10, 304 }
  0xb2   : > { %340 = vbcast.lane.b32.xlu1 %v302_v10, 328  ;;  %336 = vbcast.lane.b32.xlu0 %v302_v10, 320 }
  0xb6   : > { %348 = vbcast.lane.b32.xlu1 %v302_v10, 344  ;;  %344 = vbcast.lane.b32.xlu0 %v302_v10, 336 }
  0xba   : > { %356 = vbcast.lane.b32.xlu1 %v302_v10, 360  ;;  %352 = vbcast.lane.b32.xlu0 %v302_v10, 352 }
  0xbe   : > { %364 = vbcast.lane.b32.xlu1 %v302_v10, 376  ;;  %360 = vbcast.lane.b32.xlu0 %v302_v10, 368 }
  0xc2   : > { %375 = vbcast.lane.b32.xlu1 %v369_v12, 264  ;;  %371 = vbcast.lane.b32.xlu0 %v369_v12, 256 }
  0xc6   : > { %383 = vbcast.lane.b32.xlu1 %v369_v12, 280  ;;  %379 = vbcast.lane.b32.xlu0 %v369_v12, 272 }
  0xca   : > { %391 = vbcast.lane.b32.xlu1 %v369_v12, 296  ;;  %387 = vbcast.lane.b32.xlu0 %v369_v12, 288 }
  0xce   : > { %399 = vbcast.lane.b32.xlu1 %v369_v12, 312  ;;  %395 = vbcast.lane.b32.xlu0 %v369_v12, 304 }
  0xd2   : > { %407 = vbcast.lane.b32.xlu1 %v369_v12, 328  ;;  %403 = vbcast.lane.b32.xlu0 %v369_v12, 320 }
  0xd6   : > { %415 = vbcast.lane.b32.xlu1 %v369_v12, 344  ;;  %411 = vbcast.lane.b32.xlu0 %v369_v12, 336 }
  0xda   : > { %423 = vbcast.lane.b32.xlu1 %v369_v12, 360  ;;  %419 = vbcast.lane.b32.xlu0 %v369_v12, 352 }
  0xde   : > { %431 = vbcast.lane.b32.xlu1 %v369_v12, 376  ;;  %427 = vbcast.lane.b32.xlu0 %v369_v12, 368 }
  0xe2   : > { %442 = vbcast.lane.b32.xlu1 %v436_v15, 264  ;;  %438 = vbcast.lane.b32.xlu0 %v436_v15, 256 }
  0xe6   : > { %450 = vbcast.lane.b32.xlu1 %v436_v15, 280  ;;  %446 = vbcast.lane.b32.xlu0 %v436_v15, 272 }
  0xea   : > { %458 = vbcast.lane.b32.xlu1 %v436_v15, 296  ;;  %454 = vbcast.lane.b32.xlu0 %v436_v15, 288 }
  0xee   : > { %466 = vbcast.lane.b32.xlu1 %v436_v15, 312  ;;  %462 = vbcast.lane.b32.xlu0 %v436_v15, 304 }
  0xf2   : > { %474 = vbcast.lane.b32.xlu1 %v436_v15, 328  ;;  %470 = vbcast.lane.b32.xlu0 %v436_v15, 320 }
  0xf6   : > { %482 = vbcast.lane.b32.xlu1 %v436_v15, 344  ;;  %478 = vbcast.lane.b32.xlu0 %v436_v15, 336 }
  0xfa   : > { %490 = vbcast.lane.b32.xlu1 %v436_v15, 360  ;;  %486 = vbcast.lane.b32.xlu0 %v436_v15, 352 }
  0xfe   : > { %498 = vbcast.lane.b32.xlu1 %v436_v15, 376  ;;  %494 = vbcast.lane.b32.xlu0 %v436_v15, 368 }
 0x102   : > { %509 = vbcast.lane.b32.xlu1 %v503_v17, 264  ;;  %505 = vbcast.lane.b32.xlu0 %v503_v17, 256 }
 0x106   : > { %517 = vbcast.lane.b32.xlu1 %v503_v17, 280  ;;  %513 = vbcast.lane.b32.xlu0 %v503_v17, 272 }
 0x10a   : > { %525 = vbcast.lane.b32.xlu1 %v503_v17, 296  ;;  %521 = vbcast.lane.b32.xlu0 %v503_v17, 288 }
 0x10e   : > { %533 = vbcast.lane.b32.xlu1 %v503_v17, 312  ;;  %529 = vbcast.lane.b32.xlu0 %v503_v17, 304 }
 0x112   : > { %541 = vbcast.lane.b32.xlu1 %v503_v17, 328  ;;  %537 = vbcast.lane.b32.xlu0 %v503_v17, 320 }
 0x114   : > { %v4172_v18 = vpop.permute.xlu1 %312  ;;  %v4174_v19 = vpop.permute.xlu0 %304 }
 0x116   : > { %549 = vbcast.lane.b32.xlu1 %v503_v17, 344  ;;  %545 = vbcast.lane.b32.xlu0 %v503_v17, 336 }
 0x118   : > { %v4176_v20 = vpop.permute.xlu1 %316  ;;  %v4178_v21 = vpop.permute.xlu0 %308 }
 0x11a   : > { %557 = vbcast.lane.b32.xlu1 %v503_v17, 360  ;;  %553 = vbcast.lane.b32.xlu0 %v503_v17, 352 }
 0x11c   : > { %v4183_v23 = vpop.permute.xlu1 %324  ;;  %v4185_v24 = vpop.permute.xlu0 %320 }
 0x11e   : > { %565 = vbcast.lane.b32.xlu1 %v503_v17, 376  ;;  %561 = vbcast.lane.b32.xlu0 %v503_v17, 368 }
 0x120   : > { %v4189_v26 = vpop.permute.xlu1 %332  ;;  %v4191_v27 = vpop.permute.xlu0 %328 }
 0x122   : > { %576 = vbcast.lane.b32.xlu1 %v570_v25, 264  ;;  %572 = vbcast.lane.b32.xlu0 %v570_v25, 256 }
 0x124   : > { %v4193_v28 = vpop.permute.xlu1 %340  ;;  %v4195_v29 = vpop.permute.xlu0 %336 }
 0x126   : > { %584 = vbcast.lane.b32.xlu1 %v570_v25, 280  ;;  %580 = vbcast.lane.b32.xlu0 %v570_v25, 272 }
 0x128   : > { %v4197_v30 = vpop.permute.xlu1 %348  ;;  %v4199_v31 = vpop.permute.xlu0 %344 }
 0x12a   : > { %592 = vbcast.lane.b32.xlu1 %v570_v25, 296  ;;  %588 = vbcast.lane.b32.xlu0 %v570_v25, 288 }
 0x12c   : > { %v4201_v32 = vpop.permute.xlu1 %356  ;;  %v4203_v33 = vpop.permute.xlu0 %352 }
 0x12e   : > { %600 = vbcast.lane.b32.xlu1 %v570_v25, 312  ;;  %596 = vbcast.lane.b32.xlu0 %v570_v25, 304 }
 0x130   : > { %v4205_v34 = vpop.permute.xlu1 %364  ;;  %v4207_v35 = vpop.permute.xlu0 %360 }
 0x132   : > { %608 = vbcast.lane.b32.xlu1 %v570_v25, 328  ;;  %604 = vbcast.lane.b32.xlu0 %v570_v25, 320 }
 0x134   : > { %v4209_v36 = vpop.permute.xlu1 %375  ;;  %v4211_v37 = vpop.permute.xlu0 %371 }
 0x136   : > { %616 = vbcast.lane.b32.xlu1 %v570_v25, 344  ;;  %612 = vbcast.lane.b32.xlu0 %v570_v25, 336 }
 0x138   : > { %v4213_v38 = vpop.permute.xlu1 %383  ;;  %v4215_v39 = vpop.permute.xlu0 %379 }
 0x13a   : > { %624 = vbcast.lane.b32.xlu1 %v570_v25, 360  ;;  %620 = vbcast.lane.b32.xlu0 %v570_v25, 352 }
 0x13c   : > { %v4217_v40 = vpop.permute.xlu1 %391  ;;  %v4219_v41 = vpop.permute.xlu0 %387 }
 0x13e   : > { %632 = vbcast.lane.b32.xlu1 %v570_v25, 376  ;;  %628 = vbcast.lane.b32.xlu0 %v570_v25, 368 }
 0x140   : > { %v4223_v43 = vpop.permute.xlu1 %399  ;;  %v4225_v44 = vpop.permute.xlu0 %395 }
 0x142   : > { %643 = vbcast.lane.b32.xlu1 %v637_v42, 264  ;;  %639 = vbcast.lane.b32.xlu0 %v637_v42, 256 }
 0x144   : > { %v4227_v45 = vpop.permute.xlu1 %407  ;;  %v4229_v46 = vpop.permute.xlu0 %403 }
 0x146   : > { %651 = vbcast.lane.b32.xlu1 %v637_v42, 280  ;;  %647 = vbcast.lane.b32.xlu0 %v637_v42, 272 }
 0x148   : > { %v4231_v47 = vpop.permute.xlu1 %415  ;;  %v4233_v48 = vpop.permute.xlu0 %411 }
 0x14a   : > { %659 = vbcast.lane.b32.xlu1 %v637_v42, 296  ;;  %655 = vbcast.lane.b32.xlu0 %v637_v42, 288 }
 0x14c   : > { %v4235_v49 = vpop.permute.xlu1 %423  ;;  %v4237_v50 = vpop.permute.xlu0 %419 }
 0x14e   : > { %667 = vbcast.lane.b32.xlu1 %v637_v42, 312  ;;  %663 = vbcast.lane.b32.xlu0 %v637_v42, 304 }
 0x150   : > { %v4239_v51 = vpop.permute.xlu1 %431  ;;  %v4241_v52 = vpop.permute.xlu0 %427 }
 0x152   : > { %675 = vbcast.lane.b32.xlu1 %v637_v42, 328  ;;  %671 = vbcast.lane.b32.xlu0 %v637_v42, 320 }
 0x154   : > { %v4243_v53 = vpop.permute.xlu1 %442  ;;  %v4245_v54 = vpop.permute.xlu0 %438 }
 0x156   : > { %683 = vbcast.lane.b32.xlu1 %v637_v42, 344  ;;  %679 = vbcast.lane.b32.xlu0 %v637_v42, 336 }
 0x158   : > { %v4247_v55 = vpop.permute.xlu1 %450  ;;  %v4249_v56 = vpop.permute.xlu0 %446 }
 0x15a   : > { %691 = vbcast.lane.b32.xlu1 %v637_v42, 360  ;;  %687 = vbcast.lane.b32.xlu0 %v637_v42, 352 }
 0x15c   : > { %v4251_v57 = vpop.permute.xlu1 %458  ;;  %v4253_v58 = vpop.permute.xlu0 %454 }
 0x15e   : > { %699 = vbcast.lane.b32.xlu1 %v637_v42, 376  ;;  %695 = vbcast.lane.b32.xlu0 %v637_v42, 368 }
 0x160   : > { %v4257_v60 = vpop.permute.xlu1 %466  ;;  %v4259_v61 = vpop.permute.xlu0 %462 }
 0x162   : > { %710 = vbcast.lane.b32.xlu1 %v704_v59, 264  ;;  %706 = vbcast.lane.b32.xlu0 %v704_v59, 256 }
 0x164   : > { %v4261_v62 = vpop.permute.xlu1 %474  ;;  %v4263_v63 = vpop.permute.xlu0 %470 }
 0x166   : > { %718 = vbcast.lane.b32.xlu1 %v704_v59, 280  ;;  %714 = vbcast.lane.b32.xlu0 %v704_v59, 272 }
 0x168   : > { %v4265_v0 = vpop.permute.xlu1 %482  ;;  %v4267_v1 = vpop.permute.xlu0 %478 }
 0x16a   : > { %726 = vbcast.lane.b32.xlu1 %v704_v59, 296  ;;  %722 = vbcast.lane.b32.xlu0 %v704_v59, 288 }
 0x16c   : > { %v4269_v2 = vpop.permute.xlu1 %490  ;;  %v4271_v3 = vpop.permute.xlu0 %486 }
 0x16d   : > { %5492 = vst [vmem:[#allocation20_spill] sm:$0xff] %v4269_v2  ;;  %5493 = vst [vmem:[#allocation21_spill] sm:$0xff] %v4271_v3 }
 0x16e   : > { %734 = vbcast.lane.b32.xlu1 %v704_v59, 312  ;;  %730 = vbcast.lane.b32.xlu0 %v704_v59, 304 }
 0x170   : > { %v4273_v4 = vpop.permute.xlu1 %498  ;;  %v4275_v5 = vpop.permute.xlu0 %494 }
 0x171   : > { %5494 = vst [vmem:[#allocation22_spill] sm:$0xff] %v4273_v4  ;;  %5495 = vst [vmem:[#allocation23_spill] sm:$0xff] %v4275_v5 }
 0x172   : > { %742 = vbcast.lane.b32.xlu1 %v704_v59, 328  ;;  %738 = vbcast.lane.b32.xlu0 %v704_v59, 320 }
 0x174   : > { %v4277_v6 = vpop.permute.xlu1 %509  ;;  %v4279_v9 = vpop.permute.xlu0 %505 }
 0x175   : > { %5496 = vst [vmem:[#allocation24_spill] sm:$0xff] %v4277_v6  ;;  %5497 = vst [vmem:[#allocation25_spill] sm:$0xff] %v4279_v9 }
 0x176   : > { %750 = vbcast.lane.b32.xlu1 %v704_v59, 344  ;;  %746 = vbcast.lane.b32.xlu0 %v704_v59, 336 }
 0x178   : > { %v4281_v10 = vpop.permute.xlu1 %517  ;;  %v4283_v11 = vpop.permute.xlu0 %513 }
 0x179   : > { %5498 = vst [vmem:[#allocation26_spill] sm:$0xff] %v4281_v10  ;;  %5499 = vst [vmem:[#allocation27_spill] sm:$0xff] %v4283_v11 }
 0x17a   : > { %758 = vbcast.lane.b32.xlu1 %v704_v59, 360  ;;  %754 = vbcast.lane.b32.xlu0 %v704_v59, 352 }
 0x17c   : > { %v4285_v12 = vpop.permute.xlu1 %525  ;;  %v4287_v13 = vpop.permute.xlu0 %521 }
 0x17d   : > { %5500 = vst [vmem:[#allocation28_spill] sm:$0xff] %v4285_v12  ;;  %5501 = vst [vmem:[#allocation29_spill] sm:$0xff] %v4287_v13 }
 0x17e   : > { %766 = vbcast.lane.b32.xlu1 %v704_v59, 376  ;;  %762 = vbcast.lane.b32.xlu0 %v704_v59, 368 }
 0x180   : > { %v4291_v15 = vpop.permute.xlu1 %533  ;;  %v4293_v17 = vpop.permute.xlu0 %529 }
 0x181   : > { %5502 = vst [vmem:[#allocation30_spill] sm:$0xff] %v4291_v15  ;;  %5503 = vst [vmem:[#allocation31_spill] sm:$0xff] %v4293_v17 }
 0x182   : > { %777 = vbcast.lane.b32.xlu1 %v771_v14, 264  ;;  %773 = vbcast.lane.b32.xlu0 %v771_v14, 256 }
 0x184   : > { %v4295_v25 = vpop.permute.xlu1 %541  ;;  %v4297_v42 = vpop.permute.xlu0 %537 }
 0x185   : > { %5504 = vst [vmem:[#allocation32_spill] sm:$0xff] %v4295_v25  ;;  %5505 = vst [vmem:[#allocation33_spill] sm:$0xff] %v4297_v42 }
 0x186   : > { %785 = vbcast.lane.b32.xlu1 %v771_v14, 280  ;;  %781 = vbcast.lane.b32.xlu0 %v771_v14, 272 }
 0x188   : > { %v4299_v12 = vpop.permute.xlu1 %549  ;;  %v4301_v13 = vpop.permute.xlu0 %545 }
 0x189   : > { %5506 = vst [vmem:[#allocation34_spill] sm:$0xff] %v4299_v12  ;;  %5507 = vst [vmem:[#allocation35_spill] sm:$0xff] %v4301_v13  ;;  %v4317_v13 = vld [vmem:[%s236_s25] sm:$0xff] }
 0x18a   : > { %793 = vbcast.lane.b32.xlu1 %v771_v14, 296  ;;  %789 = vbcast.lane.b32.xlu0 %v771_v14, 288 }
 0x18c   : > { %v4303_v16 = vpop.permute.xlu1 %557  ;;  %v4305_v59 = vpop.permute.xlu0 %553 }
 0x18d   : > { %5508 = vst [vmem:[#allocation36_spill] sm:$0xff] %v4303_v16  ;;  %5509 = vst [vmem:[#allocation37_spill] sm:$0xff] %v4305_v59 }
 0x18e   : > { %801 = vbcast.lane.b32.xlu1 %v771_v14, 312  ;;  %797 = vbcast.lane.b32.xlu0 %v771_v14, 304 }
 0x190   : > { %v4307_v17 = vpop.permute.xlu1 %565  ;;  %v4309_v25 = vpop.permute.xlu0 %561 }
 0x191   : > { %5510 = vst [vmem:[#allocation38_spill] sm:$0xff] %v4307_v17  ;;  %5511 = vst [vmem:[#allocation39_spill] sm:$0xff] %v4309_v25  ;;  %v4325_v17 = vrot.slane %v4317_v13, %v4145_v7 }
 0x192   : > { %809 = vbcast.lane.b32.xlu1 %v771_v14, 328  ;;  %805 = vbcast.lane.b32.xlu0 %v771_v14, 320 }
 0x193   : > { %v1891_v11 = vrot.slane %v4325_v17, %v4148_v8 }
 0x194   : > { %v4311_v42 = vpop.permute.xlu1 %576  ;;  %v4313_v12 = vpop.permute.xlu0 %572 }
 0x196   : > { %817 = vbcast.lane.b32.xlu1 %v771_v14, 344  ;;  %813 = vbcast.lane.b32.xlu0 %v771_v14, 336 }
 0x198   : > { %v4319_v16 = vpop.permute.xlu1 %584  ;;  %v4321_v59 = vpop.permute.xlu0 %580 }
 0x199   : > { %5512 = vst [vmem:[#allocation40_spill] sm:$0xff] %v4321_v59 }
 0x19a   : > { %825 = vbcast.lane.b32.xlu1 %v771_v14, 360  ;;  %821 = vbcast.lane.b32.xlu0 %v771_v14, 352 }
 0x19c   : > { %v4327_v25 = vpop.permute.xlu1 %592  ;;  %v4329_v15 = vpop.permute.xlu0 %588 }
 0x19d   : > { %5513 = vst [vmem:[#allocation41_spill] sm:$0xff] %v4327_v25  ;;  %5514 = vst [vmem:[#allocation42_spill] sm:$0xff] %v4329_v15 }
 0x19e   : > { %833 = vbcast.lane.b32.xlu1 %v771_v14, 376  ;;  %829 = vbcast.lane.b32.xlu0 %v771_v14, 368 }
 0x1a0   : > { %v4333_v10 = vpop.permute.xlu1 %600  ;;  %v4335_v9 = vpop.permute.xlu0 %596 }
 0x1a1   : > { %5515 = vst [vmem:[#allocation43_spill] sm:$0xff] %v4333_v10  ;;  %5516 = vst [vmem:[#allocation44_spill] sm:$0xff] %v4335_v9 }
 0x1a2   : > { %1897 = vbcast.lane.b32.xlu1 %v1891_v11, 264  ;;  %1893 = vbcast.lane.b32.xlu0 %v1891_v11, 256 }
 0x1a4   : > { %v4337_v6 = vpop.permute.xlu1 %608  ;;  %v4339_v5 = vpop.permute.xlu0 %604 }
 0x1a5   : > { %5517 = vst [vmem:[#allocation45_spill] sm:$0xff] %v4337_v6  ;;  %5518 = vst [vmem:[#allocation46_spill] sm:$0xff] %v4339_v5 }
 0x1a6   : > { %1905 = vbcast.lane.b32.xlu1 %v1891_v11, 280  ;;  %1901 = vbcast.lane.b32.xlu0 %v1891_v11, 272 }
 0x1a8   : > { %v4341_v4 = vpop.permute.xlu1 %616  ;;  %v4343_v3 = vpop.permute.xlu0 %612 }
 0x1a9   : > { %5519 = vst [vmem:[#allocation47_spill] sm:$0xff] %v4341_v4  ;;  %5520 = vst [vmem:[#allocation48_spill] sm:$0xff] %v4343_v3 }
 0x1aa   : > { %1913 = vbcast.lane.b32.xlu1 %v1891_v11, 296  ;;  %1909 = vbcast.lane.b32.xlu0 %v1891_v11, 288 }
 0x1ac   : > { %v4345_v14 = vpop.permute.xlu1 %624  ;;  %v4347_v2 = vpop.permute.xlu0 %620 }
 0x1ad   : > { %5521 = vst [vmem:[#allocation49_spill] sm:$0xff] %v4345_v14  ;;  %5522 = vst [vmem:[#allocation50_spill] sm:$0xff] %v4347_v2  ;;  %v4363_v2 = vcombine.high %v4325_v17, %v4325_v17 }
 0x1ae   : > { %1921 = vbcast.lane.b32.xlu1 %v1891_v11, 312  ;;  %1917 = vbcast.lane.b32.xlu0 %v1891_v11, 304 }
 0x1b0   : > { %v4349_v9 = vpop.permute.xlu1 %632  ;;  %v4351_v6 = vpop.permute.xlu0 %628 }
 0x1b1   : > { %5523 = vst [vmem:[#allocation51_spill] sm:$0xff] %v4349_v9  ;;  %5524 = vst [vmem:[#allocation52_spill] sm:$0xff] %v4351_v6  ;;  %v4366_v9 = vld [vmem:[%s4121_s7] ss:$0 sm:$0xff] }
 0x1b2   : > { %1929 = vbcast.lane.b32.xlu1 %v1891_v11, 328  ;;  %1925 = vbcast.lane.b32.xlu0 %v1891_v11, 320  ;;  %v844_v25 = vsub.f32 %v4176_v20, %v4366_v9 }
 0x1b4   : > { %v4353_v5 = vpop.permute.xlu1 %643  ;;  %v4355_v4 = vpop.permute.xlu0 %639 }
 0x1b5   : > { %5525 = vst [vmem:[#allocation53_spill] sm:$0xff] %v4353_v5  ;;  %5526 = vst [vmem:[#allocation54_spill] sm:$0xff] %v4355_v4  ;;  %v4374_v4 = vrot.slane %v4363_v2, %v4148_v8 }
 0x1b6   : > { %1937 = vbcast.lane.b32.xlu1 %v1891_v11, 344  ;;  %1933 = vbcast.lane.b32.xlu0 %v1891_v11, 336 }
 0x1b8   : > { %v4357_v3 = vpop.permute.xlu1 %651  ;;  %v4359_v14 = vpop.permute.xlu0 %647 }
 0x1b9   : > { %5527 = vst [vmem:[#allocation55_spill] sm:$0xff] %v4357_v3  ;;  %5528 = vst [vmem:[#allocation56_spill] sm:$0xff] %v4359_v14  ;;  %v843_v14 = vsub.f32 %v4172_v18, %v4366_v9 }
 0x1ba   : > { %1945 = vbcast.lane.b32.xlu1 %v1891_v11, 360  ;;  %1941 = vbcast.lane.b32.xlu0 %v1891_v11, 352 }
 0x1bc   : > { %v4368_v6 = vpop.permute.xlu1 %659  ;;  %v4370_v10 = vpop.permute.xlu0 %655 }
 0x1bd   : > { %5529 = vst [vmem:[#allocation57_spill] sm:$0xff] %v4368_v6  ;;  %5530 = vst [vmem:[#allocation58_spill] sm:$0xff] %v4370_v10  ;;  %v2852_v6 = vmul.f32 -100000.0, %v843_v14  ;;  %v841_v10 = vsub.f32 %v4174_v19, %v4366_v9  ;;  %v2853_v14 = vmul.f32 -100000.0, %v844_v25  ;;  %v842_v19 = vsub.f32 %v4178_v21, %v4366_v9 }
 0x1be   : > { %1953 = vbcast.lane.b32.xlu1 %v1891_v11, 376  ;;  %1949 = vbcast.lane.b32.xlu0 %v1891_v11, 368  ;;  %v848_v21 = vsub.f32 %v4189_v26, %v4366_v9  ;;  %v850_v26 = vsub.f32 %v4193_v28, %v4366_v9 }
 0x1bf   : > { %v1229_v18 = vmul.f32 1.442695, %v2852_v6  ;;  %v845_v6 = vsub.f32 %v4185_v24, %v4366_v9  ;;  %v1231_v25 = vmul.f32 1.442695, %v2853_v14  ;;  %v847_v14 = vsub.f32 %v4191_v27, %v4366_v9 }
 0x1c0   : > { %v4378_v3 = vpop.permute.xlu1 %667  ;;  %v4380_v5 = vpop.permute.xlu0 %663 }
 0x1c1   : > { %5531 = vst [vmem:[#allocation59_spill] sm:$0xff] %v4378_v3  ;;  %5532 = vst [vmem:[#allocation60_spill] sm:$0xff] %v4380_v5  ;;  %v2850_v5 = vmul.f32 -100000.0, %v841_v10  ;;  %3100 = vpow2.f32 %v1229_v18  ;;  %v2856_v28 = vmul.f32 -100000.0, %v847_v14 }
 0x1c2   : > { %1964 = vbcast.lane.b32.xlu1 %v4374_v4, 264  ;;  %1960 = vbcast.lane.b32.xlu0 %v4374_v4, 256 }
 0x1c3   : > { %v1225_v20 = vmul.f32 1.442695, %v2850_v5 }
 0x1c4   : > { %v4386_v11 = vpop.permute.xlu1 %675  ;;  %v4388_v15 = vpop.permute.xlu0 %671 }
 0x1c5   : > { %5533 = vst [vmem:[#allocation61_spill] sm:$0xff] %v4386_v11  ;;  %5534 = vst [vmem:[#allocation62_spill] sm:$0xff] %v4388_v15  ;;  %v846_v11 = vsub.f32 %v4183_v23, %v4366_v9  ;;  %3102 = vpow2.f32 %v1225_v20  ;;  %v2854_v23 = vmul.f32 -100000.0, %v845_v6  ;;  %v849_v20 = vsub.f32 %v4195_v29, %v4366_v9 }
 0x1c6   : > { %1972 = vbcast.lane.b32.xlu1 %v4374_v4, 280  ;;  %1968 = vbcast.lane.b32.xlu0 %v4374_v4, 272  ;;  %3104 = vpow2.f32 %v1231_v25  ;;  %v851_v29 = vsub.f32 %v4199_v31, %v4366_v9 }
 0x1c7   : > { %v2855_v15 = vmul.f32 -100000.0, %v846_v11  ;;  %v4426_v11 = vrot.slane %v4325_v17, %v4181_v22  ;;  %v2858_v17 = vmul.f32 -100000.0, %v849_v20 }
 0x1c8   : > { %v4394_v3 = vpop.permute.xlu1 %683  ;;  %v4396_v59 = vpop.permute.xlu0 %679 }
 0x1c9   : > { %5535 = vst [vmem:[#allocation63_spill] sm:$0xff] %v4394_v3  ;;  %5536 = vst [vmem:[#allocation64_spill] sm:$0xff] %v4396_v59  ;;  %v2851_v59 = vmul.f32 -100000.0, %v842_v19  ;;  %v1235_v19 = vmul.f32 1.442695, %v2855_v15 }
 0x1ca   : > { %1980 = vbcast.lane.b32.xlu1 %v4374_v4, 296  ;;  %1976 = vbcast.lane.b32.xlu0 %v4374_v4, 288 }
 0x1cb   : > { %v1227_v24 = vmul.f32 1.442695, %v2851_v59  ;;  %v1233_v59 = vmul.f32 1.442695, %v2854_v23  ;;  %v3101_v27 = vpop.eup %3100 }
 0x1cc   : > { %v4406_v10 = vpop.permute.xlu1 %691  ;;  %v4408_v3 = vpop.permute.xlu0 %687  ;;  %v1483_v23 = vadd.f32 1.0, %v3101_v27  ;;  %v2860_v27 = vmul.f32 -100000.0, %v851_v29 }
 0x1cd   : > { %5537 = vst [vmem:[#allocation65_spill] sm:$0xff] %v4406_v10  ;;  %v2857_v10 = vmul.f32 -100000.0, %v848_v21  ;;  %3106 = vpow2.f32 %v1227_v24  ;;  %v852_v21 = vsub.f32 %v4197_v30, %v4366_v9  ;;  %v854_v24 = vsub.f32 %v4201_v32, %v4366_v9 }
 0x1ce   : > { %1988 = vbcast.lane.b32.xlu1 %v4374_v4, 312  ;;  %1984 = vbcast.lane.b32.xlu0 %v4374_v4, 304  ;;  %3108 = vpow2.f32 %v1235_v19  ;;  %v1237_v19 = vmul.f32 1.442695, %v2856_v28  ;;  %v1245_v29 = vmul.f32 1.442695, %v2860_v27 }
 0x1cf   : > { %v1239_v15 = vmul.f32 1.442695, %v2857_v10  ;;  %3110 = vpow2.f32 %v1233_v59  ;;  %v3103_v30 = vpop.eup %3102  ;;  %v1241_v59 = vmul.f32 1.442695, %v2858_v17 }
 0x1d0   : > { %v4414_v5 = vpop.permute.xlu1 %699  ;;  %v4416_v18 = vpop.permute.xlu0 %695  ;;  %v1481_v32 = vadd.f32 1.0, %v3103_v30 }
 0x1d1   : > { %5538 = vst [vmem:[#allocation66_spill] sm:$0xff] %v4414_v5  ;;  %v2859_v5 = vmul.f32 -100000.0, %v850_v26  ;;  %3112 = vpow2.f32 %v1239_v15  ;;  %v2861_v26 = vmul.f32 -100000.0, %v852_v21  ;;  %v3105_v31 = vpop.eup %3104 }
 0x1d2   : > { %1996 = vbcast.lane.b32.xlu1 %v4374_v4, 328  ;;  %1992 = vbcast.lane.b32.xlu0 %v4374_v4, 320  ;;  %3114 = vrcp.f32 %v1483_v23  ;;  %v1484_v21 = vadd.f32 1.0, %v3105_v31  ;;  %v855_v23 = vsub.f32 %v4207_v35, %v4366_v9  ;;  %v857_v31 = vsub.f32 %v4211_v37, %v4366_v9 }
 0x1d3   : > { %v1243_v20 = vmul.f32 1.442695, %v2859_v5  ;;  %3116 = vpow2.f32 %v1237_v19  ;;  %v858_v19 = vsub.f32 %v4209_v36, %v4366_v9 }
 0x1d4   : > { %v4430_v6 = vpop.permute.xlu1 %710  ;;  %v4432_v25 = vpop.permute.xlu0 %706  ;;  %v2864_v36 = vmul.f32 -100000.0, %v855_v23  ;;  %v2866_v37 = vmul.f32 -100000.0, %v857_v31 }
 0x1d5   : > { %5539 = vst [vmem:[#allocation67_spill] sm:$0xff] %v4430_v6  ;;  %5540 = vst [vmem:[#allocation68_spill] sm:$0xff] %v4432_v25  ;;  %v853_v25 = vsub.f32 %v4203_v33, %v4366_v9  ;;  %v1247_v33 = vmul.f32 1.442695, %v2861_v26  ;;  %3118 = vpow2.f32 %v1243_v20 }
 0x1d6   : > { %2161 = vbcast.lane.b32.xlu1 %v4426_v11, 256  ;;  %2000 = vbcast.lane.b32.xlu0 %v4374_v4, 336  ;;  %3120 = vpow2.f32 %v1241_v59  ;;  %v1253_v23 = vmul.f32 1.442695, %v2864_v36  ;;  %v1257_v31 = vmul.f32 1.442695, %v2866_v37  ;;  %v861_v37 = vsub.f32 %v4219_v41, %v4366_v9 }
 0x1d7   : > { %v2862_v5 = vmul.f32 -100000.0, %v853_v25  ;;  %v3107_v17 = vpop.eup %3106  ;;  %3122 = vrcp.f32 %v1481_v32  ;;  %v2867_v32 = vmul.f32 -100000.0, %v858_v19 }
 0x1d8   : > { %v4442_v10 = vpop.permute.xlu1 %718  ;;  %v4444_v14 = vpop.permute.xlu0 %714  ;;  %3124 = vpow2.f32 %v1247_v33  ;;  %v1482_v27 = vadd.f32 1.0, %v3107_v17 }
 0x1d9   : > { %5541 = vst [vmem:[#allocation69_spill] sm:$0xff] %v4442_v10  ;;  %5542 = vst [vmem:[#allocation70_spill] sm:$0xff] %v4444_v14  ;;  %v2863_v10 = vmul.f32 -100000.0, %v854_v24  ;;  %v856_v14 = vsub.f32 %v4205_v34, %v4366_v9  ;;  %v3109_v34 = vpop.eup %3108  ;;  %v1249_v20 = vmul.f32 1.442695, %v2862_v5  ;;  %3126 = vrcp.f32 %v1484_v21 }
 0x1da   : > { %2169 = vbcast.lane.b32.xlu1 %v4426_v11, 272  ;;  %2165 = vbcast.lane.b32.xlu0 %v4426_v11, 264  ;;  %v3111_v59 = vpop.eup %3110  ;;  %3128 = vpow2.f32 %v1245_v29  ;;  %v860_v21 = vsub.f32 %v4213_v38, %v4366_v9 }
 0x1db   : > { %v1251_v24 = vmul.f32 1.442695, %v2863_v10  ;;  %v2865_v30 = vmul.f32 -100000.0, %v856_v14  ;;  %v3113_v35 = vpop.eup %3112  ;;  %v1486_v10 = vadd.f32 1.0, %v3109_v34  ;;  %v1485_v5 = vadd.f32 1.0, %v3111_v59 }
 0x1dc   : > { %v4452_v15 = vpop.permute.xlu1 %726  ;;  %v4454_v28 = vpop.permute.xlu0 %722  ;;  %v859_v34 = vsub.f32 %v4215_v39, %v4366_v9  ;;  %v2869_v59 = vmul.f32 -100000.0, %v860_v21 }
 0x1dd   : > { %5543 = vst [vmem:[#allocation71_spill] sm:$0xff] %v4452_v15  ;;  %5544 = vst [vmem:[#allocation72_spill] sm:$0xff] %v4454_v28  ;;  %3130 = vpow2.f32 %v1251_v24  ;;  %v1255_v14 = vmul.f32 1.442695, %v2865_v30  ;;  %v4476_v17 = vpop.eup %3114  ;;  %v1259_v30 = vmul.f32 1.442695, %v2867_v32 }
 0x1de   : > { %2177 = vbcast.lane.b32.xlu1 %v4426_v11, 288  ;;  %2173 = vbcast.lane.b32.xlu0 %v4426_v11, 280  ;;  %3132 = vpow2.f32 %v1249_v20  ;;  %v3117_v29 = vpop.eup %3116  ;;  %v2868_v36 = vmul.f32 -100000.0, %v859_v34  ;;  %v5578_v15 = vld [vmem:[#allocation41_spill] sm:$0xff] }
 0x1df   : > { %3134 = vrcp.f32 %v1482_v27  ;;  %v3119_v24 = vpop.eup %3118 }
 0x1e0   : > { %v4462_v25 = vpop.permute.xlu1 %734  ;;  %v4464_v26 = vpop.permute.xlu0 %730  ;;  %3136 = vrcp.f32 %v1486_v10  ;;  %v1490_v10 = vadd.f32 1.0, %v3119_v24  ;;  %v1261_v41 = vmul.f32 1.442695, %v2868_v36 }
 0x1e1   : > { %5545 = vst [vmem:[#allocation73_spill] sm:$0xff] %v4462_v25  ;;  %5546 = vst [vmem:[#allocation74_spill] sm:$0xff] %v4464_v26  ;;  %v1488_v25 = vadd.f32 1.0, %v3113_v35  ;;  %3138 = vpow2.f32 %v1255_v14  ;;  %v3121_v20 = vpop.eup %3120  ;;  %v1487_v35 = vadd.f32 1.0, %v3117_v29  ;;  %v862_v14 = vsub.f32 %v4217_v40, %v4366_v9 }
 0x1e2   : > { %2185 = vbcast.lane.b32.xlu1 %v4426_v11, 304  ;;  %2181 = vbcast.lane.b32.xlu0 %v4426_v11, 296  ;;  %3140 = vrcp.f32 %v1485_v5  ;;  %v4486_v27 = vpop.eup %3122  ;;  %v1489_v5 = vadd.f32 1.0, %v3121_v20  ;;  %v864_v40 = vsub.f32 %v4223_v43, %v4366_v9  ;;  %v863_v20 = vsub.f32 %v4225_v44, %v4366_v9 }
 0x1e3   : > { %3142 = vrcp.f32 %v1488_v25  ;;  %v3125_v39 = vpop.eup %3124  ;;  %v4518_v44 = vrot.slane %v4363_v2, %v4181_v22 }
 0x1e4   : > { %v4470_v26 = vpop.permute.xlu1 %742  ;;  %v4472_v33 = vpop.permute.xlu0 %738  ;;  %3144 = vpow2.f32 %v1253_v23  ;;  %v1492_v23 = vadd.f32 1.0, %v3125_v39  ;;  %v2873_v36 = vmul.f32 -100000.0, %v864_v40 }
 0x1e5   : > { %5547 = vst [vmem:[#allocation75_spill] sm:$0xff] %v4470_v26  ;;  %5548 = vst [vmem:[#allocation76_spill] sm:$0xff] %v4472_v33  ;;  %v4492_v32 = vpop.eup %3126  ;;  %3146 = vpow2.f32 %v1259_v30  ;;  %v2871_v30 = vmul.f32 -100000.0, %v862_v14 }
 0x1e6   : > { %2193 = vbcast.lane.b32.xlu1 %v4426_v11, 320  ;;  %2189 = vbcast.lane.b32.xlu0 %v4426_v11, 312  ;;  %v3129_v29 = vpop.eup %3128  ;;  %3148 = vpow2.f32 %v1257_v31 }
 0x1e7   : > { %v3131_v24 = vpop.eup %3130  ;;  %3150 = vrcp.f32 %v1487_v35  ;;  %v1491_v31 = vadd.f32 1.0, %v3129_v29 }
 0x1e8   : > { %v4482_v19 = vpop.permute.xlu1 %750  ;;  %v4484_v38 = vpop.permute.xlu0 %746  ;;  %3152 = vrcp.f32 %v1490_v10 }
 0x1e9   : > { %5549 = vst [vmem:[#allocation77_spill] sm:$0xff] %v4482_v19  ;;  %5550 = vst [vmem:[#allocation78_spill] sm:$0xff] %v4484_v38  ;;  %v1263_v38 = vmul.f32 1.442695, %v2869_v59  ;;  %v3133_v34 = vpop.eup %3132  ;;  %3154 = vrcp.f32 %v1489_v5  ;;  %v2870_v59 = vmul.f32 -100000.0, %v861_v37  ;;  %v2872_v37 = vmul.f32 -100000.0, %v863_v20 }
 0x1ea   : > { %2201 = vbcast.lane.b32.xlu1 %v4426_v11, 336  ;;  %2197 = vbcast.lane.b32.xlu0 %v4426_v11, 328  ;;  %v1493_v10 = vadd.f32 1.0, %v3133_v34  ;;  %v1267_v5 = vmul.f32 1.442695, %v2871_v30 }
 0x1eb   : > { %3156 = vpow2.f32 %v1263_v38  ;;  %v866_v38 = vsub.f32 %v4227_v45, %v4366_v9  ;;  %v1271_v45 = vmul.f32 1.442695, %v2873_v36 }
 0x1ec   : > { %v4496_v25 = vpop.permute.xlu1 %758  ;;  %v4498_v21 = vpop.permute.xlu0 %754  ;;  %3158 = vrcp.f32 %v1492_v23  ;;  %v865_v23 = vsub.f32 %v4229_v46, %v4366_v9  ;;  %v1269_v46 = vmul.f32 1.442695, %v2872_v37 }
 0x1ed   : > { %5551 = vst [vmem:[#allocation79_spill] sm:$0xff] %v4496_v25  ;;  %5552 = vst [vmem:[#allocation80_spill] sm:$0xff] %v4498_v21  ;;  %v4506_v21 = vpop.eup %3134  ;;  %v1494_v25 = vadd.f32 1.0, %v3131_v24  ;;  %3160 = vpow2.f32 %v1261_v41  ;;  %v1265_v24 = vmul.f32 1.442695, %v2870_v59  ;;  %v868_v41 = vsub.f32 %v4231_v47, %v4366_v9 }
 0x1ee   : > { %2209 = vbcast.lane.b32.xlu1 %v4426_v11, 352  ;;  %2205 = vbcast.lane.b32.xlu0 %v4426_v11, 344  ;;  %v4512_v43 = vpop.eup %3136  ;;  %3162 = vrcp.f32 %v1491_v31  ;;  %v2875_v31 = vmul.f32 -100000.0, %v866_v38  ;;  %v867_v59 = vsub.f32 %v4233_v48, %v4366_v9  ;;  %v869_v38 = vsub.f32 %v4237_v50, %v4366_v9 }
 0x1ef   : > { %v3139_v19 = vpop.eup %3138  ;;  %3164 = vrcp.f32 %v1494_v25  ;;  %v2874_v25 = vmul.f32 -100000.0, %v865_v23 }
 0x1f0   : > { %v4508_v35 = vpop.permute.xlu1 %766  ;;  %v4510_v39 = vpop.permute.xlu0 %762  ;;  %3166 = vrcp.f32 %v1493_v10  ;;  %v1275_v23 = vmul.f32 1.442695, %v2875_v31  ;;  %v2878_v31 = vmul.f32 -100000.0, %v869_v38 }
 0x1f1   : > { %5553 = vst [vmem:[#allocation81_spill] sm:$0xff] %v4508_v35  ;;  %5554 = vst [vmem:[#allocation82_spill] sm:$0xff] %v4510_v39  ;;  %v4520_v14 = vpop.eup %3140  ;;  %v1496_v39 = vadd.f32 1.0, %v3139_v19  ;;  %3168 = vpow2.f32 %v1267_v5  ;;  %v870_v5 = vsub.f32 %v4235_v49, %v4366_v9  ;;  %v1273_v49 = vmul.f32 1.442695, %v2874_v25 }
 0x1f2   : > { %2217 = vbcast.lane.b32.xlu1 %v4426_v11, 368  ;;  %2213 = vbcast.lane.b32.xlu0 %v4426_v11, 360  ;;  %v4524_v29 = vpop.eup %3142  ;;  %3170 = vpow2.f32 %v1265_v24 }
 0x1f3   : > { %v3145_v2 = vpop.eup %3144  ;;  %3172 = vrcp.f32 %v1496_v39  ;;  %v2876_v39 = vmul.f32 -100000.0, %v867_v59 }
 0x1f4   : > { %v4528_v40 = vpop.permute.xlu1 %777  ;;  %v4530_v34 = vpop.permute.xlu0 %773  ;;  %v1495_v19 = vadd.f32 1.0, %v3145_v2  ;;  %3174 = vpow2.f32 %v1271_v45  ;;  %v872_v2 = vsub.f32 %v4239_v51, %v4366_v9  ;;  %v871_v51 = vsub.f32 %v4241_v52, %v4366_v9 }
 0x1f5   : > { %5555 = vst [vmem:[#allocation83_spill] sm:$0xff] %v4528_v40  ;;  %5556 = vst [vmem:[#allocation84_spill] sm:$0xff] %v4530_v34  ;;  %v3147_v30 = vpop.eup %3146  ;;  %v2877_v40 = vmul.f32 -100000.0, %v868_v41  ;;  %3176 = vpow2.f32 %v1269_v46 }
 0x1f6   : > { %2228 = vbcast.lane.b32.xlu1 %v4518_v44, 256  ;;  %2221 = vbcast.lane.b32.xlu0 %v4426_v11, 376  ;;  %v3149_v20 = vpop.eup %3148  ;;  %v1498_v11 = vadd.f32 1.0, %v3147_v30  ;;  %3178 = vrcp.f32 %v1495_v19  ;;  %v1277_v19 = vmul.f32 1.442695, %v2876_v39  ;;  %v2881_v25 = vmul.f32 -100000.0, %v872_v2 }
 0x1f7   : > { %v4538_v34 = vpop.eup %3150  ;;  %v1497_v48 = vadd.f32 1.0, %v3149_v20  ;;  %v1279_v20 = vmul.f32 1.442695, %v2877_v40  ;;  %v873_v39 = vsub.f32 %v4245_v54, %v4366_v9 }
 0x1f8   : > { %v4540_v47 = vpop.permute.xlu1 %785  ;;  %v4542_v10 = vpop.permute.xlu0 %781  ;;  %3180 = vrcp.f32 %v1498_v11 }
 0x1f9   : > { %5557 = vst [vmem:[#allocation85_spill] sm:$0xff] %v4540_v47  ;;  %5558 = vst [vmem:[#allocation86_spill] sm:$0xff] %v4542_v10  ;;  %v4544_v36 = vpop.eup %3152  ;;  %v2879_v10 = vmul.f32 -100000.0, %v870_v5  ;;  %3182 = vrcp.f32 %v1497_v48 }
 0x1fa   : > { %v4548_v37 = vpop.eup %3154  ;;  %2236 = vbcast.lane.b32.xlu1 %v4518_v44, 272  ;;  %2232 = vbcast.lane.b32.xlu0 %v4518_v44, 264  ;;  %3184 = vpow2.f32 %v1275_v23  ;;  %v2880_v23 = vmul.f32 -100000.0, %v871_v51 }
 0x1fb   : > { %v3157_v24 = vpop.eup %3156  ;;  %3186 = vpow2.f32 %v1273_v49  ;;  %v1283_v52 = vmul.f32 1.442695, %v2879_v10  ;;  %v1287_v49 = vmul.f32 1.442695, %v2881_v25  ;;  %v876_v10 = vsub.f32 %v4247_v55, %v4366_v9 }
 0x1fc   : > { %v4556_v41 = vpop.eup %3158  ;;  %v4558_v30 = vpop.permute.xlu1 %793  ;;  %v1500_v46 = vadd.f32 1.0, %v3157_v24  ;;  %3188 = vpow2.f32 %v1279_v20  ;;  %v874_v24 = vsub.f32 %v4243_v53, %v4366_v9 }
 0x1fd   : > { %5559 = vst [vmem:[#allocation87_spill] sm:$0xff] %v4558_v30  ;;  %v4560_v45 = vpop.permute.xlu0 %789  ;;  %v3161_v50 = vpop.eup %3160  ;;  %v1281_v30 = vmul.f32 1.442695, %v2878_v31 }
 0x1fe   : > { %5560 = vst [vmem:[#allocation88_spill] sm:$0xff] %v4560_v45  ;;  %v4562_v47 = vpop.eup %3162  ;;  %2244 = vbcast.lane.b32.xlu1 %v4518_v44, 288  ;;  %2240 = vbcast.lane.b32.xlu0 %v4518_v44, 280  ;;  %v1499_v40 = vadd.f32 1.0, %v3161_v50  ;;  %3190 = vrcp.f32 %v1500_v46  ;;  %v2883_v51 = vmul.f32 -100000.0, %v874_v24 }
 0x1ff   : > { %v4568_v59 = vpop.eup %3164  ;;  %3192 = vpow2.f32 %v1277_v19  ;;  %v2882_v19 = vmul.f32 -100000.0, %v873_v39 }
 0x200   : > { %v4570_v11 = vpop.eup %3166  ;;  %v4572_v5 = vpop.permute.xlu1 %801  ;;  %3194 = vrcp.f32 %v1499_v40  ;;  %v2885_v40 = vmul.f32 -100000.0, %v876_v10  ;;  %v1291_v39 = vmul.f32 1.442695, %v2883_v51 }
 0x201   : > { %5561 = vst [vmem:[#allocation89_spill] sm:$0xff] %v4572_v5  ;;  %v4574_v48 = vpop.permute.xlu0 %797  ;;  %v3169_v38 = vpop.eup %3168  ;;  %3196 = vpow2.f32 %v1283_v52  ;;  %v1285_v5 = vmul.f32 1.442695, %v2880_v23 }
 0x202   : > { %5562 = vst [vmem:[#allocation90_spill] sm:$0xff] %v4574_v48  ;;  %v3171_v45 = vpop.eup %3170  ;;  %2252 = vbcast.lane.b32.xlu1 %v4518_v44, 304  ;;  %2248 = vbcast.lane.b32.xlu0 %v4518_v44, 296  ;;  %v1502_v53 = vadd.f32 1.0, %v3169_v38  ;;  %3198 = vpow2.f32 %v1281_v30  ;;  %v875_v38 = vsub.f32 %v4249_v56, %v4366_v9  ;;  %v1295_v10 = vmul.f32 1.442695, %v2885_v40 }
 0x203   : > { %v4582_v2 = vpop.eup %3172  ;;  %v1501_v54 = vadd.f32 1.0, %v3171_v45  ;;  %3200 = vpow2.f32 %v1287_v49  ;;  %v1289_v49 = vmul.f32 1.442695, %v2882_v19  ;;  %v877_v19 = vsub.f32 %v4253_v58, %v4366_v9 }
 0x204   : > { %v3175_v50 = vpop.eup %3174  ;;  %v4586_v20 = vpop.permute.xlu1 %809  ;;  %3202 = vrcp.f32 %v1502_v53  ;;  %v2884_v53 = vmul.f32 -100000.0, %v875_v38  ;;  %v880_v40 = vsub.f32 %v4257_v60, %v4366_v9  ;;  %v879_v58 = vsub.f32 %v4259_v61, %v4366_v9 }
 0x205   : > { %5563 = vst [vmem:[#allocation91_spill] sm:$0xff] %v4586_v20  ;;  %v4588_v46 = vpop.permute.xlu0 %805  ;;  %v3177_v31 = vpop.eup %3176  ;;  %v1504_v25 = vadd.f32 1.0, %v3175_v50  ;;  %3204 = vrcp.f32 %v1501_v54 }
 0x206   : > { %5564 = vst [vmem:[#allocation92_spill] sm:$0xff] %v4588_v46  ;;  %v4590_v48 = vpop.eup %3178  ;;  %2260 = vbcast.lane.b32.xlu1 %v4518_v44, 320  ;;  %2256 = vbcast.lane.b32.xlu0 %v4518_v44, 312  ;;  %v1503_v52 = vadd.f32 1.0, %v3177_v31  ;;  %v878_v46 = vsub.f32 %v4251_v57, %v4366_v9  ;;  %3206 = vpow2.f32 %v1285_v5 }
 0x207   : > { %v4594_v55 = vpop.eup %3180  ;;  %3208 = vrcp.f32 %v1504_v25 }
 0x208   : > { %v4598_v45 = vpop.eup %3182  ;;  %v4600_v24 = vpop.permute.xlu1 %817  ;;  %3210 = vrcp.f32 %v1503_v52  ;;  %v2887_v5 = vmul.f32 -100000.0, %v878_v46  ;;  %v1293_v52 = vmul.f32 1.442695, %v2884_v53 }
 0x209   : > { %5565 = vst [vmem:[#allocation93_spill] sm:$0xff] %v4600_v24  ;;  %v4602_v30 = vpop.permute.xlu0 %813  ;;  %v3185_v23 = vpop.eup %3184  ;;  %3212 = vpow2.f32 %v1291_v39 }
 0x20a   : > { %5566 = vst [vmem:[#allocation94_spill] sm:$0xff] %v4602_v30  ;;  %v3187_v50 = vpop.eup %3186  ;;  %2268 = vbcast.lane.b32.xlu1 %v4518_v44, 336  ;;  %2264 = vbcast.lane.b32.xlu0 %v4518_v44, 328  ;;  %v1506_v30 = vadd.f32 1.0, %v3185_v23  ;;  %3214 = vpow2.f32 %v1289_v49  ;;  %v1299_v60 = vmul.f32 1.442695, %v2887_v5 }
 0x20b   : > { %v3189_v56 = vpop.eup %3188  ;;  %v1505_v24 = vadd.f32 1.0, %v3187_v50  ;;  %3216 = vpow2.f32 %v1295_v10  ;;  %v2889_v10 = vmul.f32 -100000.0, %v880_v40 }
 0x20c   : > { %v4608_v31 = vpop.eup %3190  ;;  %v4610_v54 = vpop.permute.xlu1 %825  ;;  %v1508_v25 = vadd.f32 1.0, %v3189_v56  ;;  %3218 = vrcp.f32 %v1506_v30  ;;  %v2886_v56 = vmul.f32 -100000.0, %v877_v19 }
 0x20d   : > { %5567 = vst [vmem:[#allocation95_spill] sm:$0xff] %v4610_v54  ;;  %v4612_v51 = vpop.permute.xlu0 %821  ;;  %v3193_v57 = vpop.eup %3192  ;;  %3220 = vrcp.f32 %v1505_v24  ;;  %v1303_v40 = vmul.f32 1.442695, %v2889_v10 }
 0x20e   : > { %5568 = vst [vmem:[#allocation96_spill] sm:$0xff] %v4612_v51  ;;  %v4616_v20 = vpop.eup %3194  ;;  %2272 = vbcast.lane.b32.xlu1 %v4518_v44, 344  ;;  %2004 = vbcast.lane.b32.xlu0 %v4374_v4, 344  ;;  %v1507_v46 = vadd.f32 1.0, %v3193_v57  ;;  %3222 = vrcp.f32 %v1508_v25  ;;  %v1297_v25 = vmul.f32 1.442695, %v2886_v56 }
 0x20f   : > { %v3197_v38 = vpop.eup %3196  ;;  %3224 = vpow2.f32 %v1293_v52  ;;  %v1867_v52 = vcombine.high %v4317_v13, %v4317_v13 }
 0x210   : > { %v3199_v23 = vpop.eup %3198  ;;  %v4624_v39 = vpop.permute.xlu1 %833  ;;  %v1510_v54 = vadd.f32 1.0, %v3197_v38  ;;  %3226 = vrcp.f32 %v1507_v46 }
 0x211   : > { %5569 = vst [vmem:[#allocation97_spill] sm:$0xff] %v4624_v39  ;;  %v4626_v50 = vpop.permute.xlu0 %829  ;;  %v3201_v49 = vpop.eup %3200  ;;  %v1509_v61 = vadd.f32 1.0, %v3199_v23  ;;  %v2888_v39 = vmul.f32 -100000.0, %v879_v58  ;;  %3228 = vpow2.f32 %v1299_v60  ;;  %v881_v58 = vsub.f32 %v4263_v63, %v4366_v9 }
 0x212   : > { %5570 = vst [vmem:[#allocation98_spill] sm:$0xff] %v4626_v50  ;;  %v4628_v51 = vpop.eup %3202  ;;  %2276 = vbcast.lane.b32.xlu1 %v4518_v44, 352  ;;  %2008 = vbcast.lane.b32.xlu0 %v4374_v4, 352  ;;  %v1512_v57 = vadd.f32 1.0, %v3201_v49  ;;  %3230 = vrcp.f32 %v1510_v54  ;;  %v882_v50 = vsub.f32 %v4261_v62, %v4366_v9  ;;  %v4653_v13 = vrot.slane %v1867_v52, %v4145_v7 }
 0x213   : > { %v4632_v30 = vpop.eup %3204  ;;  %3232 = vrcp.f32 %v1509_v61  ;;  %v1301_v54 = vmul.f32 1.442695, %v2888_v39  ;;  %v2890_v61 = vmul.f32 -100000.0, %v881_v58  ;;  %v906_v7 = vsub.f32 %v4311_v42, %v4366_v9 }
 0x214   : > { %v3207_v53 = vpop.eup %3206  ;;  %v1898_v24 = vpop.permute.xlu1 %1897  ;;  %3234 = vrcp.f32 %v1512_v57  ;;  %v2891_v35 = vmul.f32 -100000.0, %v882_v50  ;;  %v884_v50 = vsub.f32 %v4265_v0, %v4366_v9  ;;  %v905_v52 = vsub.f32 %v4313_v12, %v4366_v9 }
 0x215   : > { %v1894_v5 = vpop.permute.xlu0 %1893  ;;  %v4634_v19 = vpop.eup %3208  ;;  %v1511_v46 = vadd.f32 1.0, %v3207_v53  ;;  %3236 = vpow2.f32 %v1297_v25  ;;  %v908_v0 = vsub.f32 %v4319_v16, %v4366_v9  ;;  %v4677_v42 = vrot.slane %v4653_v13, %v4181_v22 }
 0x216   : > { %v4636_v38 = vpop.eup %3210  ;;  %2280 = vbcast.lane.b32.xlu1 %v4518_v44, 360  ;;  %2012 = vbcast.lane.b32.xlu0 %v4374_v4, 360  ;;  %3238 = vpow2.f32 %v1303_v40  ;;  %v4681_v12 = vrot.slane %v4653_v13, %v4148_v8  ;;  %v2915_v28 = vmul.f32 -100000.0, %v906_v7 }
 0x217   : > { %v3213_v23 = vpop.eup %3212  ;;  %3240 = vrcp.f32 %v1511_v46  ;;  %v2424_v46 = vmul.f32 %v4486_v27, %v1894_v5  ;;  %v1305_v27 = vmul.f32 1.442695, %v2890_v61 }
 0x218   : > { %v3215_v49 = vpop.eup %3214  ;;  %v4646_v60 = vpop.permute.xlu1 %1905  ;;  %v1514_v39 = vadd.f32 1.0, %v3213_v23  ;;  %3242 = vpow2.f32 %v1301_v54  ;;  %v2425_v23 = vmul.f32 %v4506_v21, %v1898_v24 }
 0x219   : > { %v1902_v56 = vpop.permute.xlu0 %1901  ;;  %v3217_v62 = vpop.eup %3216  ;;  %v1513_v57 = vadd.f32 1.0, %v3215_v49  ;;  %v1307_v49 = vmul.f32 1.442695, %v2891_v35 }
 0x21a   : > { %v4648_v10 = vpop.eup %3218  ;;  %2284 = vbcast.lane.b32.xlu1 %v4518_v44, 368  ;;  %2016 = vbcast.lane.b32.xlu0 %v4374_v4, 368  ;;  %v1516_v25 = vadd.f32 1.0, %v3217_v62  ;;  %3244 = vrcp.f32 %v1514_v39  ;;  %v2426_v35 = vmul.f32 %v4476_v17, %v1902_v56  ;;  %v5576_v39 = vld [vmem:[#allocation40_spill] sm:$0xff]  ;;  %v2553_v17 = vadd.f32 %v2425_v23, %v2424_v46 }
 0x21b   : > { %5571 = vst [vmem:[#allocation99_spill] sm:$0xff] %v4648_v10  ;;  %v4655_v63 = vpop.eup %3220  ;;  %3246 = vrcp.f32 %v1513_v57  ;;  %v907_v61 = vsub.f32 %v5576_v39, %v4366_v9 }
 0x21c   : > { %v4657_v53 = vpop.eup %3222  ;;  %v4661_v40 = vpop.permute.xlu1 %1913  ;;  %3248 = vrcp.f32 %v1516_v25  ;;  %v910_v25 = vsub.f32 %v5578_v15, %v4366_v9  ;;  %v2554_v7 = vadd.f32 %v2553_v17, %v2426_v35  ;;  %v2427_v35 = vmul.f32 %v4492_v32, %v4646_v60  ;;  %v5582_v17 = vld [vmem:[#allocation44_spill] sm:$0xff] }
 0x21d   : > { %5572 = vst [vmem:[#allocation100_spill] sm:$0xff] %v4657_v53  ;;  %v1910_v33 = vpop.permute.xlu0 %1909  ;;  %v3225_v26 = vpop.eup %3224  ;;  %3250 = vpow2.f32 %v1307_v49 }
 0x21e   : > { %v4669_v58 = vpop.eup %3226  ;;  %2288 = vbcast.lane.b32.xlu1 %v4518_v44, 376  ;;  %2020 = vbcast.lane.b32.xlu0 %v4374_v4, 376  ;;  %v1515_v16 = vadd.f32 1.0, %v3225_v26  ;;  %v2893_v44 = vmul.f32 -100000.0, %v884_v50  ;;  %v883_v4 = vsub.f32 %v4267_v1, %v4366_v9  ;;  %v2914_v26 = vmul.f32 -100000.0, %v905_v52 }
 0x21f   : > { %5573 = vst [vmem:[#allocation101_spill] sm:$0xff] %v4669_v58  ;;  %v3229_v21 = vpop.eup %3228  ;;  %v2917_v50 = vmul.f32 -100000.0, %v908_v0  ;;  %3252 = vpow2.f32 %v1305_v27  ;;  %v2916_v27 = vmul.f32 -100000.0, %v907_v61  ;;  %v5583_v61 = vld [vmem:[#allocation45_spill] sm:$0xff] }
 0x220   : > { %v4684_v24 = vpop.eup %3230  ;;  %v4688_v5 = vpop.permute.xlu1 %1921  ;;  %v1518_v57 = vadd.f32 1.0, %v3229_v21  ;;  %3254 = vrcp.f32 %v1515_v16  ;;  %v1311_v23 = vmul.f32 1.442695, %v2893_v44  ;;  %v2892_v46 = vmul.f32 -100000.0, %v883_v4  ;;  %v5579_v21 = vld [vmem:[#allocation42_spill] sm:$0xff] }
 0x221   : > { %5574 = vst [vmem:[#allocation102_spill] sm:$0xff] %v4684_v24  ;;  %v4690_v54 = vpop.permute.xlu0 %1917  ;;  %v4692_v62 = vpop.eup %3232  ;;  %v909_v49 = vsub.f32 %v5579_v21, %v4366_v9  ;;  %v5581_v24 = vld [vmem:[#allocation43_spill] sm:$0xff]  ;;  %v1353_v44 = vmul.f32 1.442695, %v2914_v26  ;;  %v1359_v4 = vmul.f32 1.442695, %v2917_v50  ;;  %v911_v21 = vsub.f32 %v5582_v17, %v4366_v9 }
 0x222   : > { %5575 = vst [vmem:[#allocation103_spill] sm:$0xff] %v4692_v62  ;;  %v4696_v56 = vpop.eup %3234  ;;  %2295 = vbcast.lane.b32.xlu1 %v4677_v42, 256  ;;  %2027 = vbcast.lane.b32.xlu0 %v4681_v12, 256  ;;  %v912_v15 = vsub.f32 %v5581_v24, %v4366_v9  ;;  %3256 = vrcp.f32 %v1518_v57  ;;  %v2555_v24 = vadd.f32 %v2554_v7, %v2427_v35  ;;  %v1309_v32 = vmul.f32 1.442695, %v2892_v46  ;;  %v5584_v57 = vld [vmem:[#allocation46_spill] sm:$0xff] }
 0x223   : > { %5577 = vst [vmem:[#allocation40_spill] sm:$0xff] %v4696_v56  ;;  %v3237_v1 = vpop.eup %3236  ;;  %v1355_v56 = vmul.f32 1.442695, %v2915_v28  ;;  %v2919_v28 = vmul.f32 -100000.0, %v910_v25  ;;  %v2428_v62 = vmul.f32 %v4520_v14, %v1910_v33  ;;  %3258 = vpow2.f32 %v1311_v23 }
 0x224   : > { %v4702_v6 = vpop.eup %3238  ;;  %v4706_v52 = vpop.permute.xlu1 %1929  ;;  %v2918_v60 = vmul.f32 -100000.0, %v909_v49  ;;  %v913_v26 = vsub.f32 %v5584_v57, %v4366_v9  ;;  %v1357_v25 = vmul.f32 1.442695, %v2916_v27  ;;  %v2921_v58 = vmul.f32 -100000.0, %v912_v15  ;;  %v5589_v15 = vld [vmem:[#allocation47_spill] sm:$0xff] }
 0x225   : > { %v4708_v0 = vpop.permute.xlu0 %1925  ;;  %v4710_v39 = vpop.eup %3240  ;;  %3260 = vpow2.f32 %v1355_v56  ;;  %v1517_v7 = vadd.f32 1.0, %v3237_v1  ;;  %v2920_v33 = vmul.f32 -100000.0, %v911_v21  ;;  %v1363_v23 = vmul.f32 1.442695, %v2919_v28 }
 0x226   : > { %5580 = vst [vmem:[#allocation41_spill] sm:$0xff] %v4710_v39  ;;  %v4716_v16 = vpop.eup %3242  ;;  %2299 = vbcast.lane.b32.xlu1 %v4677_v42, 264  ;;  %2031 = vbcast.lane.b32.xlu0 %v4681_v12, 264  ;;  %v914_v39 = vsub.f32 %v5583_v61, %v4366_v9  ;;  %3262 = vpow2.f32 %v1353_v44  ;;  %v2556_v49 = vadd.f32 %v2555_v24, %v2428_v62  ;;  %v1361_v56 = vmul.f32 1.442695, %v2918_v60 }
 0x227   : > { %v4731_v53 = vpop.eup %3244  ;;  %3264 = vpow2.f32 %v1359_v4  ;;  %v2922_v27 = vmul.f32 -100000.0, %v913_v26  ;;  %v916_v1 = vsub.f32 %v5589_v15, %v4366_v9  ;;  %v1367_v57 = vmul.f32 1.442695, %v2921_v58  ;;  %v5591_v4 = vld [vmem:[#allocation48_spill] sm:$0xff]  ;;  %v5594_v15 = vld [vmem:[#allocation49_spill] sm:$0xff] }
 0x228   : > { %v4727_v50 = vpop.permute.xlu1 %1937  ;;  %5585 = vst [vmem:[#allocation42_spill] sm:$0xff] %v4731_v53  ;;  %v4733_v10 = vpop.eup %3246  ;;  %v2923_v46 = vmul.f32 -100000.0, %v914_v39  ;;  %3266 = vpow2.f32 %v1309_v32  ;;  %v915_v39 = vsub.f32 %v5591_v4, %v4366_v9  ;;  %v2429_v62 = vmul.f32 %v4512_v43, %v4661_v40 }
 0x229   : > { %v4729_v17 = vpop.permute.xlu0 %1933  ;;  %5586 = vst [vmem:[#allocation43_spill] sm:$0xff] %v4733_v10  ;;  %v4737_v14 = vpop.eup %3248  ;;  %3268 = vpow2.f32 %v1357_v25  ;;  %v1365_v24 = vmul.f32 1.442695, %v2920_v33  ;;  %v2430_v58 = vmul.f32 %v4538_v34, %v4690_v54  ;;  %v1369_v25 = vmul.f32 1.442695, %v2922_v27 }
 0x22a   : > { %2303 = vbcast.lane.b32.xlu1 %v4677_v42, 272  ;;  %2035 = vbcast.lane.b32.xlu0 %v4681_v12, 272  ;;  %5587 = vst [vmem:[#allocation44_spill] sm:$0xff] %v4737_v14  ;;  %v4739_v35 = vpop.eup %3250  ;;  %3270 = vrcp.f32 %v1517_v7  ;;  %v1371_v32 = vmul.f32 1.442695, %v2923_v46  ;;  %v2557_v60 = vadd.f32 %v2556_v49, %v2429_v62  ;;  %v2925_v43 = vmul.f32 -100000.0, %v916_v1 }
 0x22b   : > { %5588 = vst [vmem:[#allocation45_spill] sm:$0xff] %v4739_v35  ;;  %v4747_v61 = vpop.eup %3252  ;;  %3272 = vpow2.f32 %v1363_v23  ;;  %v2924_v33 = vmul.f32 -100000.0, %v915_v39  ;;  %v918_v23 = vsub.f32 %v5594_v15, %v4366_v9  ;;  %v1520_v49 = vadd.f32 1.0, %v4702_v6  ;;  %v4773_v54 = vld [vmem:[%s4121_s7] ss:$0 sm:$0xff] }
 0x22c   : > { %v4743_v44 = vpop.permute.xlu1 %1945  ;;  %5590 = vst [vmem:[#allocation46_spill] sm:$0xff] %v4747_v61  ;;  %v4753_v28 = vpop.eup %3254  ;;  %3274 = vpow2.f32 %v1361_v56  ;;  %v5596_v56 = vld [vmem:[#allocation50_spill] sm:$0xff]  ;;  %v2558_v1 = vadd.f32 %v2557_v60, %v2430_v58  ;;  %v1375_v9 = vmul.f32 1.442695, %v2925_v43  ;;  %v5597_v15 = vld [vmem:[#allocation51_spill] sm:$0xff] }
 0x22d   : > { %v4745_v21 = vpop.permute.xlu0 %1941  ;;  %5592 = vst [vmem:[#allocation47_spill] sm:$0xff] %v4753_v28  ;;  %v4759_v26 = vpop.eup %3256  ;;  %3276 = vpow2.f32 %v1367_v57  ;;  %v917_v27 = vsub.f32 %v5596_v56, %v4773_v54  ;;  %v1373_v62 = vmul.f32 1.442695, %v2924_v33  ;;  %v2432_v33 = vmul.f32 %v4548_v37, %v4708_v0 }
 0x22e   : > { %2307 = vbcast.lane.b32.xlu1 %v4677_v42, 280  ;;  %2039 = vbcast.lane.b32.xlu0 %v4681_v12, 280  ;;  %5593 = vst [vmem:[#allocation48_spill] sm:$0xff] %v4759_v26  ;;  %v4767_v46 = vpop.eup %3258  ;;  %3278 = vpow2.f32 %v1365_v24  ;;  %v2927_v24 = vmul.f32 -100000.0, %v918_v23  ;;  %v920_v26 = vsub.f32 %v5597_v15, %v4773_v54 }
 0x22f   : > { %5595 = vst [vmem:[#allocation49_spill] sm:$0xff] %v4767_v46  ;;  %v3261_v34 = vpop.eup %3260  ;;  %3280 = vpow2.f32 %v1371_v32  ;;  %v2431_v32 = vmul.f32 %v4524_v29, %v4688_v5  ;;  %v2926_v43 = vmul.f32 -100000.0, %v917_v27  ;;  %v5600_v27 = vld [vmem:[#allocation52_spill] sm:$0xff] }
 0x230   : > { %v4761_v40 = vpop.permute.xlu1 %1953  ;;  %v3263_v57 = vpop.eup %3262  ;;  %3282 = vpow2.f32 %v1369_v25  ;;  %v1546_v60 = vadd.f32 1.0, %v3261_v34  ;;  %v1379_v34 = vmul.f32 1.442695, %v2927_v24  ;;  %v2929_v28 = vmul.f32 -100000.0, %v920_v26 }
 0x231   : > { %v4763_v7 = vpop.permute.xlu0 %1949  ;;  %v3265_v6 = vpop.eup %3264  ;;  %3284 = vrcp.f32 %v1520_v49  ;;  %v1545_v25 = vadd.f32 1.0, %v3263_v57  ;;  %v2559_v56 = vadd.f32 %v2558_v1, %v2431_v32  ;;  %v919_v1 = vsub.f32 %v5600_v27, %v4773_v54 }
 0x232   : > { %2311 = vbcast.lane.b32.xlu1 %v4677_v42, 288  ;;  %2043 = vbcast.lane.b32.xlu0 %v4681_v12, 288  ;;  %v4785_v14 = vpop.eup %3266  ;;  %v1548_v15 = vadd.f32 1.0, %v3265_v6  ;;  %3286 = vpow2.f32 %v1375_v9  ;;  %v1377_v0 = vmul.f32 1.442695, %v2926_v43 }
 0x233   : > { %5598 = vst [vmem:[#allocation50_spill] sm:$0xff] %v4785_v14  ;;  %v3269_v58 = vpop.eup %3268  ;;  %3288 = vpow2.f32 %v1373_v62  ;;  %v2560_v9 = vadd.f32 %v2559_v56, %v2432_v33  ;;  %v5601_v62 = vld [vmem:[#allocation53_spill] sm:$0xff]  ;;  %v1383_v27 = vmul.f32 1.442695, %v2929_v28  ;;  %v2928_v56 = vmul.f32 -100000.0, %v919_v1  ;;  %v5602_v33 = vld [vmem:[#allocation54_spill] sm:$0xff] }
 0x234   : > { %v4777_v4 = vpop.permute.xlu1 %1964  ;;  %v4791_v23 = vpop.eup %3270  ;;  %3290 = vrcp.f32 %v1546_v60  ;;  %v1547_v57 = vadd.f32 1.0, %v3269_v58  ;;  %v922_v26 = vsub.f32 %v5601_v62, %v4773_v54  ;;  %v2434_v28 = vmul.f32 %v4562_v47, %v4729_v17 }
 0x235   : > { %v4779_v39 = vpop.permute.xlu0 %1960  ;;  %5599 = vst [vmem:[#allocation51_spill] sm:$0xff] %v4791_v23  ;;  %v3273_v49 = vpop.eup %3272  ;;  %3292 = vrcp.f32 %v1545_v25  ;;  %v2433_v23 = vmul.f32 %v4544_v36, %v4706_v52  ;;  %v1381_v17 = vmul.f32 1.442695, %v2928_v56 }
 0x236   : > { %2315 = vbcast.lane.b32.xlu1 %v4677_v42, 296  ;;  %2047 = vbcast.lane.b32.xlu0 %v4681_v12, 296  ;;  %v3275_v53 = vpop.eup %3274  ;;  %3294 = vrcp.f32 %v1548_v15  ;;  %v1550_v32 = vadd.f32 1.0, %v3273_v49  ;;  %v921_v15 = vsub.f32 %v5602_v33, %v4773_v54  ;;  %v2931_v52 = vmul.f32 -100000.0, %v922_v26 }
 0x237   : > { %v3277_v37 = vpop.eup %3276  ;;  %3296 = vpow2.f32 %v1379_v34  ;;  %v1549_v25 = vadd.f32 1.0, %v3275_v53  ;;  %v2561_v49 = vadd.f32 %v2560_v9, %v2433_v23  ;;  %v5604_v53 = vld [vmem:[#allocation55_spill] sm:$0xff] }
 0x238   : > { %v4793_v29 = vpop.permute.xlu1 %1972  ;;  %v3279_v6 = vpop.eup %3278  ;;  %3298 = vrcp.f32 %v1547_v57  ;;  %v1552_v43 = vadd.f32 1.0, %v3277_v37  ;;  %v924_v57 = vsub.f32 %v5604_v53, %v4773_v54  ;;  %v2930_v9 = vmul.f32 -100000.0, %v921_v15  ;;  %v5605_v53 = vld [vmem:[#allocation56_spill] sm:$0xff] }
 0x239   : > { %v4795_v5 = vpop.permute.xlu0 %1968  ;;  %v3281_v58 = vpop.eup %3280  ;;  %3300 = vpow2.f32 %v1377_v0  ;;  %v1551_v36 = vadd.f32 1.0, %v3279_v6  ;;  %v2562_v6 = vadd.f32 %v2561_v49, %v2434_v28  ;;  %v1387_v26 = vmul.f32 1.442695, %v2931_v52  ;;  %v5607_v49 = vld [vmem:[#allocation57_spill] sm:$0xff] }
 0x23a   : > { %2319 = vbcast.lane.b32.xlu1 %v4677_v42, 304  ;;  %2051 = vbcast.lane.b32.xlu0 %v4681_v12, 304  ;;  %v3283_v10 = vpop.eup %3282  ;;  %3302 = vrcp.f32 %v1550_v32  ;;  %v1554_v0 = vadd.f32 1.0, %v3281_v58  ;;  %v2933_v33 = vmul.f32 -100000.0, %v924_v57  ;;  %v923_v58 = vsub.f32 %v5605_v53, %v4773_v54 }
 0x23b   : > { %v4815_v34 = vpop.eup %3284  ;;  %3304 = vpow2.f32 %v1383_v27  ;;  %v1553_v23 = vadd.f32 1.0, %v3283_v10  ;;  %v926_v28 = vsub.f32 %v5607_v49, %v4773_v54  ;;  %v1385_v52 = vmul.f32 1.442695, %v2930_v9  ;;  %v5609_v49 = vld [vmem:[#allocation58_spill] sm:$0xff] }
 0x23c   : > { %v4803_v24 = vpop.permute.xlu1 %1980  ;;  %5603 = vst [vmem:[#allocation52_spill] sm:$0xff] %v4815_v34  ;;  %v3287_v62 = vpop.eup %3286  ;;  %3306 = vrcp.f32 %v1549_v25  ;;  %v925_v14 = vsub.f32 %v5609_v49, %v4773_v54 }
 0x23d   : > { %v4805_v60 = vpop.permute.xlu0 %1976  ;;  %v3289_v47 = vpop.eup %3288  ;;  %3308 = vrcp.f32 %v1552_v43  ;;  %v1556_v34 = vadd.f32 1.0, %v3287_v62  ;;  %v2435_v43 = vmul.f32 %v4556_v41, %v4727_v50  ;;  %v1391_v41 = vmul.f32 1.442695, %v2933_v33 }
 0x23e   : > { %2323 = vbcast.lane.b32.xlu1 %v4677_v42, 312  ;;  %2055 = vbcast.lane.b32.xlu0 %v4681_v12, 312  ;;  %v3291_v32 = vpop.eup %3290  ;;  %3310 = vrcp.f32 %v1551_v36  ;;  %v1555_v15 = vadd.f32 1.0, %v3289_v47  ;;  %v2932_v50 = vmul.f32 -100000.0, %v923_v58  ;;  %v2935_v9 = vmul.f32 -100000.0, %v926_v28 }
 0x23f   : > { %v3293_v10 = vpop.eup %3292  ;;  %3312 = vrcp.f32 %v1554_v0  ;;  %v2563_v57 = vadd.f32 %v2562_v6, %v2435_v43  ;;  %v2436_v0 = vmul.f32 %v4570_v11, %v4745_v21  ;;  %v2437_v28 = vmul.f32 %v4568_v59, %v4743_v44 }
 0x240   : > { %v4819_v1 = vpop.permute.xlu1 %1988  ;;  %v3295_v56 = vpop.eup %3294  ;;  %3314 = vrcp.f32 %v1553_v23  ;;  %v1389_v33 = vmul.f32 1.442695, %v2932_v50 }
 0x241   : > { %v4821_v37 = vpop.permute.xlu0 %1984  ;;  %v3297_v36 = vpop.eup %3296  ;;  %3316 = vpow2.f32 %v1381_v17  ;;  %v2564_v21 = vadd.f32 %v2563_v57, %v2436_v0  ;;  %v1395_v57 = vmul.f32 1.442695, %v2935_v9  ;;  %v5611_v0 = vld [vmem:[#allocation60_spill] sm:$0xff] }
 0x242   : > { %2327 = vbcast.lane.b32.xlu1 %v4677_v42, 320  ;;  %2059 = vbcast.lane.b32.xlu0 %v4681_v12, 320  ;;  %v3299_v62 = vpop.eup %3298  ;;  %3318 = vpow2.f32 %v1387_v26  ;;  %v1558_v17 = vadd.f32 1.0, %v3297_v36 }
 0x243   : > { %v3301_v53 = vpop.eup %3300  ;;  %3320 = vrcp.f32 %v1556_v34  ;;  %v5610_v34 = vld [vmem:[#allocation59_spill] sm:$0xff] }
 0x244   : > { %v4827_v27 = vpop.permute.xlu1 %1996  ;;  %v4843_v46 = vpop.eup %3302  ;;  %3322 = vrcp.f32 %v1555_v15  ;;  %v1557_v26 = vadd.f32 1.0, %v3301_v53  ;;  %v928_v58 = vsub.f32 %v5610_v34, %v4773_v54  ;;  %v2934_v15 = vmul.f32 -100000.0, %v925_v14 }
 0x245   : > { %5606 = vst [vmem:[#allocation53_spill] sm:$0xff] %v4827_v27  ;;  %v4829_v25 = vpop.permute.xlu0 %1992  ;;  %v3305_v11 = vpop.eup %3304  ;;  %3324 = vpow2.f32 %v1385_v52  ;;  %v2565_v53 = vadd.f32 %v2564_v21, %v2437_v28  ;;  %v2438_v14 = vmul.f32 %v4590_v48, %v4763_v7  ;;  %v5612_v21 = vld [vmem:[#allocation62_spill] sm:$0xff] }
 0x246   : > { %2331 = vbcast.lane.b32.xlu1 %v4677_v42, 328  ;;  %2063 = vbcast.lane.b32.xlu0 %v4681_v12, 328  ;;  %v3307_v6 = vpop.eup %3306  ;;  %3326 = vpow2.f32 %v1391_v41  ;;  %v1560_v52 = vadd.f32 1.0, %v3305_v11  ;;  %v927_v41 = vsub.f32 %v5611_v0, %v4773_v54  ;;  %v1393_v0 = vmul.f32 1.442695, %v2934_v15  ;;  %v5614_v15 = vld [vmem:[#allocation63_spill] sm:$0xff] }
 0x247   : > { %3328 = vrcp.f32 %v1558_v17  ;;  %v929_v28 = vsub.f32 %v5612_v21, %v4773_v54  ;;  %v2566_v7 = vadd.f32 %v2565_v53, %v2438_v14 }
 0x248   : > { %v2162_v23 = vpop.permute.xlu1 %2161  ;;  %3330 = vrcp.f32 %v1557_v26  ;;  %v2936_v35 = vmul.f32 -100000.0, %v927_v41 }
 0x249   : > { %v4839_v47 = vpop.permute.xlu0 %2000  ;;  %v2488_v36 = vmul.f32 %v3293_v10, %v2162_v23  ;;  %v2937_v10 = vmul.f32 -100000.0, %v928_v58  ;;  %3332 = vpow2.f32 %v1389_v33  ;;  %v5613_v58 = vld [vmem:[#allocation61_spill] sm:$0xff] }
 0x24a   : > { %5608 = vst [vmem:[#allocation54_spill] sm:$0xff] %v4839_v47  ;;  %2335 = vbcast.lane.b32.xlu1 %v4677_v42, 336  ;;  %2067 = vbcast.lane.b32.xlu0 %v4681_v12, 336  ;;  %v4849_v47 = vpop.eup %3308  ;;  %3334 = vrcp.f32 %v1560_v52 }
 0x24b   : > { %v3311_v61 = vpop.eup %3310  ;;  %3336 = vpow2.f32 %v1395_v57  ;;  %v1399_v33 = vmul.f32 1.442695, %v2937_v10 }
 0x24c   : > { %v2170_v43 = vpop.permute.xlu1 %2169  ;;  %v4857_v50 = vpop.eup %3312  ;;  %3338 = vpow2.f32 %v1393_v0 }
 0x24d   : > { %v2166_v49 = vpop.permute.xlu0 %2165  ;;  %v2490_v59 = vmul.f32 %v3299_v62, %v2170_v43  ;;  %v930_v43 = vsub.f32 %v5613_v58, %v4773_v54  ;;  %3340 = vpow2.f32 %v1399_v33 }
 0x24e   : > { %v2489_v27 = vmul.f32 %v3291_v32, %v2166_v49  ;;  %2339 = vbcast.lane.b32.xlu1 %v4677_v42, 344  ;;  %2071 = vbcast.lane.b32.xlu0 %v4681_v12, 344  ;;  %v4861_v32 = vpop.eup %3314 }
 0x24f   : > { %v3317_v9 = vpop.eup %3316 }
 0x250   : > { %v2622_v44 = vadd.f32 %v2489_v27, %v2488_v36  ;;  %v2178_v23 = vpop.permute.xlu1 %2177  ;;  %v3319_v49 = vpop.eup %3318  ;;  %v932_v36 = vsub.f32 %v5614_v15, %v4773_v54 }
 0x251   : > { %v2174_v17 = vpop.permute.xlu0 %2173  ;;  %v4867_v48 = vpop.eup %3320  ;;  %v2492_v27 = vmul.f32 %v3307_v6, %v2178_v23  ;;  %v2439_v6 = vmul.f32 %v4582_v2, %v4761_v40  ;;  %v1562_v10 = vadd.f32 1.0, %v3319_v49  ;;  %v1397_v23 = vmul.f32 1.442695, %v2936_v35 }
 0x252   : > { %v2623_v11 = vadd.f32 %v2622_v44, %v2490_v59  ;;  %v2491_v34 = vmul.f32 %v3295_v56, %v2174_v17  ;;  %2343 = vbcast.lane.b32.xlu1 %v4677_v42, 352  ;;  %2075 = vbcast.lane.b32.xlu0 %v4681_v12, 352  ;;  %v4869_v26 = vpop.eup %3322  ;;  %v1559_v56 = vadd.f32 1.0, %v3317_v9  ;;  %v5615_v44 = vld [vmem:[#allocation64_spill] sm:$0xff]  ;;  %v2938_v9 = vmul.f32 -100000.0, %v929_v28 }
 0x253   : > { %v3325_v59 = vpop.eup %3324  ;;  %v931_v17 = vsub.f32 %v5615_v44, %v4773_v54  ;;  %v2939_v40 = vmul.f32 -100000.0, %v930_v43 }
 0x254   : > { %v2624_v62 = vadd.f32 %v2623_v11, %v2491_v34  ;;  %v2186_v52 = vpop.permute.xlu1 %2185  ;;  %v4880_v14 = vpop.eup %3326  ;;  %v2567_v11 = vadd.f32 %v2566_v7, %v2439_v6  ;;  %v2440_v34 = vmul.f32 %v4598_v45, %v4779_v39  ;;  %3342 = vrcp.f32 %v1559_v56 }
 0x255   : > { %v2182_v41 = vpop.permute.xlu0 %2181  ;;  %v2494_v21 = vmul.f32 %v3311_v61, %v2186_v52  ;;  %v4886_v2 = vpop.eup %3328  ;;  %v2940_v35 = vmul.f32 -100000.0, %v931_v17  ;;  %3344 = vrcp.f32 %v1562_v10  ;;  %v1401_v7 = vmul.f32 1.442695, %v2938_v9 }
 0x256   : > { %v2625_v57 = vadd.f32 %v2624_v62, %v2492_v27  ;;  %v2493_v53 = vmul.f32 %v4843_v46, %v2182_v41  ;;  %2347 = vbcast.lane.b32.xlu1 %v4677_v42, 360  ;;  %2079 = vbcast.lane.b32.xlu0 %v4681_v12, 360  ;;  %v2941_v46 = vmul.f32 -100000.0, %v932_v36  ;;  %v3331_v62 = vpop.eup %3330  ;;  %v1883_v45 = vcombine.high %v4653_v13, %v4653_v13 }
 0x257   : > { %v3333_v61 = vpop.eup %3332  ;;  %3346 = vpow2.f32 %v1397_v23  ;;  %v2568_v39 = vadd.f32 %v2567_v11, %v2440_v34  ;;  %v1561_v15 = vadd.f32 1.0, %v3325_v59  ;;  %v933_v52 = vsub.f32 %v4408_v3, %v4773_v54 }
 0x258   : > { %v2626_v58 = vadd.f32 %v2625_v57, %v2493_v53  ;;  %v2194_v27 = vpop.permute.xlu1 %2193  ;;  %v4894_v43 = vpop.eup %3334  ;;  %v1407_v36 = vmul.f32 1.442695, %v2941_v46  ;;  %v1405_v6 = vmul.f32 1.442695, %v2940_v35  ;;  %v2441_v13 = vmul.f32 %v4594_v55, %v4777_v4 }
 0x259   : > { %v2190_v49 = vpop.permute.xlu0 %2189  ;;  %v2496_v33 = vmul.f32 %v4861_v32, %v2194_v27  ;;  %v3337_v17 = vpop.eup %3336  ;;  %3348 = vpow2.f32 %v1401_v7  ;;  %v5616_v32 = vld [vmem:[#allocation65_spill] sm:$0xff]  ;;  %v4906_v3 = vrot.slane %v1883_v45, %v4181_v22  ;;  %v4909_v59 = vrot.slane %v1883_v45, %v4148_v8 }
 0x25a   : > { %v2627_v0 = vadd.f32 %v2626_v58, %v2494_v21  ;;  %v2495_v28 = vmul.f32 %v4849_v47, %v2190_v49  ;;  %2351 = vbcast.lane.b32.xlu1 %v4677_v42, 368  ;;  %2083 = vbcast.lane.b32.xlu0 %v4681_v12, 368  ;;  %v1403_v47 = vmul.f32 1.442695, %v2939_v40  ;;  %v934_v10 = vsub.f32 %v5616_v32, %v4773_v54  ;;  %v3339_v9 = vpop.eup %3338 }
 0x25b   : > { %v2569_v23 = vadd.f32 %v2568_v39, %v2441_v13  ;;  %v2442_v55 = vmul.f32 %v4616_v20, %v4795_v5  ;;  %3350 = vrcp.f32 %v1561_v15  ;;  %v1563_v11 = vadd.f32 1.0, %v3333_v61  ;;  %v3341_v58 = vpop.eup %3340  ;;  %v5617_v39 = vld [vmem:[#allocation20_spill] sm:$0xff] }
 0x25c   : > { %v2628_v56 = vadd.f32 %v2627_v0, %v2495_v28  ;;  %v2202_v41 = vpop.permute.xlu1 %2201  ;;  %v2942_v34 = vmul.f32 -100000.0, %v933_v52  ;;  %3352 = vpow2.f32 %v1403_v47  ;;  %v1564_v8 = vadd.f32 1.0, %v4880_v14 }
 0x25d   : > { %v2198_v44 = vpop.permute.xlu0 %2197  ;;  %v2498_v4 = vmul.f32 %v4869_v26, %v2202_v41  ;;  %3354 = vpow2.f32 %v1407_v36  ;;  %v2943_v40 = vmul.f32 -100000.0, %v934_v10  ;;  %v2570_v5 = vadd.f32 %v2569_v23, %v2442_v55 }
 0x25e   : > { %v2629_v57 = vadd.f32 %v2628_v56, %v2496_v33  ;;  %v2497_v53 = vmul.f32 %v4857_v50, %v2198_v44  ;;  %2355 = vbcast.lane.b32.xlu1 %v4677_v42, 376  ;;  %2087 = vbcast.lane.b32.xlu0 %v4681_v12, 376  ;;  %v3343_v20 = vpop.eup %3342  ;;  %3356 = vpow2.f32 %v1405_v6  ;;  %v1565_v49 = vadd.f32 1.0, %v3339_v9 }
 0x25f   : > { %v3345_v27 = vpop.eup %3344  ;;  %3358 = vrcp.f32 %v1563_v11  ;;  %v1409_v35 = vmul.f32 1.442695, %v2942_v34  ;;  %v935_v14 = vsub.f32 %v4416_v18, %v4773_v54  ;;  %v2443_v7 = vmul.f32 %v4608_v31, %v4793_v29 }
 0x260   : > { %v2630_v50 = vadd.f32 %v2629_v57, %v2497_v53  ;;  %v2210_v42 = vpop.permute.xlu1 %2209  ;;  %3360 = vrcp.f32 %v1564_v8  ;;  %v1566_v33 = vadd.f32 1.0, %v3337_v17  ;;  %v1411_v56 = vmul.f32 1.442695, %v2943_v40 }
 0x261   : > { %v2206_v21 = vpop.permute.xlu0 %2205  ;;  %v2500_v26 = vmul.f32 %v3331_v62, %v2210_v42  ;;  %v3347_v28 = vpop.eup %3346  ;;  %v886_v62 = vsub.f32 %v5617_v39, %v4773_v54  ;;  %v2571_v15 = vadd.f32 %v2570_v5, %v2443_v7  ;;  %v2444_v18 = vmul.f32 %v4632_v30, %v4805_v60 }
 0x262   : > { %v2631_v12 = vadd.f32 %v2630_v50, %v2498_v4  ;;  %v2499_v22 = vmul.f32 %v4867_v48, %v2206_v21  ;;  %2362 = vbcast.lane.b32.xlu1 %v4906_v3, 256  ;;  %2094 = vbcast.lane.b32.xlu0 %v4909_v59, 256  ;;  %3362 = vrcp.f32 %v1565_v49  ;;  %v1567_v29 = vadd.f32 1.0, %v3347_v28  ;;  %v5619_v4 = vld [vmem:[#allocation21_spill] sm:$0xff] }
 0x263   : > { %v3349_v31 = vpop.eup %3348  ;;  %3364 = vpow2.f32 %v1409_v35  ;;  %v2944_v17 = vmul.f32 -100000.0, %v935_v14  ;;  %v2895_v53 = vmul.f32 -100000.0, %v886_v62  ;;  %v1568_v32 = vadd.f32 1.0, %v3341_v58 }
 0x264   : > { %v2632_v46 = vadd.f32 %v2631_v12, %v2499_v22  ;;  %v2218_v0 = vpop.permute.xlu1 %2217  ;;  %3366 = vrcp.f32 %v1566_v33  ;;  %v2572_v60 = vadd.f32 %v2571_v15, %v2444_v18  ;;  %v885_v50 = vsub.f32 %v5619_v4, %v4773_v54 }
 0x265   : > { %v2214_v48 = vpop.permute.xlu0 %2213  ;;  %v2502_v47 = vmul.f32 %v3343_v20, %v2218_v0  ;;  %v3351_v57 = vpop.eup %3350  ;;  %3368 = vpow2.f32 %v1411_v56  ;;  %v1569_v9 = vadd.f32 1.0, %v3349_v31  ;;  %v1413_v21 = vmul.f32 1.442695, %v2944_v17  ;;  %v5620_v20 = vld [vmem:[#allocation22_spill] sm:$0xff] }
 0x266   : > { %v2633_v45 = vadd.f32 %v2632_v46, %v2500_v26  ;;  %v2501_v61 = vmul.f32 %v4886_v2, %v2214_v48  ;;  %2366 = vbcast.lane.b32.xlu1 %v4906_v3, 264  ;;  %2098 = vbcast.lane.b32.xlu0 %v4909_v59, 264  ;;  %v5618_v2 = vld [vmem:[#allocation66_spill] sm:$0xff]  ;;  %v3353_v30 = vpop.eup %3352  ;;  %3370 = vrcp.f32 %v1567_v29  ;;  %v2445_v12 = vmul.f32 %v4628_v51, %v4803_v24 }
 0x267   : > { %v936_v52 = vsub.f32 %v5618_v2, %v4773_v54  ;;  %v3355_v55 = vpop.eup %3354  ;;  %v1315_v40 = vmul.f32 1.442695, %v2895_v53  ;;  %v888_v5 = vsub.f32 %v5620_v20, %v4773_v54  ;;  %3372 = vrcp.f32 %v1568_v32  ;;  %v5622_v53 = vld [vmem:[#allocation24_spill] sm:$0xff]  ;;  %v5625_v20 = vld [vmem:[#allocation46_spill] sm:$0xff] }
 0x268   : > { %v2634_v36 = vadd.f32 %v2633_v45, %v2501_v61  ;;  %v2229_v41 = vpop.permute.xlu1 %2228  ;;  %v3357_v42 = vpop.eup %3356  ;;  %v1570_v26 = vadd.f32 1.0, %v3353_v30  ;;  %v2573_v46 = vadd.f32 %v2572_v60, %v2445_v12  ;;  %v2446_v49 = vmul.f32 %v4636_v38, %v4821_v37 }
 0x269   : > { %v2222_v44 = vpop.permute.xlu0 %2221  ;;  %v2504_v10 = vmul.f32 %v3351_v57, %v2229_v41  ;;  %v3359_v8 = vpop.eup %3358  ;;  %v2894_v24 = vmul.f32 -100000.0, %v885_v50  ;;  %3374 = vrcp.f32 %v1569_v9  ;;  %v1571_v28 = vadd.f32 1.0, %v3357_v42 }
 0x26a   : > { %v2635_v6 = vadd.f32 %v2634_v36, %v2502_v47  ;;  %v2503_v13 = vmul.f32 %v4894_v43, %v2222_v44  ;;  %2370 = vbcast.lane.b32.xlu1 %v4906_v3, 272  ;;  %2102 = vbcast.lane.b32.xlu0 %v4909_v59, 272  ;;  %v2945_v43 = vmul.f32 -100000.0, %v936_v52  ;;  %v3361_v51 = vpop.eup %3360  ;;  %3376 = vpow2.f32 %v1413_v21 }
 0x26b   : > { %v2897_v33 = vmul.f32 -100000.0, %v888_v5  ;;  %3378 = vrcp.f32 %v1570_v26  ;;  %v1572_v56 = vadd.f32 1.0, %v3355_v55  ;;  %v2574_v37 = vadd.f32 %v2573_v46, %v2446_v49  ;;  %v5623_v55 = vld [vmem:[#allocation25_spill] sm:$0xff]  ;;  %v5626_v46 = vld [vmem:[#allocation26_spill] sm:$0xff] }
 0x26c   : > { %v2636_v23 = vadd.f32 %v2635_v6, %v2503_v13  ;;  %v2237_v11 = vpop.permute.xlu1 %2236  ;;  %v1415_v45 = vmul.f32 1.442695, %v2945_v43  ;;  %v3363_v62 = vpop.eup %3362  ;;  %3380 = vpow2.f32 %v1315_v40  ;;  %v1519_v36 = vadd.f32 1.0, %v4716_v16  ;;  %v5624_v43 = vld [vmem:[#allocation45_spill] sm:$0xff] }
 0x26d   : > { %v2233_v34 = vpop.permute.xlu0 %2232  ;;  %v2506_v35 = vmul.f32 %v3359_v8, %v2237_v11  ;;  %v3365_v38 = vpop.eup %3364  ;;  %v1313_v31 = vmul.f32 1.442695, %v2894_v24  ;;  %3382 = vrcp.f32 %v1571_v28  ;;  %v2447_v44 = vmul.f32 %v4634_v19, %v4819_v1  ;;  %v5627_v24 = vld [vmem:[#allocation53_spill] sm:$0xff] }
 0x26e   : > { %v2637_v22 = vadd.f32 %v2636_v23, %v2504_v10  ;;  %v2505_v58 = vmul.f32 %v3345_v27, %v2233_v34  ;;  %2374 = vbcast.lane.b32.xlu1 %v4906_v3, 280  ;;  %2106 = vbcast.lane.b32.xlu0 %v4909_v59, 280  ;;  %v5621_v27 = vld [vmem:[#allocation23_spill] sm:$0xff]  ;;  %v3367_v47 = vpop.eup %3366  ;;  %3384 = vpow2.f32 %v1415_v45  ;;  %v1319_v57 = vmul.f32 1.442695, %v2897_v33 }
 0x26f   : > { %v887_v48 = vsub.f32 %v5621_v27, %v4773_v54  ;;  %v3369_v41 = vpop.eup %3368  ;;  %v890_v32 = vsub.f32 %v5622_v53, %v4773_v54  ;;  %3386 = vrcp.f32 %v1572_v56  ;;  %v1573_v30 = vadd.f32 1.0, %v3365_v38  ;;  %v5628_v27 = vld [vmem:[#allocation99_spill] sm:$0xff]  ;;  %v5630_v38 = vld [vmem:[#allocation54_spill] sm:$0xff] }
 0x270   : > { %v2638_v0 = vadd.f32 %v2637_v22, %v2505_v58  ;;  %v2245_v14 = vpop.permute.xlu1 %2244  ;;  %v3371_v13 = vpop.eup %3370  ;;  %v2575_v16 = vadd.f32 %v2574_v37, %v2447_v44  ;;  %v2448_v60 = vmul.f32 %v4655_v63, %v4829_v25  ;;  %3388 = vrcp.f32 %v1519_v36  ;;  %v5631_v37 = vld [vmem:[#allocation101_spill] sm:$0xff] }
 0x271   : > { %v2241_v7 = vpop.permute.xlu0 %2240  ;;  %v2508_v15 = vmul.f32 %v3363_v62, %v2245_v14  ;;  %v2896_v29 = vmul.f32 -100000.0, %v887_v48  ;;  %v3373_v19 = vpop.eup %3372  ;;  %v889_v4 = vsub.f32 %v5623_v55, %v4773_v54  ;;  %v1522_v11 = vadd.f32 1.0, %v5624_v43 }
 0x272   : > { %v2639_v61 = vadd.f32 %v2638_v0, %v2506_v35  ;;  %v2507_v39 = vmul.f32 %v3361_v51, %v2241_v7  ;;  %2378 = vbcast.lane.b32.xlu1 %v4906_v3, 288  ;;  %2110 = vbcast.lane.b32.xlu0 %v4909_v59, 288  ;;  %3390 = vpow2.f32 %v1313_v31  ;;  %v2899_v12 = vmul.f32 -100000.0, %v890_v32  ;;  %v5634_v32 = vld [vmem:[#allocation49_spill] sm:$0xff] }
 0x273   : > { %v1317_v1 = vmul.f32 1.442695, %v2896_v29  ;;  %v3375_v21 = vpop.eup %3374  ;;  %v1574_v22 = vadd.f32 1.0, %v3369_v41  ;;  %3392 = vrcp.f32 %v1573_v30  ;;  %v2576_v25 = vadd.f32 %v2575_v16, %v2448_v60  ;;  %v5632_v41 = vld [vmem:[#allocation28_spill] sm:$0xff] }
 0x274   : > { %v2640_v18 = vadd.f32 %v2639_v61, %v2507_v39  ;;  %v2253_v2 = vpop.permute.xlu1 %2252  ;;  %v3377_v63 = vpop.eup %3376  ;;  %3394 = vpow2.f32 %v1319_v57  ;;  %v1521_v5 = vadd.f32 1.0, %v5625_v20  ;;  %v2898_v26 = vmul.f32 -100000.0, %v889_v4  ;;  %v5629_v61 = vld [vmem:[#allocation27_spill] sm:$0xff] }
 0x275   : > { %v2249_v52 = vpop.permute.xlu0 %2248  ;;  %v2510_v10 = vmul.f32 %v3371_v13, %v2253_v2  ;;  %v3379_v40 = vpop.eup %3378  ;;  %3396 = vpow2.f32 %v1317_v1  ;;  %v892_v49 = vsub.f32 %v5626_v46, %v4773_v54  ;;  %v2449_v48 = vmul.f32 %v5628_v27, %v5627_v24  ;;  %v5633_v13 = vld [vmem:[#allocation100_spill] sm:$0xff]  ;;  %v5639_v24 = vld [vmem:[#allocation31_spill] sm:$0xff] }
 0x276   : > { %v2641_v17 = vadd.f32 %v2640_v18, %v2508_v15  ;;  %v2509_v6 = vmul.f32 %v3367_v47, %v2249_v52  ;;  %2382 = vbcast.lane.b32.xlu1 %v4906_v3, 296  ;;  %2114 = vbcast.lane.b32.xlu0 %v4909_v59, 296  ;;  %v3381_v51 = vpop.eup %3380  ;;  %3398 = vrcp.f32 %v1522_v11  ;;  %v1323_v45 = vmul.f32 1.442695, %v2899_v12 }
 0x277   : > { %v3383_v7 = vpop.eup %3382  ;;  %v891_v39 = vsub.f32 %v5629_v61, %v4773_v54  ;;  %3400 = vrcp.f32 %v1574_v22  ;;  %v1575_v62 = vadd.f32 1.0, %v3377_v63  ;;  %v2577_v56 = vadd.f32 %v2576_v25, %v2449_v48  ;;  %v5637_v63 = vld [vmem:[#allocation103_spill] sm:$0xff] }
 0x278   : > { %v2642_v23 = vadd.f32 %v2641_v17, %v2509_v6  ;;  %v2261_v50 = vpop.permute.xlu1 %2260  ;;  %v3385_v33 = vpop.eup %3384  ;;  %v2450_v15 = vmul.f32 %v5631_v37, %v5630_v38  ;;  %3402 = vrcp.f32 %v1521_v5  ;;  %v1321_v31 = vmul.f32 1.442695, %v2898_v26 }
 0x279   : > { %v2257_v9 = vpop.permute.xlu0 %2256  ;;  %v2512_v58 = vmul.f32 %v3375_v21, %v2261_v50  ;;  %v3387_v36 = vpop.eup %3386  ;;  %v2901_v29 = vmul.f32 -100000.0, %v892_v49  ;;  %v894_v44 = vsub.f32 %v5632_v41, %v4773_v54  ;;  %v1524_v30 = vadd.f32 1.0, %v5634_v32  ;;  %v5636_v50 = vld [vmem:[#allocation50_spill] sm:$0xff] }
 0x27a   : > { %v2643_v34 = vadd.f32 %v2642_v23, %v2510_v10  ;;  %v2511_v42 = vmul.f32 %v3373_v19, %v2257_v9  ;;  %2386 = vbcast.lane.b32.xlu1 %v4906_v3, 304  ;;  %2118 = vbcast.lane.b32.xlu0 %v4909_v59, 304  ;;  %v4976_v53 = vpop.eup %3388  ;;  %v2900_v16 = vmul.f32 -100000.0, %v891_v39  ;;  %v1576_v60 = vadd.f32 1.0, %v3385_v33  ;;  %v5635_v23 = vld [vmem:[#allocation29_spill] sm:$0xff] }
 0x27b   : > { %3404 = vrcp.f32 %v1575_v62  ;;  %v893_v19 = vsub.f32 %v5635_v23, %v4773_v54  ;;  %v2578_v1 = vadd.f32 %v2577_v56, %v2450_v15  ;;  %v1523_v9 = vadd.f32 1.0, %v5636_v50  ;;  %v5641_v56 = vld [vmem:[#allocation32_spill] sm:$0xff] }
 0x27c   : > { %v2644_v8 = vadd.f32 %v2643_v34, %v2511_v42  ;;  %v2269_v35 = vpop.permute.xlu1 %2268  ;;  %v3391_v10 = vpop.eup %3390  ;;  %3406 = vpow2.f32 %v1323_v45  ;;  %v1327_v43 = vmul.f32 1.442695, %v2901_v29  ;;  %v2903_v21 = vmul.f32 -100000.0, %v894_v44  ;;  %v5640_v45 = vld [vmem:[#allocation102_spill] sm:$0xff] }
 0x27d   : > { %v2265_v0 = vpop.permute.xlu0 %2264  ;;  %v2514_v18 = vmul.f32 %v3383_v7, %v2269_v35  ;;  %v3393_v4 = vpop.eup %3392  ;;  %3408 = vpow2.f32 %v1321_v31  ;;  %v2902_v26 = vmul.f32 -100000.0, %v893_v19  ;;  %v895_v27 = vsub.f32 %v5639_v24, %v4773_v54  ;;  %v5642_v31 = vld [vmem:[#allocation33_spill] sm:$0xff]  ;;  %v5643_v44 = vld [vmem:[#allocation34_spill] sm:$0xff] }
 0x27e   : > { %v2645_v28 = vadd.f32 %v2644_v8, %v2512_v58  ;;  %v2513_v14 = vmul.f32 %v3379_v40, %v2265_v0  ;;  %2390 = vbcast.lane.b32.xlu1 %v4906_v3, 312  ;;  %2122 = vbcast.lane.b32.xlu0 %v4909_v59, 312  ;;  %v3395_v42 = vpop.eup %3394  ;;  %v1325_v8 = vmul.f32 1.442695, %v2900_v16  ;;  %v5638_v40 = vld [vmem:[#allocation30_spill] sm:$0xff]  ;;  %3410 = vrcp.f32 %v1576_v60 }
 0x27f   : > { %v3397_v58 = vpop.eup %3396  ;;  %v896_v20 = vsub.f32 %v5638_v40, %v4773_v54  ;;  %3412 = vrcp.f32 %v1524_v30  ;;  %v1526_v0 = vadd.f32 1.0, %v3381_v51  ;;  %v1525_v62 = vadd.f32 1.0, %v3391_v10 }
 0x280   : > { %v2646_v47 = vadd.f32 %v2645_v28, %v2513_v14  ;;  %v2273_v2 = vpop.permute.xlu1 %2272  ;;  %v4989_v5 = vpop.eup %3398  ;;  %3414 = vrcp.f32 %v1523_v9  ;;  %v1331_v14 = vmul.f32 1.442695, %v2903_v21  ;;  %v1329_v51 = vmul.f32 1.442695, %v2902_v26  ;;  %v5646_v21 = vld [vmem:[#allocation40_spill] sm:$0xff]  ;;  %v5648_v26 = vld [vmem:[#allocation37_spill] sm:$0xff] }
 0x281   : > { %v2005_v52 = vpop.permute.xlu0 %2004  ;;  %v2515_v6 = vmul.f32 %v3387_v36, %v2273_v2  ;;  %v3401_v35 = vpop.eup %3400  ;;  %3416 = vpow2.f32 %v1327_v43  ;;  %v2905_v33 = vmul.f32 -100000.0, %v896_v20  ;;  %v898_v38 = vsub.f32 %v5641_v56, %v4773_v54  ;;  %v5019_v20 = vld [vmem:[%s4121_s7] ss:$0 sm:$0xff] }
 0x282   : > { %v2647_v17 = vadd.f32 %v2646_v47, %v2514_v18  ;;  %v2451_v57 = vmul.f32 %v5633_v13, %v2005_v52  ;;  %2394 = vbcast.lane.b32.xlu1 %v4906_v3, 320  ;;  %2126 = vbcast.lane.b32.xlu0 %v4909_v59, 320  ;;  %v4994_v39 = vpop.eup %3402  ;;  %3418 = vpow2.f32 %v1325_v8  ;;  %v1528_v47 = vadd.f32 1.0, %v3395_v42  ;;  %v5644_v13 = vld [vmem:[#allocation41_spill] sm:$0xff] }
 0x283   : > { %3420 = vrcp.f32 %v1526_v0  ;;  %v2904_v36 = vmul.f32 -100000.0, %v895_v27  ;;  %v897_v29 = vsub.f32 %v5642_v31, %v4773_v54  ;;  %v1335_v30 = vmul.f32 1.442695, %v2905_v33 }
 0x284   : > { %v2648_v55 = vadd.f32 %v2647_v17, %v2515_v6  ;;  %v2277_v11 = vpop.permute.xlu1 %2276  ;;  %v2579_v12 = vadd.f32 %v2578_v1, %v2451_v57  ;;  %3422 = vpow2.f32 %v1331_v14  ;;  %v900_v17 = vsub.f32 %v5643_v44, %v4773_v54 }
 0x285   : > { %v2009_v34 = vpop.permute.xlu0 %2008  ;;  %v2516_v22 = vmul.f32 %v3393_v4, %v2277_v11  ;;  %v3405_v18 = vpop.eup %3404  ;;  %3424 = vrcp.f32 %v1525_v62  ;;  %v1527_v16 = vadd.f32 1.0, %v3397_v58  ;;  %v2907_v60 = vmul.f32 -100000.0, %v898_v38  ;;  %v5645_v4 = vld [vmem:[#allocation35_spill] sm:$0xff] }
 0x286   : > { %v2452_v25 = vmul.f32 %v5637_v63, %v2009_v34  ;;  %2398 = vbcast.lane.b32.xlu1 %v4906_v3, 328  ;;  %2130 = vbcast.lane.b32.xlu0 %v4909_v59, 328  ;;  %v3407_v41 = vpop.eup %3406  ;;  %3426 = vrcp.f32 %v1528_v47  ;;  %v1333_v1 = vmul.f32 1.442695, %v2904_v36  ;;  %v899_v50 = vsub.f32 %v5645_v4, %v4773_v54 }
 0x287   : > { %v2649_v46 = vadd.f32 %v2648_v55, %v2516_v22  ;;  %v3409_v32 = vpop.eup %3408  ;;  %v2906_v55 = vmul.f32 -100000.0, %v897_v29  ;;  %3428 = vpow2.f32 %v1329_v51  ;;  %v2909_v34 = vmul.f32 -100000.0, %v900_v17 }
 0x288   : > { %v2580_v49 = vadd.f32 %v2579_v12, %v2452_v25  ;;  %v2281_v48 = vpop.permute.xlu1 %2280  ;;  %v3411_v19 = vpop.eup %3410  ;;  %v1530_v63 = vadd.f32 1.0, %v3407_v41  ;;  %3430 = vpow2.f32 %v1335_v30  ;;  %v5647_v25 = vld [vmem:[#allocation36_spill] sm:$0xff]  ;;  %v1339_v40 = vmul.f32 1.442695, %v2907_v60 }
 0x289   : > { %v2013_v28 = vpop.permute.xlu0 %2012  ;;  %v2517_v7 = vmul.f32 %v3401_v35, %v2281_v48  ;;  %v5009_v11 = vpop.eup %3412  ;;  %v902_v58 = vsub.f32 %v5647_v25, %v4773_v54  ;;  %3432 = vrcp.f32 %v1527_v16  ;;  %v1337_v24 = vmul.f32 1.442695, %v2906_v55  ;;  %v5649_v54 = vld [vmem:[#allocation39_spill] sm:$0xff] }
 0x28a   : > { %v2453_v61 = vmul.f32 %v5640_v45, %v2013_v28  ;;  %2402 = vbcast.lane.b32.xlu1 %v4906_v3, 336  ;;  %2134 = vbcast.lane.b32.xlu0 %v4909_v59, 336  ;;  %v5012_v22 = vpop.eup %3414  ;;  %v2908_v27 = vmul.f32 -100000.0, %v899_v50  ;;  %v903_v48 = vsub.f32 %v5649_v54, %v5019_v20  ;;  %3434 = vpow2.f32 %v1333_v1 }
 0x28b   : > { %v2650_v37 = vadd.f32 %v2649_v46, %v2517_v7  ;;  %v3417_v8 = vpop.eup %3416  ;;  %v901_v46 = vsub.f32 %v5648_v26, %v5019_v20  ;;  %v1343_v7 = vmul.f32 1.442695, %v2909_v34  ;;  %3436 = vrcp.f32 %v1530_v63  ;;  %v5659_v26 = vld [vmem:[#allocation71_spill] sm:$0xff] }
 0x28c   : > { %v2581_v15 = vadd.f32 %v2580_v49, %v2453_v61  ;;  %v2285_v2 = vpop.permute.xlu1 %2284  ;;  %v3419_v0 = vpop.eup %3418  ;;  %v1529_v61 = vadd.f32 1.0, %v3409_v32  ;;  %v2911_v62 = vmul.f32 -100000.0, %v902_v58  ;;  %v1532_v51 = vadd.f32 1.0, %v3417_v8 }
 0x28d   : > { %v2017_v52 = vpop.permute.xlu0 %2016  ;;  %v2518_v6 = vmul.f32 %v3405_v18, %v2285_v2  ;;  %v5033_v45 = vpop.eup %3420  ;;  %3438 = vpow2.f32 %v1339_v40  ;;  %v2910_v56 = vmul.f32 -100000.0, %v901_v46  ;;  %v2912_v47 = vmul.f32 -100000.0, %v903_v48  ;;  %v5652_v2 = vld [vmem:[#allocation67_spill] sm:$0xff] }
 0x28e   : > { %v2454_v57 = vmul.f32 %v5644_v13, %v2017_v52  ;;  %2406 = vbcast.lane.b32.xlu1 %v4906_v3, 344  ;;  %2138 = vbcast.lane.b32.xlu0 %v4909_v59, 344  ;;  %5650 = vst [vmem:[#allocation55_spill] sm:$0xff] %v5033_v45  ;;  %v3423_v33 = vpop.eup %3422  ;;  %3440 = vpow2.f32 %v1337_v24  ;;  %v1531_v29 = vadd.f32 1.0, %v3419_v0  ;;  %v938_v52 = vsub.f32 %v5652_v2, %v5019_v20  ;;  %v5654_v13 = vld [vmem:[#allocation68_spill] sm:$0xff] }
 0x28f   : > { %v2651_v10 = vadd.f32 %v2650_v37, %v2518_v6  ;;  %v5037_v38 = vpop.eup %3424  ;;  %v1341_v37 = vmul.f32 1.442695, %v2908_v27  ;;  %3442 = vpow2.f32 %v1343_v7  ;;  %v1347_v44 = vmul.f32 1.442695, %v2911_v62 }
 0x290   : > { %v2582_v23 = vadd.f32 %v2581_v15, %v2454_v57  ;;  %v2289_v9 = vpop.permute.xlu1 %2288  ;;  %v5651_v15 = vld [vmem:[#allocation38_spill] sm:$0xff]  ;;  %v5047_v41 = vpop.eup %3426  ;;  %3444 = vrcp.f32 %v1529_v61  ;;  %v1345_v6 = vmul.f32 1.442695, %v2910_v56  ;;  %v937_v57 = vsub.f32 %v5654_v13, %v5019_v20 }
 0x291   : > { %v2021_v43 = vpop.permute.xlu0 %2020  ;;  %v2519_v42 = vmul.f32 %v3411_v19, %v2289_v9  ;;  %v904_v18 = vsub.f32 %v5651_v15, %v5019_v20  ;;  %5653 = vst [vmem:[#allocation56_spill] sm:$0xff] %v5047_v41  ;;  %v3429_v17 = vpop.eup %3428  ;;  %3446 = vrcp.f32 %v1532_v51  ;;  %v1349_v16 = vmul.f32 1.442695, %v2912_v47  ;;  %v5665_v13 = vld [vmem:[#allocation74_spill] sm:$0xff] }
 0x292   : > { %v2455_v12 = vmul.f32 %v5646_v21, %v2021_v43  ;;  %2410 = vbcast.lane.b32.xlu1 %v4906_v3, 352  ;;  %2142 = vbcast.lane.b32.xlu0 %v4909_v59, 352  ;;  %v3431_v32 = vpop.eup %3430  ;;  %3448 = vpow2.f32 %v1341_v37  ;;  %v2947_v19 = vmul.f32 -100000.0, %v938_v52  ;;  %v1533_v55 = vadd.f32 1.0, %v3429_v17  ;;  %v5656_v43 = vld [vmem:[#allocation69_spill] sm:$0xff] }
 0x293   : > { %v5023_v49 = vadd.f32 %v2651_v10, %v2519_v42  ;;  %v2913_v30 = vmul.f32 -100000.0, %v904_v18  ;;  %3450 = vrcp.f32 %v1531_v29  ;;  %v5057_v1 = vpop.eup %3432  ;;  %v1536_v50 = vadd.f32 1.0, %v3431_v32  ;;  %v5662_v18 = vld [vmem:[#allocation72_spill] sm:$0xff]  ;;  %v5664_v52 = vld [vmem:[#allocation73_spill] sm:$0xff] }
 0x294   : > { %v5025_v35 = vadd.f32 %v2582_v23, %v2455_v12  ;;  %v5029_v28 = vpop.permute.xlu1 %2295  ;;  %v1534_v23 = vadd.f32 1.0, %v3423_v33  ;;  %5655 = vst [vmem:[#allocation57_spill] sm:$0xff] %v5057_v1  ;;  %3452 = vpow2.f32 %v1347_v44  ;;  %v3435_v4 = vpop.eup %3434  ;;  %v2946_v9 = vmul.f32 -100000.0, %v937_v57  ;;  %v5658_v12 = vld [vmem:[#allocation70_spill] sm:$0xff] }
 0x295   : > { %v5031_v14 = vpop.permute.xlu0 %2027  ;;  %3454 = vpow2.f32 %v1345_v6  ;;  %v940_v34 = vsub.f32 %v5656_v43, %v5019_v20  ;;  %v5063_v42 = vpop.eup %3436  ;;  %v1351_v21 = vmul.f32 1.442695, %v2913_v30  ;;  %v939_v63 = vsub.f32 %v5658_v12, %v5019_v20  ;;  %v5668_v12 = vld [vmem:[#allocation76_spill] sm:$0xff] }
 0x296   : > { %2414 = vbcast.lane.b32.xlu1 %v4906_v3, 360  ;;  %2146 = vbcast.lane.b32.xlu0 %v4909_v59, 360  ;;  %5657 = vst [vmem:[#allocation58_spill] sm:$0xff] %v5063_v42  ;;  %3456 = vpow2.f32 %v1349_v16  ;;  %v1535_v40 = vadd.f32 1.0, %v3435_v4  ;;  %v942_v46 = vsub.f32 %v5659_v26, %v5019_v20  ;;  %v1417_v24 = vmul.f32 1.442695, %v2946_v9 }
 0x297   : > { %3458 = vrcp.f32 %v1534_v23  ;;  %v2949_v27 = vmul.f32 -100000.0, %v940_v34  ;;  %v2948_v7 = vmul.f32 -100000.0, %v939_v63  ;;  %v941_v47 = vsub.f32 %v5662_v18, %v5019_v20 }
 0x298   : > { %v5041_v36 = vpop.permute.xlu1 %2299  ;;  %3460 = vrcp.f32 %v1533_v55  ;;  %v2951_v15 = vmul.f32 -100000.0, %v942_v46  ;;  %v944_v44 = vsub.f32 %v5664_v52, %v5019_v20  ;;  %v943_v57 = vsub.f32 %v5665_v13, %v5019_v20 }
 0x299   : > { %v5043_v31 = vpop.permute.xlu0 %2031  ;;  %3462 = vrcp.f32 %v1536_v50  ;;  %v1423_v2 = vmul.f32 1.442695, %v2949_v27  ;;  %v1421_v6 = vmul.f32 1.442695, %v2948_v7  ;;  %v2950_v9 = vmul.f32 -100000.0, %v941_v47  ;;  %v5671_v27 = vld [vmem:[#allocation77_spill] sm:$0xff] }
 0x29a   : > { %2418 = vbcast.lane.b32.xlu1 %v4906_v3, 368  ;;  %2150 = vbcast.lane.b32.xlu0 %v4909_v59, 368  ;;  %3464 = vpow2.f32 %v1351_v21  ;;  %v1427_v50 = vmul.f32 1.442695, %v2951_v15  ;;  %v2953_v21 = vmul.f32 -100000.0, %v944_v44  ;;  %v945_v63 = vsub.f32 %v5668_v12, %v5019_v20 }
 0x29c   : > { %v5053_v60 = vpop.permute.xlu1 %2303  ;;  %v1431_v18 = vmul.f32 1.442695, %v2953_v21  ;;  %v2954_v47 = vmul.f32 -100000.0, %v945_v63 }
 0x29d   : > { %v5055_v10 = vpop.permute.xlu0 %2035 }
 0x29e   : > { %2422 = vbcast.lane.b32.xlu1 %v4906_v3, 376  ;;  %2154 = vbcast.lane.b32.xlu0 %v4909_v59, 376  ;;  %v3439_v3 = vpop.eup %3438  ;;  %v1419_v59 = vmul.f32 1.442695, %v2947_v19  ;;  %v5666_v19 = vld [vmem:[#allocation75_spill] sm:$0xff] }
 0x29f   : > { %v3441_v8 = vpop.eup %3440  ;;  %v1538_v48 = vadd.f32 1.0, %v3439_v3  ;;  %v946_v55 = vsub.f32 %v5666_v19, %v5019_v20  ;;  %v1433_v21 = vmul.f32 1.442695, %v2954_v47 }
 0x2a0   : > { %v5067_v25 = vpop.permute.xlu1 %2307  ;;  %v3443_v0 = vpop.eup %3442  ;;  %v1537_v51 = vadd.f32 1.0, %v3441_v8  ;;  %3466 = vpow2.f32 %v1419_v59  ;;  %v2952_v8 = vmul.f32 -100000.0, %v943_v57 }
 0x2a1   : > { %v5069_v58 = vpop.permute.xlu0 %2039  ;;  %v5073_v54 = vpop.eup %3444  ;;  %3468 = vrcp.f32 %v1535_v40  ;;  %v1540_v37 = vadd.f32 1.0, %v3443_v0 }
 0x2a2   : > { %5660 = vst [vmem:[#allocation59_spill] sm:$0xff] %v5073_v54  ;;  %v5079_v33 = vpop.eup %3446  ;;  %3470 = vpow2.f32 %v1417_v24  ;;  %v2955_v24 = vmul.f32 -100000.0, %v946_v55 }
 0x2a3   : > { %5661 = vst [vmem:[#allocation60_spill] sm:$0xff] %v5079_v33  ;;  %v3449_v56 = vpop.eup %3448  ;;  %3472 = vrcp.f32 %v1538_v48  ;;  %v948_v48 = vsub.f32 %v5671_v27, %v5019_v20 }
 0x2a4   : > { %v5075_v61 = vpop.permute.xlu1 %2311  ;;  %v5083_v29 = vpop.eup %3450  ;;  %3474 = vrcp.f32 %v1537_v51  ;;  %v1539_v23 = vadd.f32 1.0, %v3449_v56  ;;  %v1425_v51 = vmul.f32 1.442695, %v2950_v9  ;;  %v5673_v56 = vld [vmem:[#allocation78_spill] sm:$0xff] }
 0x2a5   : > { %v5077_v62 = vpop.permute.xlu0 %2043  ;;  %5663 = vst [vmem:[#allocation62_spill] sm:$0xff] %v5083_v29  ;;  %v3453_v17 = vpop.eup %3452  ;;  %3476 = vrcp.f32 %v1540_v37  ;;  %v947_v37 = vsub.f32 %v5673_v56, %v5019_v20  ;;  %v5681_v56 = vld [vmem:[#allocation82_spill] sm:$0xff]  ;;  %v5692_v29 = vld [vmem:[#allocation89_spill] sm:$0xff] }
 0x2a6   : > { %v3455_v16 = vpop.eup %3454  ;;  %v1542_v34 = vadd.f32 1.0, %v3453_v17  ;;  %3478 = vpow2.f32 %v1423_v2  ;;  %v5674_v2 = vld [vmem:[#allocation79_spill] sm:$0xff]  ;;  %v1429_v17 = vmul.f32 1.442695, %v2952_v8  ;;  %v5680_v8 = vld [vmem:[#allocation81_spill] sm:$0xff]  ;;  %v960_v42 = vsub.f32 %v5692_v29, %v5019_v20 }
 0x2a7   : > { %v3457_v4 = vpop.eup %3456  ;;  %v1541_v59 = vadd.f32 1.0, %v3455_v16  ;;  %3480 = vpow2.f32 %v1421_v6  ;;  %v950_v52 = vsub.f32 %v5674_v2, %v5019_v20  ;;  %v1435_v16 = vmul.f32 1.442695, %v2955_v24  ;;  %v5682_v2 = vld [vmem:[#allocation83_spill] sm:$0xff] }
 0x2a8   : > { %v5089_v32 = vpop.permute.xlu1 %2315  ;;  %v5095_v43 = vpop.eup %3458  ;;  %3482 = vrcp.f32 %v1539_v23  ;;  %v1543_v0 = vadd.f32 1.0, %v3457_v4  ;;  %v2957_v23 = vmul.f32 -100000.0, %v948_v48  ;;  %v2956_v4 = vmul.f32 -100000.0, %v947_v37 }
 0x2a9   : > { %v5091_v30 = vpop.permute.xlu0 %2047  ;;  %5667 = vst [vmem:[#allocation61_spill] sm:$0xff] %v5095_v43  ;;  %v5099_v3 = vpop.eup %3460  ;;  %3484 = vpow2.f32 %v1427_v50  ;;  %v5677_v50 = vld [vmem:[#allocation80_spill] sm:$0xff]  ;;  %v2959_v12 = vmul.f32 -100000.0, %v950_v52  ;;  %v951_v37 = vsub.f32 %v5681_v56, %v5019_v20  ;;  %v954_v52 = vsub.f32 %v5682_v2, %v5019_v20 }
 0x2aa   : > { %5669 = vst [vmem:[#allocation63_spill] sm:$0xff] %v5099_v3  ;;  %v5105_v46 = vpop.eup %3462  ;;  %3486 = vrcp.f32 %v1542_v34  ;;  %v949_v9 = vsub.f32 %v5677_v50, %v5019_v20 }
 0x2ab   : > { %5670 = vst [vmem:[#allocation64_spill] sm:$0xff] %v5105_v46  ;;  %v5109_v7 = vpop.eup %3464  ;;  %3488 = vrcp.f32 %v1541_v59 }
 0x2ac   : > { %v5101_v40 = vpop.permute.xlu1 %2319  ;;  %5672 = vst [vmem:[#allocation65_spill] sm:$0xff] %v5109_v7  ;;  %v3467_v15 = vpop.eup %3466  ;;  %3490 = vrcp.f32 %v1543_v0  ;;  %v952_v0 = vsub.f32 %v5680_v8, %v5019_v20  ;;  %v2958_v47 = vmul.f32 -100000.0, %v949_v9 }
 0x2ad   : > { %v5103_v26 = vpop.permute.xlu0 %2051  ;;  %v5115_v44 = vpop.eup %3468  ;;  %v1578_v55 = vadd.f32 1.0, %v3467_v15  ;;  %3492 = vpow2.f32 %v1425_v51  ;;  %v1439_v51 = vmul.f32 1.442695, %v2957_v23 }
 0x2ae   : > { %5675 = vst [vmem:[#allocation20_spill] sm:$0xff] %v5115_v44  ;;  %v3471_v57 = vpop.eup %3470  ;;  %3494 = vpow2.f32 %v1431_v18  ;;  %v1437_v18 = vmul.f32 1.442695, %v2956_v4  ;;  %v2960_v4 = vmul.f32 -100000.0, %v951_v37  ;;  %v1441_v2 = vmul.f32 1.442695, %v2958_v47 }
 0x2af   : > { %v5121_v19 = vpop.eup %3472  ;;  %v1577_v59 = vadd.f32 1.0, %v3471_v57  ;;  %3496 = vpow2.f32 %v1429_v17  ;;  %v1443_v57 = vmul.f32 1.442695, %v2959_v12 }
 0x2b0   : > { %v5117_v6 = vpop.permute.xlu1 %2323  ;;  %5676 = vst [vmem:[#allocation66_spill] sm:$0xff] %v5121_v19  ;;  %v5125_v34 = vpop.eup %3474  ;;  %3498 = vpow2.f32 %v1435_v16  ;;  %v1445_v37 = vmul.f32 1.442695, %v2960_v4 }
 0x2b1   : > { %v5119_v13 = vpop.permute.xlu0 %2055  ;;  %5678 = vst [vmem:[#allocation21_spill] sm:$0xff] %v5125_v34  ;;  %v5127_v63 = vpop.eup %3476  ;;  %3500 = vrcp.f32 %v1578_v55 }
 0x2b2   : > { %5679 = vst [vmem:[#allocation22_spill] sm:$0xff] %v5127_v63  ;;  %v3479_v48 = vpop.eup %3478  ;;  %3502 = vpow2.f32 %v1433_v21  ;;  %v2961_v63 = vmul.f32 -100000.0, %v952_v0 }
 0x2b3   : > { %v3481_v15 = vpop.eup %3480  ;;  %3504 = vrcp.f32 %v1577_v59  ;;  %v1580_v8 = vadd.f32 1.0, %v3479_v48  ;;  %v5687_v59 = vld [vmem:[#allocation84_spill] sm:$0xff] }
 0x2b4   : > { %v5131_v24 = vpop.permute.xlu1 %2327  ;;  %v5139_v17 = vpop.eup %3482  ;;  %v1579_v55 = vadd.f32 1.0, %v3481_v15  ;;  %3506 = vpow2.f32 %v1439_v51  ;;  %v953_v0 = vsub.f32 %v5687_v59, %v5019_v20  ;;  %v1447_v19 = vmul.f32 1.442695, %v2961_v63 }
 0x2b5   : > { %v5133_v27 = vpop.permute.xlu0 %2059  ;;  %5683 = vst [vmem:[#allocation23_spill] sm:$0xff] %v5139_v17  ;;  %v3485_v50 = vpop.eup %3484  ;;  %3508 = vpow2.f32 %v1437_v18  ;;  %v2963_v17 = vmul.f32 -100000.0, %v954_v52  ;;  %v5688_v18 = vld [vmem:[#allocation85_spill] sm:$0xff] }
 0x2b6   : > { %v5145_v56 = vpop.eup %3486  ;;  %v1582_v12 = vadd.f32 1.0, %v3485_v50  ;;  %3510 = vpow2.f32 %v1443_v57  ;;  %v956_v47 = vsub.f32 %v5688_v18, %v5019_v20  ;;  %v2962_v59 = vmul.f32 -100000.0, %v953_v0  ;;  %v5689_v18 = vld [vmem:[#allocation86_spill] sm:$0xff]  ;;  %v5690_v0 = vld [vmem:[#allocation87_spill] sm:$0xff] }
 0x2b7   : > { %5684 = vst [vmem:[#allocation24_spill] sm:$0xff] %v5145_v56  ;;  %v5147_v9 = vpop.eup %3488  ;;  %3512 = vrcp.f32 %v1580_v8  ;;  %v1451_v50 = vmul.f32 1.442695, %v2963_v17 }
 0x2b8   : > { %v5141_v16 = vpop.permute.xlu1 %2331  ;;  %5685 = vst [vmem:[#allocation25_spill] sm:$0xff] %v5147_v9  ;;  %v5149_v21 = vpop.eup %3490  ;;  %3514 = vrcp.f32 %v1579_v55  ;;  %v2965_v7 = vmul.f32 -100000.0, %v956_v47 }
 0x2b9   : > { %v5143_v23 = vpop.permute.xlu0 %2063  ;;  %5686 = vst [vmem:[#allocation45_spill] sm:$0xff] %v5149_v21  ;;  %v3493_v48 = vpop.eup %3492  ;;  %3516 = vpow2.f32 %v1441_v2  ;;  %v955_v2 = vsub.f32 %v5689_v18, %v5019_v20 }
 0x2ba   : > { %v3495_v51 = vpop.eup %3494  ;;  %3518 = vrcp.f32 %v1582_v12  ;;  %v1581_v21 = vadd.f32 1.0, %v3493_v48  ;;  %v958_v48 = vsub.f32 %v5690_v0, %v5019_v20 }
 0x2bb   : > { %v3497_v52 = vpop.eup %3496  ;;  %v1584_v63 = vadd.f32 1.0, %v3495_v51  ;;  %3520 = vpow2.f32 %v1447_v19  ;;  %v1449_v19 = vmul.f32 1.442695, %v2962_v59 }
 0x2bc   : > { %v5153_v34 = vpop.permute.xlu1 %2335  ;;  %v3499_v57 = vpop.eup %3498  ;;  %v1583_v4 = vadd.f32 1.0, %v3497_v52  ;;  %3522 = vpow2.f32 %v1445_v37  ;;  %v5691_v52 = vld [vmem:[#allocation88_spill] sm:$0xff] }
 0x2bd   : > { %v5155_v15 = vpop.permute.xlu0 %2067  ;;  %v5159_v56 = vpop.eup %3500  ;;  %v1586_v12 = vadd.f32 1.0, %v3499_v57  ;;  %3524 = vpow2.f32 %v1451_v50  ;;  %v957_v37 = vsub.f32 %v5691_v52, %v5019_v20  ;;  %v1455_v57 = vmul.f32 1.442695, %v2965_v7 }
 0x2be   : > { %v3503_v55 = vpop.eup %3502  ;;  %3526 = vrcp.f32 %v1581_v21  ;;  %v2964_v50 = vmul.f32 -100000.0, %v955_v2  ;;  %v2967_v21 = vmul.f32 -100000.0, %v958_v48 }
 0x2bf   : > { %v5167_v17 = vpop.eup %3504  ;;  %3528 = vrcp.f32 %v1584_v63  ;;  %v1585_v44 = vadd.f32 1.0, %v3503_v55  ;;  %v2966_v33 = vmul.f32 -100000.0, %v957_v37 }
 0x2c0   : > { %v5161_v8 = vpop.permute.xlu1 %2339  ;;  %v3507_v51 = vpop.eup %3506  ;;  %3530 = vrcp.f32 %v1583_v4  ;;  %v1453_v2 = vmul.f32 1.442695, %v2964_v50  ;;  %v1459_v48 = vmul.f32 1.442695, %v2967_v21 }
 0x2c1   : > { %v5163_v9 = vpop.permute.xlu0 %2071  ;;  %v3509_v46 = vpop.eup %3508  ;;  %3532 = vrcp.f32 %v1586_v12  ;;  %v1588_v0 = vadd.f32 1.0, %v3507_v51  ;;  %v1457_v29 = vmul.f32 1.442695, %v2966_v33  ;;  %v5696_v33 = vld [vmem:[#allocation91_spill] sm:$0xff] }
 0x2c2   : > { %v3511_v18 = vpop.eup %3510  ;;  %v1587_v63 = vadd.f32 1.0, %v3509_v46  ;;  %3534 = vpow2.f32 %v1449_v19  ;;  %v5693_v46 = vld [vmem:[#allocation90_spill] sm:$0xff] }
 0x2c3   : > { %v5177_v3 = vpop.eup %3512  ;;  %3536 = vrcp.f32 %v1585_v44  ;;  %v1590_v52 = vadd.f32 1.0, %v3511_v18  ;;  %v959_v51 = vsub.f32 %v5693_v46, %v5019_v20  ;;  %v2969_v18 = vmul.f32 -100000.0, %v960_v42 }
 0x2c4   : > { %v5173_v47 = vpop.permute.xlu1 %2343  ;;  %v5179_v59 = vpop.eup %3514  ;;  %3538 = vpow2.f32 %v1455_v57 }
 0x2c5   : > { %v5175_v43 = vpop.permute.xlu0 %2075  ;;  %v3517_v55 = vpop.eup %3516  ;;  %3540 = vrcp.f32 %v1588_v0  ;;  %v2968_v21 = vmul.f32 -100000.0, %v959_v51  ;;  %v1463_v42 = vmul.f32 1.442695, %v2969_v18  ;;  %v5699_v51 = vld [vmem:[#allocation43_spill] sm:$0xff] }
 0x2c6   : > { %v5187_v4 = vpop.eup %3518  ;;  %3542 = vrcp.f32 %v1587_v63  ;;  %v1589_v19 = vadd.f32 1.0, %v3517_v55 }
 0x2c7   : > { %v3521_v12 = vpop.eup %3520  ;;  %3544 = vrcp.f32 %v1590_v52  ;;  %v962_v52 = vsub.f32 %v5696_v33, %v5019_v20 }
 0x2c8   : > { %v5183_v54 = vpop.permute.xlu1 %2347  ;;  %v3523_v44 = vpop.eup %3522  ;;  %v1592_v57 = vadd.f32 1.0, %v3521_v12  ;;  %3546 = vpow2.f32 %v1453_v2 }
 0x2c9   : > { %v5185_v7 = vpop.permute.xlu0 %2079  ;;  %v3525_v37 = vpop.eup %3524  ;;  %v1591_v0 = vadd.f32 1.0, %v3523_v44  ;;  %3548 = vpow2.f32 %v1459_v48  ;;  %v2520_v48 = vmul.f32 %v5167_v17, %v5029_v28  ;;  %v2456_v44 = vmul.f32 %v5699_v51, %v5031_v14 }
 0x2ca   : > { %v3527_v45 = vpop.eup %3526  ;;  %3550 = vrcp.f32 %v1589_v19  ;;  %v1594_v63 = vadd.f32 1.0, %v3525_v37  ;;  %v1461_v37 = vmul.f32 1.442695, %v2968_v21  ;;  %v2971_v14 = vmul.f32 -100000.0, %v962_v52 }
 0x2cb   : > { %v5195_v50 = vpop.eup %3528  ;;  %3552 = vpow2.f32 %v1457_v29  ;;  %v5700_v29 = vld [vmem:[#allocation92_spill] sm:$0xff]  ;;  %v2653_v51 = vadd.f32 %v5023_v49, %v2520_v48 }
 0x2cc   : > { %v5191_v41 = vpop.permute.xlu1 %2351  ;;  %v5197_v46 = vpop.eup %3530  ;;  %3554 = vrcp.f32 %v1592_v57  ;;  %v961_v18 = vsub.f32 %v5700_v29, %v5019_v20  ;;  %v5701_v57 = vld [vmem:[#allocation42_spill] sm:$0xff]  ;;  %v5705_v49 = vld [vmem:[#allocation44_spill] sm:$0xff] }
 0x2cd   : > { %5694 = vst [vmem:[#allocation46_spill] sm:$0xff] %v5191_v41  ;;  %v5193_v1 = vpop.permute.xlu0 %2083  ;;  %v5199_v55 = vpop.eup %3532  ;;  %3556 = vrcp.f32 %v1591_v0 }
 0x2ce   : > { %5695 = vst [vmem:[#allocation26_spill] sm:$0xff] %v5193_v1  ;;  %v3535_v2 = vpop.eup %3534  ;;  %3558 = vrcp.f32 %v1594_v63  ;;  %v2584_v63 = vadd.f32 %v5025_v35, %v2456_v44  ;;  %v2970_v52 = vmul.f32 -100000.0, %v961_v18  ;;  %v2459_v35 = vmul.f32 %v5705_v49, %v5069_v58  ;;  %v5708_v49 = vld [vmem:[#allocation48_spill] sm:$0xff] }
 0x2cf   : > { %v5211_v19 = vpop.eup %3536  ;;  %v1593_v28 = vadd.f32 1.0, %v3535_v2  ;;  %3560 = vpow2.f32 %v1463_v42  ;;  %v2524_v18 = vmul.f32 %v3527_v45, %v5075_v61  ;;  %v5709_v61 = vld [vmem:[#allocation94_spill] sm:$0xff] }
 0x2d0   : > { %v5203_v1 = vpop.permute.xlu1 %2355  ;;  %v3539_v33 = vpop.eup %3538  ;;  %3562 = vpow2.f32 %v1461_v37 }
 0x2d1   : > { %5697 = vst [vmem:[#allocation53_spill] sm:$0xff] %v5203_v1  ;;  %v5205_v12 = vpop.permute.xlu0 %2087  ;;  %v2457_v1 = vmul.f32 %v5701_v57, %v5043_v31  ;;  %v5219_v41 = vpop.eup %3540  ;;  %v5704_v31 = vld [vmem:[#allocation47_spill] sm:$0xff]  ;;  %v1596_v42 = vadd.f32 1.0, %v3539_v33  ;;  %3564 = vrcp.f32 %v1593_v28  ;;  %v1465_v28 = vmul.f32 1.442695, %v2970_v52 }
 0x2d2   : > { %5698 = vst [vmem:[#allocation99_spill] sm:$0xff] %v5205_v12  ;;  %v2521_v12 = vmul.f32 %v5159_v56, %v5041_v36  ;;  %v5225_v21 = vpop.eup %3542  ;;  %v2522_v36 = vmul.f32 %v5179_v59, %v5053_v60  ;;  %v2458_v56 = vmul.f32 %v5704_v31, %v5055_v10  ;;  %v1467_v60 = vmul.f32 1.442695, %v2971_v14  ;;  %v5706_v59 = vld [vmem:[#allocation93_spill] sm:$0xff] }
 0x2d3   : > { %v5233_v29 = vpop.eup %3544  ;;  %v964_v10 = vsub.f32 %v5706_v59, %v5019_v20  ;;  %3566 = vrcp.f32 %v1596_v42  ;;  %v2525_v31 = vmul.f32 %v5187_v4, %v5089_v32  ;;  %v2461_v59 = vmul.f32 %v5708_v49, %v5091_v30 }
 0x2d4   : > { %v5221_v17 = vpop.permute.xlu1 %2362  ;;  %v3547_v2 = vpop.eup %3546  ;;  %v2654_v57 = vadd.f32 %v2653_v51, %v2521_v12  ;;  %3568 = vpow2.f32 %v1467_v60  ;;  %v2526_v32 = vmul.f32 %v5197_v46, %v5101_v40  ;;  %v2462_v30 = vmul.f32 %v4976_v53, %v5103_v26  ;;  %v5712_v53 = vld [vmem:[#allocation96_spill] sm:$0xff] }
 0x2d5   : > { %5702 = vst [vmem:[#allocation27_spill] sm:$0xff] %v5221_v17  ;;  %v5223_v0 = vpop.permute.xlu0 %2094  ;;  %v2523_v17 = vmul.f32 %v5177_v3, %v5067_v25  ;;  %v3549_v48 = vpop.eup %3548  ;;  %v5707_v25 = vld [vmem:[#allocation51_spill] sm:$0xff]  ;;  %v2973_v45 = vmul.f32 -100000.0, %v964_v10  ;;  %3570 = vpow2.f32 %v1465_v28  ;;  %v965_v26 = vsub.f32 %v5712_v53, %v5019_v20 }
 0x2d6   : > { %5703 = vst [vmem:[#allocation54_spill] sm:$0xff] %v5223_v0  ;;  %v2585_v0 = vadd.f32 %v2584_v63, %v2457_v1  ;;  %v5245_v37 = vpop.eup %3550  ;;  %v2655_v12 = vadd.f32 %v2654_v57, %v2522_v36  ;;  %v2460_v3 = vmul.f32 %v5707_v25, %v5077_v62  ;;  %v963_v62 = vsub.f32 %v5709_v61, %v5019_v20  ;;  %v5715_v53 = vld [vmem:[#allocation55_spill] sm:$0xff] }
 0x2d7   : > { %v3553_v58 = vpop.eup %3552  ;;  %v1471_v40 = vmul.f32 1.442695, %v2973_v45  ;;  %v2529_v45 = vmul.f32 %v5199_v55, %v5141_v16  ;;  %v2465_v61 = vmul.f32 %v4989_v5, %v5143_v23  ;;  %v2530_v16 = vmul.f32 %v5225_v21, %v5153_v34 }
 0x2d8   : > { %v5241_v44 = vpop.permute.xlu1 %2366  ;;  %v2586_v1 = vadd.f32 %v2585_v0, %v2458_v56  ;;  %v5250_v14 = vpop.eup %3554  ;;  %v2656_v51 = vadd.f32 %v2655_v12, %v2523_v17  ;;  %v1595_v0 = vadd.f32 1.0, %v3547_v2  ;;  %v1598_v2 = vadd.f32 1.0, %v3549_v48 }
 0x2d9   : > { %v5243_v33 = vpop.permute.xlu0 %2098  ;;  %v5256_v36 = vpop.eup %3556  ;;  %v2972_v46 = vmul.f32 -100000.0, %v963_v62  ;;  %v2466_v5 = vmul.f32 %v5012_v22, %v5155_v15 }
 0x2da   : > { %v2587_v63 = vadd.f32 %v2586_v1, %v2459_v35  ;;  %v5264_v17 = vpop.eup %3558  ;;  %v2657_v52 = vadd.f32 %v2656_v51, %v2524_v18  ;;  %v5710_v35 = vld [vmem:[#allocation95_spill] sm:$0xff]  ;;  %v2527_v1 = vmul.f32 %v5195_v50, %v5117_v6  ;;  %v5711_v18 = vld [vmem:[#allocation52_spill] sm:$0xff]  ;;  %3572 = vrcp.f32 %v1595_v0 }
 0x2db   : > { %v3561_v4 = vpop.eup %3560  ;;  %v966_v60 = vsub.f32 %v5710_v35, %v5019_v20  ;;  %v2463_v25 = vmul.f32 %v5711_v18, %v5119_v13  ;;  %v2528_v6 = vmul.f32 %v5211_v19, %v5131_v24  ;;  %v2464_v13 = vmul.f32 %v4994_v39, %v5133_v27  ;;  %v5713_v39 = vld [vmem:[#allocation98_spill] sm:$0xff] }
 0x2dc   : > { %v5260_v56 = vpop.permute.xlu1 %2370  ;;  %v2588_v57 = vadd.f32 %v2587_v63, %v2460_v3  ;;  %v2658_v10 = vadd.f32 %v2657_v52, %v2525_v31  ;;  %v5276_v3 = vpop.eup %3562  ;;  %3574 = vrcp.f32 %v1598_v2  ;;  %v1597_v31 = vadd.f32 1.0, %v3553_v58 }
 0x2dd   : > { %v5262_v42 = vpop.permute.xlu0 %2102  ;;  %v5288_v50 = vpop.eup %3564  ;;  %v2975_v49 = vmul.f32 -100000.0, %v966_v60  ;;  %3576 = vpow2.f32 %v1471_v40  ;;  %v1469_v24 = vmul.f32 1.442695, %v2972_v46  ;;  %v2974_v19 = vmul.f32 -100000.0, %v965_v26 }
 0x2de   : > { %v2589_v12 = vadd.f32 %v2588_v57, %v2461_v59  ;;  %v2659_v51 = vadd.f32 %v2658_v10, %v2526_v32  ;;  %v5294_v62 = vpop.eup %3566  ;;  %v967_v27 = vsub.f32 %v5713_v39, %v5019_v20  ;;  %3578 = vrcp.f32 %v1597_v31  ;;  %v5717_v31 = vld [vmem:[#allocation26_spill] sm:$0xff] }
 0x2df   : > { %v3569_v23 = vpop.eup %3568  ;;  %v1475_v55 = vmul.f32 1.442695, %v2975_v49  ;;  %v2531_v35 = vmul.f32 %v5219_v41, %v5161_v8  ;;  %v2467_v60 = vmul.f32 %v5009_v11, %v5163_v9  ;;  %3580 = vpow2.f32 %v1469_v24  ;;  %v5718_v49 = vld [vmem:[#allocation57_spill] sm:$0xff]  ;;  %v5720_v24 = vld [vmem:[#allocation99_spill] sm:$0xff] }
 0x2e0   : > { %v5280_v48 = vpop.permute.xlu1 %2374  ;;  %v2590_v63 = vadd.f32 %v2589_v12, %v2462_v30  ;;  %v2660_v59 = vadd.f32 %v2659_v51, %v2527_v1  ;;  %v3571_v10 = vpop.eup %3570  ;;  %v1473_v12 = vmul.f32 1.442695, %v2974_v19  ;;  %v5714_v1 = vld [vmem:[#allocation97_spill] sm:$0xff]  ;;  %v2976_v21 = vmul.f32 -100000.0, %v967_v27  ;;  %v5721_v19 = vld [vmem:[#allocation56_spill] sm:$0xff] }
 0x2e1   : > { %v5282_v28 = vpop.permute.xlu0 %2106  ;;  %v968_v34 = vsub.f32 %v5714_v1, %v5019_v20  ;;  %v2532_v40 = vmul.f32 %v5245_v37, %v5173_v47  ;;  %v2468_v41 = vmul.f32 %v5037_v38, %v5175_v43  ;;  %v1600_v9 = vadd.f32 1.0, %v3561_v4  ;;  %v5716_v4 = vld [vmem:[#allocation46_spill] sm:$0xff] }
 0x2e2   : > { %v2591_v0 = vadd.f32 %v2590_v63, %v2463_v25  ;;  %v2661_v57 = vadd.f32 %v2660_v59, %v2528_v6  ;;  %3582 = vpow2.f32 %v1475_v55  ;;  %v2533_v20 = vmul.f32 %v5233_v29, %v5183_v54  ;;  %v5722_v55 = vld [vmem:[#allocation27_spill] sm:$0xff] }
 0x2e3   : > { %v2469_v26 = vmul.f32 %v5715_v53, %v5185_v7  ;;  %3584 = vpow2.f32 %v1473_v12  ;;  %v2977_v63 = vmul.f32 -100000.0, %v968_v34  ;;  %v1477_v6 = vmul.f32 1.442695, %v2976_v21  ;;  %v5725_v21 = vld [vmem:[#allocation58_spill] sm:$0xff] }
 0x2e4   : > { %v5298_v52 = vpop.permute.xlu1 %2378  ;;  %v2592_v32 = vadd.f32 %v2591_v0, %v2464_v13  ;;  %v2662_v30 = vadd.f32 %v2661_v57, %v2529_v45  ;;  %v3573_v11 = vpop.eup %3572  ;;  %v2534_v13 = vmul.f32 %v5256_v36, %v5716_v4  ;;  %v2470_v54 = vmul.f32 %v5718_v49, %v5717_v31  ;;  %v5719_v45 = vld [vmem:[#allocation53_spill] sm:$0xff] }
 0x2e5   : > { %v5300_v58 = vpop.permute.xlu0 %2110  ;;  %3586 = vrcp.f32 %v1600_v9  ;;  %v1599_v7 = vadd.f32 1.0, %v5276_v3  ;;  %v2471_v39 = vmul.f32 %v5721_v19, %v5720_v24  ;;  %v1479_v57 = vmul.f32 1.442695, %v2977_v63  ;;  %v5724_v3 = vld [vmem:[#allocation59_spill] sm:$0xff]  ;;  %v5730_v19 = vld [vmem:[#allocation20_spill] sm:$0xff] }
 0x2e6   : > { %v2593_v2 = vadd.f32 %v2592_v32, %v2465_v61  ;;  %v2663_v15 = vadd.f32 %v2662_v30, %v2530_v16  ;;  %v5324_v51 = vpop.eup %3574  ;;  %v2535_v61 = vmul.f32 %v5250_v14, %v5719_v45  ;;  %3588 = vpow2.f32 %v1477_v6 }
 0x2e7   : > { %v3577_v29 = vpop.eup %3576  ;;  %v2536_v30 = vmul.f32 %v5288_v50, %v5722_v55  ;;  %3590 = vrcp.f32 %v1599_v7  ;;  %v1601_v12 = vadd.f32 1.0, %v3571_v10  ;;  %v2537_v34 = vmul.f32 %v5264_v17, %v5241_v44  ;;  %v5727_v17 = vld [vmem:[#allocation60_spill] sm:$0xff] }
 0x2e8   : > { %v5312_v18 = vpop.permute.xlu1 %2382  ;;  %v2594_v25 = vadd.f32 %v2593_v2, %v2466_v5  ;;  %v2664_v8 = vadd.f32 %v2663_v15, %v2531_v35  ;;  %v3579_v27 = vpop.eup %3578  ;;  %v5723_v2 = vld [vmem:[#allocation54_spill] sm:$0xff]  ;;  %v2473_v15 = vmul.f32 %v5725_v21, %v5243_v33  ;;  %3592 = vpow2.f32 %v1479_v57 }
 0x2e9   : > { %v5314_v22 = vpop.permute.xlu0 %2114  ;;  %v2472_v35 = vmul.f32 %v5724_v3, %v5723_v2  ;;  %3594 = vrcp.f32 %v1601_v12  ;;  %v2539_v33 = vmul.f32 %v5294_v62, %v5280_v48  ;;  %v5729_v62 = vld [vmem:[#allocation61_spill] sm:$0xff] }
 0x2ea   : > { %v2595_v46 = vadd.f32 %v2594_v25, %v2467_v60  ;;  %v2665_v38 = vadd.f32 %v2664_v8, %v2532_v40  ;;  %v3581_v60 = vpop.eup %3580  ;;  %v1602_v40 = vadd.f32 1.0, %v3569_v23  ;;  %v2475_v23 = vmul.f32 %v5727_v17, %v5282_v28 }
 0x2eb   : > { %v2541_v28 = vmul.f32 %v5324_v51, %v5312_v18 }
 0x2ec   : > { %v5326_v47 = vpop.permute.xlu1 %2386  ;;  %v2596_v43 = vadd.f32 %v2595_v46, %v2468_v41  ;;  %v2666_v59 = vadd.f32 %v2665_v38, %v2533_v20  ;;  %v3583_v25 = vpop.eup %3582  ;;  %v2538_v46 = vmul.f32 %v3573_v11, %v5260_v56  ;;  %v5726_v20 = vld [vmem:[#allocation62_spill] sm:$0xff]  ;;  %3596 = vrcp.f32 %v1602_v40 }
 0x2ed   : > { %v5328_v37 = vpop.permute.xlu0 %2118  ;;  %v2474_v10 = vmul.f32 %v5726_v20, %v5262_v42  ;;  %v3585_v53 = vpop.eup %3584  ;;  %v1604_v38 = vadd.f32 1.0, %v3577_v29  ;;  %v2540_v42 = vmul.f32 %v3579_v27, %v5298_v52  ;;  %v2477_v29 = vmul.f32 %v5729_v62, %v5314_v22 }
 0x2ee   : > { %v2597_v0 = vadd.f32 %v2596_v43, %v2469_v26  ;;  %v2667_v16 = vadd.f32 %v2666_v59, %v2534_v13  ;;  %v1603_v26 = vadd.f32 1.0, %v3581_v60  ;;  %v5728_v13 = vld [vmem:[#allocation63_spill] sm:$0xff] }
 0x2ef   : > { %v3587_v6 = vpop.eup %3586  ;;  %v2476_v31 = vmul.f32 %v5728_v13, %v5300_v58 }
 0x2f0   : > { %v2391_v32 = vpop.permute.xlu1 %2390  ;;  %v2598_v5 = vadd.f32 %v2597_v0, %v2470_v54  ;;  %v2668_v14 = vadd.f32 %v2667_v16, %v2535_v61  ;;  %v3589_v49 = vpop.eup %3588  ;;  %3598 = vrcp.f32 %v1603_v26  ;;  %v1605_v54 = vadd.f32 1.0, %v3585_v53  ;;  %v5735_v53 = vld [vmem:[#allocation23_spill] sm:$0xff] }
 0x2f1   : > { %v2123_v36 = vpop.permute.xlu0 %2122  ;;  %v3591_v59 = vpop.eup %3590  ;;  %3600 = vrcp.f32 %v1604_v38  ;;  %v1606_v0 = vadd.f32 1.0, %v3583_v25  ;;  %v1607_v57 = vadd.f32 1.0, %v3589_v49  ;;  %v2543_v51 = vmul.f32 %v3587_v6, %v2391_v32  ;;  %v5734_v32 = vld [vmem:[#allocation66_spill] sm:$0xff] }
 0x2f2   : > { %v2599_v1 = vadd.f32 %v2598_v5, %v2471_v39  ;;  %v2669_v50 = vadd.f32 %v2668_v14, %v2536_v30  ;;  %v2542_v58 = vmul.f32 %v3591_v59, %v5326_v47  ;;  %v2478_v39 = vmul.f32 %v5730_v19, %v5328_v37  ;;  %v3593_v27 = vpop.eup %3592  ;;  %v5731_v5 = vld [vmem:[#allocation64_spill] sm:$0xff]  ;;  %v5732_v30 = vld [vmem:[#allocation65_spill] sm:$0xff] }
 0x2f3   : > { %3602 = vrcp.f32 %v1605_v54  ;;  %v2479_v22 = vmul.f32 %v5731_v5, %v2123_v36  ;;  %v3595_v55 = vpop.eup %3594  ;;  %v1544_v2 = vadd.f32 1.0, %v5732_v30  ;;  %v5733_v14 = vld [vmem:[#allocation21_spill] sm:$0xff] }
 0x2f4   : > { %v2395_v41 = vpop.permute.xlu1 %2394  ;;  %v2600_v8 = vadd.f32 %v2599_v1, %v2472_v35  ;;  %v2670_v63 = vadd.f32 %v2669_v50, %v2537_v34  ;;  %3604 = vrcp.f32 %v1606_v0  ;;  %v1608_v34 = vadd.f32 1.0, %v3593_v27 }
 0x2f5   : > { %v2127_v9 = vpop.permute.xlu0 %2126  ;;  %v2544_v47 = vmul.f32 %v3595_v55, %v2395_v41  ;;  %3606 = vrcp.f32 %v1607_v57 }
 0x2f6   : > { %v2601_v44 = vadd.f32 %v2600_v8, %v2473_v15  ;;  %v2671_v56 = vadd.f32 %v2670_v63, %v2538_v46  ;;  %v2480_v1 = vmul.f32 %v5733_v14, %v2127_v9  ;;  %v3597_v37 = vpop.eup %3596  ;;  %3608 = vrcp.f32 %v1544_v2 }
 0x2f7   : > { %3610 = vrcp.f32 %v1608_v34 }
 0x2f8   : > { %v2399_v43 = vpop.permute.xlu1 %2398  ;;  %v2602_v11 = vadd.f32 %v2601_v44, %v2474_v10  ;;  %v2672_v7 = vadd.f32 %v2671_v56, %v2539_v33  ;;  %v5736_v33 = vld [vmem:[#allocation22_spill] sm:$0xff] }
 0x2f9   : > { %v2131_v4 = vpop.permute.xlu0 %2130  ;;  %v2545_v25 = vmul.f32 %v3597_v37, %v2399_v43 }
 0x2fa   : > { %v2603_v48 = vadd.f32 %v2602_v11, %v2475_v23  ;;  %v2673_v52 = vadd.f32 %v2672_v7, %v2540_v42  ;;  %v2481_v40 = vmul.f32 %v5734_v32, %v2131_v4  ;;  %v3599_v36 = vpop.eup %3598  ;;  %v5737_v11 = vld [vmem:[#allocation25_spill] sm:$0xff]  ;;  %v5738_v7 = vld [vmem:[#allocation24_spill] sm:$0xff] }
 0x2fb   : > { %v3601_v41 = vpop.eup %3600 }
 0x2fc   : > { %v2403_v45 = vpop.permute.xlu1 %2402  ;;  %v2604_v24 = vadd.f32 %v2603_v48, %v2476_v31  ;;  %v2674_v16 = vadd.f32 %v2673_v52, %v2541_v28 }
 0x2fd   : > { %v2135_v61 = vpop.permute.xlu0 %2134  ;;  %v2546_v10 = vmul.f32 %v3599_v36, %v2403_v45  ;;  %v3603_v23 = vpop.eup %3602 }
 0x2fe   : > { %v2605_v18 = vadd.f32 %v2604_v24, %v2477_v29  ;;  %v2675_v60 = vadd.f32 %v2674_v16, %v2542_v58  ;;  %v2482_v26 = vmul.f32 %v5735_v53, %v2135_v61  ;;  %v3605_v13 = vpop.eup %3604  ;;  %v5739_v61 = vld [vmem:[#allocation45_spill] sm:$0xff] }
 0x2ff   : > { %v3607_v28 = vpop.eup %3606 }
 0x300   : > { %v2407_v3 = vpop.permute.xlu1 %2406  ;;  %v2606_v12 = vadd.f32 %v2605_v18, %v2478_v39  ;;  %v2676_v21 = vadd.f32 %v2675_v60, %v2543_v51  ;;  %v3609_v24 = vpop.eup %3608 }
 0x301   : > { %v2139_v35 = vpop.permute.xlu0 %2138  ;;  %v2547_v44 = vmul.f32 %v3601_v41, %v2407_v3  ;;  %v3611_v39 = vpop.eup %3610 }
 0x302   : > { %v2607_v15 = vadd.f32 %v2606_v12, %v2479_v22  ;;  %v2677_v46 = vadd.f32 %v2676_v21, %v2544_v47  ;;  %v2483_v17 = vmul.f32 %v5736_v33, %v2139_v35 }
 0x304   : > { %v2411_v50 = vpop.permute.xlu1 %2410  ;;  %v2608_v20 = vadd.f32 %v2607_v15, %v2480_v1  ;;  %v2678_v9 = vadd.f32 %v2677_v46, %v2545_v25  ;;  %v2552_v15 = vld [vmem:[%s4138_s9] sm:$0x3] }
 0x305   : > { %v2143_v8 = vpop.permute.xlu0 %2142  ;;  %v2548_v56 = vmul.f32 %v3603_v23, %v2411_v50 }
 0x306   : > { %v2609_v63 = vadd.f32 %v2608_v20, %v2481_v40  ;;  %v2679_v43 = vadd.f32 %v2678_v9, %v2546_v10  ;;  %v2484_v42 = vmul.f32 %v5737_v11, %v2143_v8 }
 0x308   : > { %v2415_v6 = vpop.permute.xlu1 %2414  ;;  %v2610_v4 = vadd.f32 %v2609_v63, %v2482_v26  ;;  %v2680_v31 = vadd.f32 %v2679_v43, %v2547_v44 }
 0x309   : > { %v2147_v38 = vpop.permute.xlu0 %2146  ;;  %v2549_v54 = vmul.f32 %v3605_v13, %v2415_v6 }
 0x30a   : > { %v2611_v49 = vadd.f32 %v2610_v4, %v2483_v17  ;;  %v2485_v48 = vmul.f32 %v5738_v7, %v2147_v38  ;;  %v2681_v59 = vadd.f32 %v2680_v31, %v2548_v56 }
 0x30c   : > { %v2419_v62 = vpop.permute.xlu1 %2418  ;;  %v2612_v0 = vadd.f32 %v2611_v49, %v2484_v42  ;;  %v2682_v58 = vadd.f32 %v2681_v59, %v2549_v54 }
 0x30d   : > { %v2151_v29 = vpop.permute.xlu0 %2150  ;;  %v2550_v45 = vmul.f32 %v3607_v28, %v2419_v62 }
 0x30e   : > { %v2486_v52 = vmul.f32 %v5739_v61, %v2151_v29  ;;  %v2613_v19 = vadd.f32 %v2612_v0, %v2485_v48 }
 0x30f   : > { %v2683_v16 = vadd.f32 %v2682_v58, %v2550_v45 }
 0x310   : > { %v2423_v27 = vpop.permute.xlu1 %2422  ;;  %v2614_v18 = vadd.f32 %v2613_v19, %v2486_v52 }
 0x311   : > { %v2155_v57 = vpop.permute.xlu0 %2154  ;;  %v2551_v51 = vmul.f32 %v3611_v39, %v2423_v27 }
 0x312   : > { %v2487_v5 = vmul.f32 %v3609_v24, %v2155_v57 }
 0x313   : > { %v2684_v22 = vadd.f32 %v2683_v16, %v2551_v51 }
 0x314   : > { %v2615_v55 = vadd.f32 %v2614_v18, %v2487_v5 }
 0x315   : > { %v2685_v30 = vrot.slane %v2684_v22, 4 }
 0x316   : > { %v2616_v2 = vrot.slane %v2615_v55, 4 }
 0x317   : > { %v2686_v3 = vadd.f32 %v2685_v30, %v2684_v22 }
 0x318   : > { %v2617_v35 = vadd.f32 %v2616_v2, %v2615_v55 }
 0x319   : > { %v2687_v60 = vrot.slane %v2686_v3, 2 }
 0x31a   : > { %v2618_v12 = vrot.slane %v2617_v35, 2 }
 0x31b   : > { %v2688_v47 = vadd.f32 %v2687_v60, %v2686_v3 }
 0x31c   : > { %v2619_v14 = vadd.f32 %v2618_v12, %v2617_v35 }
 0x31d   : > { %v2689_v1 = vrot.slane %v2688_v47, 1 }
 0x31e   : > { %v2620_v37 = vrot.slane %v2619_v14, 1 }
 0x31f   : > { %v2690_v34 = vadd.f32 %v2689_v1, %v2688_v47 }
 0x320   : > { %v2621_v21 = vadd.f32 %v2620_v37, %v2619_v14 }
 0x322   : > { %v2694_v25 = vsel %vm2693_vm0, %v2690_v34, %v2621_v21 }
 0x323   : > { %v2696_v32 = vadd.f32 %v2694_v25, %v2552_v15 }
 0x325   : > { %2697 = vst [vmem:[%s4138_s9] sm:$0x3] %v2696_v32 }
 0x326   : > { %3717 = shalt.err (!%p3714_p13)
}
 0x327   : > { %s3718_s5 = scalar_lea.hbm %s5379_s30, 32  ;;  %s3722_s7 = scalar_lea.hbm %s5740_s4, 64 }
 0x328   : > { %p3719_p7 = scmp.ne.s32.totalorder %s5379_s30, %s3718_s5  ;;  %p3723_p10 = scmp.lt.u32.totalorder %s5379_s30, %s5740_s4 }
 0x329   : > { %p3724_p9 = scmp.lt.u32.totalorder %s3722_s7, %s3718_s5  ;;  %p3726_p4 = scmp.lt.u32.totalorder %s3718_s5, %s5379_s30 }
 0x32a   : > { %p3720_p0 = pnand %p3719_p7, %p5741_p1 }
 0x32b   : > { %p3725_p6 = por %p3724_p9, %p3723_p10 }
 0x32c   : > { %p3721_p5 = pneg %p3720_p0 }
 0x32d   : > { %p3727_p3 = por %p3726_p4, %p3725_p6 }
 0x32f   : > { %p3728_p2 = pnand %p3727_p3, %p3721_p5 }
 0x331   : > { %3731 = shalt.err (!%p3728_p2)
}
 0x332   : > { %2990 = dma.vmem_to_hbm [thread:$0]  (%p5741_p1), %s5381_s23, 32, %s5379_s30, %s2699_s8  }
 0x333 PF: > { %s5742_s27 = sld [smem:[#allocation13_spill]]  ;;  %p3007_p12 = scmp.ge.s32.totalorder %s3830_s22, 2 }
 0x334   : > { %p5743_p8 = scmp.ne.s32.totalorder %s5482_s6, 0 }
 0x336   : > { %p3003_p11 = pnand %p3007_p12, %p5743_p8 }
 0x339   : > { %s2724_s14 = sand.u32 1, %s5742_s27  }
 0x33a   : > { %s2725_s29 = scalar_lea.sflag [#allocation4], %s2724_s14 }
 0x33b   : > { %3785 = dma.done.wait (!%p3003_p11), %s2725_s29, 32  }
 0x33c   : > { %3787 = vsyncadd (!%p3003_p11), %s2725_s29, 4294967264  ;;  %s22_s22 = sadd.s32 1, %s3830_s22   ;;  %s5744_s24 = sld [smem:[#allocation12_spill]] }
 0x33d   : > { %p19_p13 = scmp.ge.s32.totalorder %s22_s22, 6   ;;  %s5745_s14 = sld [smem:[#allocation17_spill]] }
 0x33e   : > { %s5746_s11 = sld [smem:[#allocation19_spill]]  ;;  %s5747_s18 = sld [smem:[#allocation14_spill]] }
 0x33f   : > { %s5748_s19 = sld [smem:[#allocation15_spill]]  ;;  %s5749_s20 = sld [smem:[#allocation16_spill]] }
 0x340   : > { %s5750_s21 = sld [smem:[#allocation18_spill]]  ;;  %s5751_s12 = smov %s3794_s13 }
 0x341   : > { %s5753_s15 = smov %s3806_s16  ;;  %s5754_s16 = smov %s3810_s17 }
 0x342   : > { %s5752_s13 = smov %s5744_s24  ;;  %21 = sbr.rel (!%p19_p13) target bundleno = 14 (0xe), region = 105 }
 0x344   : > { %s5755_s17 = smov %s5746_s11 }
 0x349   :  { %2730 = vsyncpa [#allocation3], 1 }
 0x34a   :  { %2732 = vsyncpa [#allocation3 + $0x1], 1 }
 0x34b   :  { %2733 = vsyncpa [#allocation6], 1 }
 0x34c   :  { %2735 = vsyncpa [#allocation6 + $0x1], 1 }
 0x34d   :  { %2736 = vsyncpa [#allocation4], 1 }
 0x34e   :  { %2738 = vsyncpa [#allocation4 + $0x1], 1 }

</bundles_post_ra>
